<compile_context>
chip_gen: v7x
topology: tpu7x:2x2x1
jax: 0.10.0
libtpu: 0.0.40
codegen_flags: <defaults>
</compile_context>

<pallas_src>
import functools

import jax
import jax.numpy as jnp
from jax.experimental import pallas as pl
from jax.experimental.pallas import tpu as pltpu


# ----------------------------- Pallas kernel ------------------------------

def _dilated_conv_kernel(x_ref, w_ref, b_ref, o_ref, col_ref, *,
                         dilations, dmax, stride, tile_h, W_out, temp):
    """One (batch, row-tile) step of the fused multi-dilation grouped 3x3 conv.

    x_ref  : (H_pad_eff, W_pad, C_total)   dmax-padded NHWC input (resident)
    w_ref  : (S, 9*temp, temp)             per-split im2col channel mixers
    b_ref  : (S, temp)  float32            per-split bias
    o_ref  : (tile_h, W_out, C_total)      output row tile (NHWC)
    col_ref: (tile_h*W_out, 9*temp)        im2col scratch (compute dtype)
    """
    r = pl.program_id(1)
    row0 = pl.multiple_of(r * (tile_h * stride), tile_h * stride)
    rows = tile_h * W_out

    for s, d in enumerate(dilations):               # static unroll over splits
        c0 = s * temp
        # ---- build the im2col slab for this split (9 lane slabs along K) ----
        for kh in range(3):
            h0 = row0 + (dmax + (kh - 1) * d)       # dynamic tile off + static tap
            for kw in range(3):
                w0 = dmax + (kw - 1) * d            # static
                t = kh * 3 + kw
                if stride == 1:
                    patch = x_ref[pl.ds(h0, tile_h),
                                  pl.ds(w0, W_out),
                                  pl.ds(c0, temp)]
                else:
                    # stride folded into the Ref slice: no stride^2 over-read,
                    # no value-level relayout.
                    patch = x_ref[pl.ds(h0, tile_h, stride),
                                  pl.ds(w0, W_out, stride),
                                  pl.ds(c0, temp)]
                col_ref[:, t * temp:(t + 1) * temp] = patch.reshape(rows, temp)

        # ---- one big MXU dot per split: (rows, 9*temp) @ (9*temp, temp) ----
        out = jnp.dot(col_ref[...], w_ref[s],
                      preferred_element_type=jnp.float32)
        out = out + b_ref[s:s + 1, :]               # f32 bias epilogue
        # NOTE: lane-dense (unmasked) stores when temp % 128 == 0 (RegSeg's
        # realistic temp=128); smaller temp falls back to masked stores.
        o_ref[:, :, c0:c0 + temp] = (
            out.reshape(tile_h, W_out, temp).astype(o_ref.dtype))


# ------------------------------- helpers -----------------------------------

def _block_diag_weight(wt, group_width):
    """PyTorch grouped-conv weight [out_ch, gw, 3, 3] -> dense [3,3,C,C]
    block-diagonal (in_ch, out_ch) channel-mixing matrix per tap."""
    out_ch, gw, kh, kw = wt.shape
    assert gw == group_width and kh == 3 and kw == 3
    groups = out_ch // gw
    wmat = jnp.zeros((3, 3, out_ch, out_ch), wt.dtype)
    for g in range(groups):
        blk = jnp.transpose(wt[g * gw:(g + 1) * gw], (2, 3, 1, 0))  # [3,3,ci,co]
        wmat = wmat.at[:, :, g * gw:(g + 1) * gw, g * gw:(g + 1) * gw].set(blk)
    return wmat


def _pick_tile_h(h_out, w_out):
    """Target rows = tile_h * w_out in roughly [512, 2048]; prefer tile_h a
    multiple of 8 (sublane-friendly). Non-divisors are fine (masked last tile)."""
    target_rows = 1024
    tile_h = max(1, min(h_out, target_rows // max(1, w_out)))
    if tile_h < h_out:
        t8 = min(h_out, -(-tile_h // 8) * 8)
        if t8 * w_out <= 2 * target_rows:
            tile_h = t8
    return tile_h


# ------------------------------- wrapper -----------------------------------

def dilated_conv_pallas(x_nchw, weights, biases, *, dilations, group_width,
                        stride, compute_dtype=jnp.bfloat16):
    """Forward pass of DilatedConv.  x_nchw: (N, w, H, W).

    compute_dtype=bf16 is the default (MXU-native on v6e/v7x, f32 accumulation
    inside the kernel); pass jnp.float32 for an exact debug path.
    """
    N, w_ch, H, W = x_nchw.shape
    num_splits = len(dilations)
    assert w_ch % num_splits == 0
    temp = w_ch // num_splits
    assert temp % group_width == 0
    dmax = max(dilations)

    H_out = (H - 1) // stride + 1          # kernel 3, dilation d, padding d
    W_out = (W - 1) // stride + 1
    tile_h = _pick_tile_h(H_out, W_out)
    R = pl.cdiv(H_out, tile_h)
    rows = tile_h * W_out

    out_dtype = x_nchw.dtype
    if compute_dtype is None:
        compute_dtype = x_nchw.dtype

    # Extra bottom rows so the (dropped) partial last row tile still reads
    # in-bounds inside the kernel.
    extra_h = max(0, (R * tile_h - 1) * stride + 1 - H)

    # NCHW -> NHWC, single pad by dmax (+extra bottom); fused by XLA under jit.
    x_nhwc = jnp.transpose(x_nchw, (0, 2, 3, 1)).astype(compute_dtype)
    xp = jnp.pad(x_nhwc, ((0, 0), (dmax, dmax + extra_h), (dmax, dmax), (0, 0)))
    H_pad_eff, W_pad = H + 2 * dmax + extra_h, W + 2 * dmax

    # Per-split block-diagonal weights, reshaped for the fused-K im2col dot:
    # (S, 3, 3, temp, temp) -> (S, 9*temp, temp), row index = (kh*3+kw)*temp+ci.
    wstack = jnp.stack([_block_diag_weight(weights[s], group_width)
                        for s in range(num_splits)])
    wstack = wstack.reshape(num_splits, 9 * temp, temp).astype(compute_dtype)
    bstack = jnp.stack(biases).astype(jnp.float32)      # bias stays f32

    # Generation-aware VMEM budget.
    in_isz = jnp.dtype(compute_dtype).itemsize
    out_isz = jnp.dtype(out_dtype).itemsize
    est = (2 * H_pad_eff * W_pad * w_ch * in_isz        # double-buffered image
           + 2 * tile_h * W_out * w_ch * out_isz        # double-buffered out tile
           + 2 * wstack.size * in_isz + 2 * bstack.size * 4
           + rows * 9 * temp * in_isz                   # im2col scratch
           + 2 * rows * temp * 4                        # dot-result temporaries
           + 2 * 2 ** 20)                               # Mosaic internal slack
    try:
        vmem_cap = int(pltpu.get_tpu_info().vmem_capacity_bytes)
    except Exception:
        vmem_cap = 128 * 2 ** 20
    vmem_limit = int(min(max(2 * est, 32 * 2 ** 20), int(0.75 * vmem_cap)))

    cost = pl.CostEstimate(
        flops=2 * N * H_out * W_out * 9 * temp * temp * num_splits,
        transcendentals=0,
        bytes_accessed=int(xp.size * in_isz
                           + N * H_out * W_out * w_ch * out_isz
                           + wstack.size * in_isz + bstack.size * 4),
    )

    kernel = functools.partial(
        _dilated_conv_kernel, dilations=tuple(dilations), dmax=dmax,
        stride=stride, tile_h=tile_h, W_out=W_out, temp=temp)

    y_nhwc = pl.pallas_call(
        kernel,
        out_shape=jax.ShapeDtypeStruct((N, H_out, W_out, w_ch), out_dtype),
        grid_spec=pltpu.PrefetchScalarGridSpec(
            num_scalar_prefetch=0,
            grid=(N, R),
            in_specs=[
                # full padded image per batch element, resident across row tiles
                pl.BlockSpec((None, H_pad_eff, W_pad, w_ch),
                             lambda n, r: (n, 0, 0, 0)),
                pl.BlockSpec((num_splits, 9 * temp, temp),
                             lambda n, r: (0, 0, 0)),
                pl.BlockSpec((num_splits, temp), lambda n, r: (0, 0)),
            ],
            out_specs=pl.BlockSpec((None, tile_h, W_out, w_ch),
                                   lambda n, r: (n, r, 0, 0)),
            scratch_shapes=[pltpu.VMEM((rows, 9 * temp), compute_dtype)],
        ),
        compiler_params=pltpu.CompilerParams(
            # Batch axis parallel (megacore / 2-TC split stays on N so each
            # core keeps a distinct resident image); row-tile axis arbitrary.
            dimension_semantics=("parallel", "arbitrary"),
            vmem_limit_bytes=vmem_limit,
        ),
        cost_estimate=cost,
    )(xp, wstack, bstack)

    return jnp.transpose(y_nhwc, (0, 3, 1, 2))   # back to NCHW


# --------------------------- pure-JAX reference ----------------------------

def dilated_conv_ref(x_nchw, weights, biases, dilations, group_width, stride):
    num_splits = len(dilations)
    temp = x_nchw.shape[1] // num_splits
    outs = []
    for s, d in enumerate(dilations):
        xs = x_nchw[:, s * temp:(s + 1) * temp]
        groups = temp // group_width
        o = jax.lax.conv_general_dilated(
            xs, weights[s],
            window_strides=(stride, stride),
            padding=((d, d), (d, d)),
            rhs_dilation=(d, d),
            dimension_numbers=("NCHW", "OIHW", "NCHW"),
            feature_group_count=groups,
        )
        o = o + biases[s][None, :, None, None]
        outs.append(o)
    return jnp.concatenate(outs, axis=1)


# --------------------------------- main ------------------------------------

if __name__ == "__main__":
    # Module config (mirrors DilatedConv(w, dilations, group_width, stride, bias))
    w_channels = 8
    dilations = (1, 2)
    group_width = 2
    stride = 1

    N, H, W = 2, 16, 16
    num_splits = len(dilations)
    temp = w_channels // num_splits          # 4 channels per split

    key = jax.random.PRNGKey(0)
    kx, *ks = jax.random.split(key, 1 + 2 * num_splits)
    x = jax.random.normal(kx, (N, w_channels, H, W), jnp.float32)

    weights, biases = [], []
    for s in range(num_splits):
        kw_, kb_ = ks[2 * s], ks[2 * s + 1]
        # PyTorch grouped Conv2d weight: [out_ch, in_ch/groups, 3, 3]
        weights.append(0.1 * jax.random.normal(
            kw_, (temp, group_width, 3, 3), jnp.float32))
        biases.append(0.1 * jax.random.normal(kb_, (temp,), jnp.float32))
    weights, biases = tuple(weights), tuple(biases)

    y_ref = dilated_conv_ref(x, weights, biases, dilations, group_width, stride)

    # f32 debug path (exact check).
    fwd_f32 = jax.jit(functools.partial(
        dilated_conv_pallas, dilations=dilations,
        group_width=group_width, stride=stride,
        compute_dtype=jnp.float32))
    y32 = jax.block_until_ready(fwd_f32(x, weights, biases))
    assert y32.shape == y_ref.shape == (N, w_channels, H, W)
    assert jnp.allclose(y32, y_ref, atol=1e-4, rtol=1e-4), (
        float(jnp.max(jnp.abs(y32 - y_ref))))

    # Default path: bf16 compute (MXU-native on v6e/v7x), f32 accumulation.
    fwd = jax.jit(functools.partial(
        dilated_conv_pallas, dilations=dilations,
        group_width=group_width, stride=stride))
    y = jax.block_until_ready(fwd(x, weights, biases))
    assert y.shape == y_ref.shape
    assert jnp.allclose(y.astype(jnp.float32), y_ref, atol=1e-1, rtol=1e-1), (
        float(jnp.max(jnp.abs(y.astype(jnp.float32) - y_ref))))

    print("KERNEL_OK")
</pallas_src>

<mosaic_0001>
module attributes {stable_mosaic.version = 11 : i64} {
  func.func @_dilated_conv_kernel(%arg0: i32, %arg1: i32, %arg2: memref<1x20x20x8xf32, #tpu.memory_space<vmem>>, %arg3: memref<2x36x4xf32, #tpu.memory_space<vmem>>, %arg4: memref<2x4xf32, #tpu.memory_space<vmem>>, %arg5: memref<1x16x16x8xf32, #tpu.memory_space<vmem>>, %arg6: memref<256x36xf32, #tpu.memory_space<vmem>>) attributes {dimension_semantics = [#tpu.dimension_semantics<parallel>, #tpu.dimension_semantics<arbitrary>], iteration_bounds = array<i64: 2, 1>, scalar_prefetch = 0 : i64, scratch_operands = 1 : i64, tpu.core_type = #tpu.core_type<tc>, window_params = [{transform_indices = @transform_0, window_bounds = array<i64: 1, 20, 20, 8>}, {pipeline_mode = #tpu.pipeline_mode<synchronous>, transform_indices = @transform_1, window_bounds = array<i64: 2, 36, 4>}, {pipeline_mode = #tpu.pipeline_mode<synchronous>, transform_indices = @transform_2, window_bounds = array<i64: 2, 4>}, {transform_indices = @transform_3, window_bounds = array<i64: 1, 16, 16, 8>}]} {
    %c16_i32 = arith.constant 16 : i32
    %0 = arith.muli %arg1, %c16_i32 : i32
    %1 = tpu.assume_multiple %0, 16 : i32
    %c1_i32 = arith.constant 1 : i32
    %2 = arith.addi %1, %c1_i32 : i32
    %c0 = arith.constant 0 : index
    %3 = arith.index_cast %2 : i32 to index
    %c1 = arith.constant 1 : index
    %c0_0 = arith.constant 0 : index
    %4 = vector.load %arg2[%c0, %3, %c1, %c0_0] : memref<1x20x20x8xf32, #tpu.memory_space<vmem>>, vector<1x16x16x4xf32>
    %5 = vector.shape_cast %4 : vector<1x16x16x4xf32> to vector<16x16x4xf32>
    %6 = vector.shape_cast %5 : vector<16x16x4xf32> to vector<256x4xf32>
    %c0_1 = arith.constant 0 : index
    %c0_2 = arith.constant 0 : index
    %7 = vector.load %arg6[%c0_1, %c0_2] : memref<256x36xf32, #tpu.memory_space<vmem>>, vector<256x4xf32>
    tpu.vector_store %arg6[%c0_1, %c0_2], %6 {strides = array<i32>} : memref<256x36xf32, #tpu.memory_space<vmem>>, vector<256x4xf32>,
    %c0_3 = arith.constant 0 : index
    %8 = arith.index_cast %2 : i32 to index
    %c2 = arith.constant 2 : index
    %c0_4 = arith.constant 0 : index
    %9 = vector.load %arg2[%c0_3, %8, %c2, %c0_4] : memref<1x20x20x8xf32, #tpu.memory_space<vmem>>, vector<1x16x16x4xf32>
    %10 = vector.shape_cast %9 : vector<1x16x16x4xf32> to vector<16x16x4xf32>
    %11 = vector.shape_cast %10 : vector<16x16x4xf32> to vector<256x4xf32>
    %c0_5 = arith.constant 0 : index
    %c4 = arith.constant 4 : index
    %12 = vector.load %arg6[%c0_5, %c4] : memref<256x36xf32, #tpu.memory_space<vmem>>, vector<256x4xf32>
    tpu.vector_store %arg6[%c0_5, %c4], %11 {strides = array<i32>} : memref<256x36xf32, #tpu.memory_space<vmem>>, vector<256x4xf32>,
    %c0_6 = arith.constant 0 : index
    %13 = arith.index_cast %2 : i32 to index
    %c3 = arith.constant 3 : index
    %c0_7 = arith.constant 0 : index
    %14 = vector.load %arg2[%c0_6, %13, %c3, %c0_7] : memref<1x20x20x8xf32, #tpu.memory_space<vmem>>, vector<1x16x16x4xf32>
    %15 = vector.shape_cast %14 : vector<1x16x16x4xf32> to vector<16x16x4xf32>
    %16 = vector.shape_cast %15 : vector<16x16x4xf32> to vector<256x4xf32>
    %c0_8 = arith.constant 0 : index
    %c8 = arith.constant 8 : index
    %17 = vector.load %arg6[%c0_8, %c8] : memref<256x36xf32, #tpu.memory_space<vmem>>, vector<256x4xf32>
    tpu.vector_store %arg6[%c0_8, %c8], %16 {strides = array<i32>} : memref<256x36xf32, #tpu.memory_space<vmem>>, vector<256x4xf32>,
    %c2_i32 = arith.constant 2 : i32
    %18 = arith.addi %1, %c2_i32 : i32
    %c0_9 = arith.constant 0 : index
    %19 = arith.index_cast %18 : i32 to index
    %c1_10 = arith.constant 1 : index
    %c0_11 = arith.constant 0 : index
    %20 = vector.load %arg2[%c0_9, %19, %c1_10, %c0_11] : memref<1x20x20x8xf32, #tpu.memory_space<vmem>>, vector<1x16x16x4xf32>
    %21 = vector.shape_cast %20 : vector<1x16x16x4xf32> to vector<16x16x4xf32>
    %22 = vector.shape_cast %21 : vector<16x16x4xf32> to vector<256x4xf32>
    %c0_12 = arith.constant 0 : index
    %c12 = arith.constant 12 : index
    %23 = vector.load %arg6[%c0_12, %c12] : memref<256x36xf32, #tpu.memory_space<vmem>>, vector<256x4xf32>
    tpu.vector_store %arg6[%c0_12, %c12], %22 {strides = array<i32>} : memref<256x36xf32, #tpu.memory_space<vmem>>, vector<256x4xf32>,
    %c0_13 = arith.constant 0 : index
    %24 = arith.index_cast %18 : i32 to index
    %c2_14 = arith.constant 2 : index
    %c0_15 = arith.constant 0 : index
    %25 = vector.load %arg2[%c0_13, %24, %c2_14, %c0_15] : memref<1x20x20x8xf32, #tpu.memory_space<vmem>>, vector<1x16x16x4xf32>
    %26 = vector.shape_cast %25 : vector<1x16x16x4xf32> to vector<16x16x4xf32>
    %27 = vector.shape_cast %26 : vector<16x16x4xf32> to vector<256x4xf32>
    %c0_16 = arith.constant 0 : index
    %c16 = arith.constant 16 : index
    %28 = vector.load %arg6[%c0_16, %c16] : memref<256x36xf32, #tpu.memory_space<vmem>>, vector<256x4xf32>
    tpu.vector_store %arg6[%c0_16, %c16], %27 {strides = array<i32>} : memref<256x36xf32, #tpu.memory_space<vmem>>, vector<256x4xf32>,
    %c0_17 = arith.constant 0 : index
    %29 = arith.index_cast %18 : i32 to index
    %c3_18 = arith.constant 3 : index
    %c0_19 = arith.constant 0 : index
    %30 = vector.load %arg2[%c0_17, %29, %c3_18, %c0_19] : memref<1x20x20x8xf32, #tpu.memory_space<vmem>>, vector<1x16x16x4xf32>
    %31 = vector.shape_cast %30 : vector<1x16x16x4xf32> to vector<16x16x4xf32>
    %32 = vector.shape_cast %31 : vector<16x16x4xf32> to vector<256x4xf32>
    %c0_20 = arith.constant 0 : index
    %c20 = arith.constant 20 : index
    %33 = vector.load %arg6[%c0_20, %c20] : memref<256x36xf32, #tpu.memory_space<vmem>>, vector<256x4xf32>
    tpu.vector_store %arg6[%c0_20, %c20], %32 {strides = array<i32>} : memref<256x36xf32, #tpu.memory_space<vmem>>, vector<256x4xf32>,
    %c3_i32 = arith.constant 3 : i32
    %34 = arith.addi %1, %c3_i32 : i32
    %c0_21 = arith.constant 0 : index
    %35 = arith.index_cast %34 : i32 to index
    %c1_22 = arith.constant 1 : index
    %c0_23 = arith.constant 0 : index
    %36 = vector.load %arg2[%c0_21, %35, %c1_22, %c0_23] : memref<1x20x20x8xf32, #tpu.memory_space<vmem>>, vector<1x16x16x4xf32>
    %37 = vector.shape_cast %36 : vector<1x16x16x4xf32> to vector<16x16x4xf32>
    %38 = vector.shape_cast %37 : vector<16x16x4xf32> to vector<256x4xf32>
    %c0_24 = arith.constant 0 : index
    %c24 = arith.constant 24 : index
    %39 = vector.load %arg6[%c0_24, %c24] : memref<256x36xf32, #tpu.memory_space<vmem>>, vector<256x4xf32>
    tpu.vector_store %arg6[%c0_24, %c24], %38 {strides = array<i32>} : memref<256x36xf32, #tpu.memory_space<vmem>>, vector<256x4xf32>,
    %c0_25 = arith.constant 0 : index
    %40 = arith.index_cast %34 : i32 to index
    %c2_26 = arith.constant 2 : index
    %c0_27 = arith.constant 0 : index
    %41 = vector.load %arg2[%c0_25, %40, %c2_26, %c0_27] : memref<1x20x20x8xf32, #tpu.memory_space<vmem>>, vector<1x16x16x4xf32>
    %42 = vector.shape_cast %41 : vector<1x16x16x4xf32> to vector<16x16x4xf32>
    %43 = vector.shape_cast %42 : vector<16x16x4xf32> to vector<256x4xf32>
    %c0_28 = arith.constant 0 : index
    %c28 = arith.constant 28 : index
    %44 = vector.load %arg6[%c0_28, %c28] : memref<256x36xf32, #tpu.memory_space<vmem>>, vector<256x4xf32>
    tpu.vector_store %arg6[%c0_28, %c28], %43 {strides = array<i32>} : memref<256x36xf32, #tpu.memory_space<vmem>>, vector<256x4xf32>,
    %c0_29 = arith.constant 0 : index
    %45 = arith.index_cast %34 : i32 to index
    %c3_30 = arith.constant 3 : index
    %c0_31 = arith.constant 0 : index
    %46 = vector.load %arg2[%c0_29, %45, %c3_30, %c0_31] : memref<1x20x20x8xf32, #tpu.memory_space<vmem>>, vector<1x16x16x4xf32>
    %47 = vector.shape_cast %46 : vector<1x16x16x4xf32> to vector<16x16x4xf32>
    %48 = vector.shape_cast %47 : vector<16x16x4xf32> to vector<256x4xf32>
    %c0_32 = arith.constant 0 : index
    %c32 = arith.constant 32 : index
    %49 = vector.load %arg6[%c0_32, %c32] : memref<256x36xf32, #tpu.memory_space<vmem>>, vector<256x4xf32>
    tpu.vector_store %arg6[%c0_32, %c32], %48 {strides = array<i32>} : memref<256x36xf32, #tpu.memory_space<vmem>>, vector<256x4xf32>,
    %c0_33 = arith.constant 0 : index
    %c0_34 = arith.constant 0 : index
    %50 = vector.load %arg6[%c0_33, %c0_34] : memref<256x36xf32, #tpu.memory_space<vmem>>, vector<256x36xf32>
    %c0_35 = arith.constant 0 : index
    %c0_36 = arith.constant 0 : index
    %c0_37 = arith.constant 0 : index
    %51 = vector.load %arg3[%c0_35, %c0_36, %c0_37] : memref<2x36x4xf32, #tpu.memory_space<vmem>>, vector<1x36x4xf32>
    %52 = vector.shape_cast %51 : vector<1x36x4xf32> to vector<36x4xf32>
    %cst = arith.constant dense<0.000000e+00> : vector<256x4xf32>
    %53 = tpu.matmul %50, %52, %cst {dimension_numbers = #tpu.dot_dimension_numbers<[1], [0], [0], [1], [0, 0, 1, 1], [], []>} : vector<256x36xf32>, vector<36x4xf32>, vector<256x4xf32> -> vector<256x4xf32>
    %c0_38 = arith.constant 0 : index
    %c0_39 = arith.constant 0 : index
    %54 = vector.load %arg4[%c0_38, %c0_39] : memref<2x4xf32, #tpu.memory_space<vmem>>, vector<1x4xf32>
    %55 = vector.broadcast %54 : vector<1x4xf32> to vector<256x4xf32>
    %56 = arith.addf %53, %55 : vector<256x4xf32>
    %57 = vector.shape_cast %56 : vector<256x4xf32> to vector<16x16x4xf32>
    %c0_40 = arith.constant 0 : index
    %c0_41 = arith.constant 0 : index
    %c0_42 = arith.constant 0 : index
    %c0_43 = arith.constant 0 : index
    %58 = vector.load %arg5[%c0_40, %c0_41, %c0_42, %c0_43] : memref<1x16x16x8xf32, #tpu.memory_space<vmem>>, vector<1x16x16x4xf32>
    %59 = vector.shape_cast %58 : vector<1x16x16x4xf32> to vector<16x16x4xf32>
    %60 = vector.shape_cast %57 : vector<16x16x4xf32> to vector<1x16x16x4xf32>
    tpu.vector_store %arg5[%c0_40, %c0_41, %c0_42, %c0_43], %60 {strides = array<i32>} : memref<1x16x16x8xf32, #tpu.memory_space<vmem>>, vector<1x16x16x4xf32>,
    %c0_i32 = arith.constant 0 : i32
    %61 = arith.addi %1, %c0_i32 : i32
    %c0_44 = arith.constant 0 : index
    %62 = arith.index_cast %61 : i32 to index
    %c0_45 = arith.constant 0 : index
    %c4_46 = arith.constant 4 : index
    %63 = vector.load %arg2[%c0_44, %62, %c0_45, %c4_46] : memref<1x20x20x8xf32, #tpu.memory_space<vmem>>, vector<1x16x16x4xf32>
    %64 = vector.shape_cast %63 : vector<1x16x16x4xf32> to vector<16x16x4xf32>
    %65 = vector.shape_cast %64 : vector<16x16x4xf32> to vector<256x4xf32>
    %c0_47 = arith.constant 0 : index
    %c0_48 = arith.constant 0 : index
    %66 = vector.load %arg6[%c0_47, %c0_48] : memref<256x36xf32, #tpu.memory_space<vmem>>, vector<256x4xf32>
    tpu.vector_store %arg6[%c0_47, %c0_48], %65 {strides = array<i32>} : memref<256x36xf32, #tpu.memory_space<vmem>>, vector<256x4xf32>,
    %c0_49 = arith.constant 0 : index
    %67 = arith.index_cast %61 : i32 to index
    %c2_50 = arith.constant 2 : index
    %c4_51 = arith.constant 4 : index
    %68 = vector.load %arg2[%c0_49, %67, %c2_50, %c4_51] : memref<1x20x20x8xf32, #tpu.memory_space<vmem>>, vector<1x16x16x4xf32>
    %69 = vector.shape_cast %68 : vector<1x16x16x4xf32> to vector<16x16x4xf32>
    %70 = vector.shape_cast %69 : vector<16x16x4xf32> to vector<256x4xf32>
    %c0_52 = arith.constant 0 : index
    %c4_53 = arith.constant 4 : index
    %71 = vector.load %arg6[%c0_52, %c4_53] : memref<256x36xf32, #tpu.memory_space<vmem>>, vector<256x4xf32>
    tpu.vector_store %arg6[%c0_52, %c4_53], %70 {strides = array<i32>} : memref<256x36xf32, #tpu.memory_space<vmem>>, vector<256x4xf32>,
    %c0_54 = arith.constant 0 : index
    %72 = arith.index_cast %61 : i32 to index
    %c4_55 = arith.constant 4 : index
    %c4_56 = arith.constant 4 : index
    %73 = vector.load %arg2[%c0_54, %72, %c4_55, %c4_56] : memref<1x20x20x8xf32, #tpu.memory_space<vmem>>, vector<1x16x16x4xf32>
    %74 = vector.shape_cast %73 : vector<1x16x16x4xf32> to vector<16x16x4xf32>
    %75 = vector.shape_cast %74 : vector<16x16x4xf32> to vector<256x4xf32>
    %c0_57 = arith.constant 0 : index
    %c8_58 = arith.constant 8 : index
    %76 = vector.load %arg6[%c0_57, %c8_58] : memref<256x36xf32, #tpu.memory_space<vmem>>, vector<256x4xf32>
    tpu.vector_store %arg6[%c0_57, %c8_58], %75 {strides = array<i32>} : memref<256x36xf32, #tpu.memory_space<vmem>>, vector<256x4xf32>,
    %c2_i32_59 = arith.constant 2 : i32
    %77 = arith.addi %1, %c2_i32_59 : i32
    %c0_60 = arith.constant 0 : index
    %78 = arith.index_cast %77 : i32 to index
    %c0_61 = arith.constant 0 : index
    %c4_62 = arith.constant 4 : index
    %79 = vector.load %arg2[%c0_60, %78, %c0_61, %c4_62] : memref<1x20x20x8xf32, #tpu.memory_space<vmem>>, vector<1x16x16x4xf32>
    %80 = vector.shape_cast %79 : vector<1x16x16x4xf32> to vector<16x16x4xf32>
    %81 = vector.shape_cast %80 : vector<16x16x4xf32> to vector<256x4xf32>
    %c0_63 = arith.constant 0 : index
    %c12_64 = arith.constant 12 : index
    %82 = vector.load %arg6[%c0_63, %c12_64] : memref<256x36xf32, #tpu.memory_space<vmem>>, vector<256x4xf32>
    tpu.vector_store %arg6[%c0_63, %c12_64], %81 {strides = array<i32>} : memref<256x36xf32, #tpu.memory_space<vmem>>, vector<256x4xf32>,
    %c0_65 = arith.constant 0 : index
    %83 = arith.index_cast %77 : i32 to index
    %c2_66 = arith.constant 2 : index
    %c4_67 = arith.constant 4 : index
    %84 = vector.load %arg2[%c0_65, %83, %c2_66, %c4_67] : memref<1x20x20x8xf32, #tpu.memory_space<vmem>>, vector<1x16x16x4xf32>
    %85 = vector.shape_cast %84 : vector<1x16x16x4xf32> to vector<16x16x4xf32>
    %86 = vector.shape_cast %85 : vector<16x16x4xf32> to vector<256x4xf32>
    %c0_68 = arith.constant 0 : index
    %c16_69 = arith.constant 16 : index
    %87 = vector.load %arg6[%c0_68, %c16_69] : memref<256x36xf32, #tpu.memory_space<vmem>>, vector<256x4xf32>
    tpu.vector_store %arg6[%c0_68, %c16_69], %86 {strides = array<i32>} : memref<256x36xf32, #tpu.memory_space<vmem>>, vector<256x4xf32>,
    %c0_70 = arith.constant 0 : index
    %88 = arith.index_cast %77 : i32 to index
    %c4_71 = arith.constant 4 : index
    %c4_72 = arith.constant 4 : index
    %89 = vector.load %arg2[%c0_70, %88, %c4_71, %c4_72] : memref<1x20x20x8xf32, #tpu.memory_space<vmem>>, vector<1x16x16x4xf32>
    %90 = vector.shape_cast %89 : vector<1x16x16x4xf32> to vector<16x16x4xf32>
    %91 = vector.shape_cast %90 : vector<16x16x4xf32> to vector<256x4xf32>
    %c0_73 = arith.constant 0 : index
    %c20_74 = arith.constant 20 : index
    %92 = vector.load %arg6[%c0_73, %c20_74] : memref<256x36xf32, #tpu.memory_space<vmem>>, vector<256x4xf32>
    tpu.vector_store %arg6[%c0_73, %c20_74], %91 {strides = array<i32>} : memref<256x36xf32, #tpu.memory_space<vmem>>, vector<256x4xf32>,
    %c4_i32 = arith.constant 4 : i32
    %93 = arith.addi %1, %c4_i32 : i32
    %c0_75 = arith.constant 0 : index
    %94 = arith.index_cast %93 : i32 to index
    %c0_76 = arith.constant 0 : index
    %c4_77 = arith.constant 4 : index
    %95 = vector.load %arg2[%c0_75, %94, %c0_76, %c4_77] : memref<1x20x20x8xf32, #tpu.memory_space<vmem>>, vector<1x16x16x4xf32>
    %96 = vector.shape_cast %95 : vector<1x16x16x4xf32> to vector<16x16x4xf32>
    %97 = vector.shape_cast %96 : vector<16x16x4xf32> to vector<256x4xf32>
    %c0_78 = arith.constant 0 : index
    %c24_79 = arith.constant 24 : index
    %98 = vector.load %arg6[%c0_78, %c24_79] : memref<256x36xf32, #tpu.memory_space<vmem>>, vector<256x4xf32>
    tpu.vector_store %arg6[%c0_78, %c24_79], %97 {strides = array<i32>} : memref<256x36xf32, #tpu.memory_space<vmem>>, vector<256x4xf32>,
    %c0_80 = arith.constant 0 : index
    %99 = arith.index_cast %93 : i32 to index
    %c2_81 = arith.constant 2 : index
    %c4_82 = arith.constant 4 : index
    %100 = vector.load %arg2[%c0_80, %99, %c2_81, %c4_82] : memref<1x20x20x8xf32, #tpu.memory_space<vmem>>, vector<1x16x16x4xf32>
    %101 = vector.shape_cast %100 : vector<1x16x16x4xf32> to vector<16x16x4xf32>
    %102 = vector.shape_cast %101 : vector<16x16x4xf32> to vector<256x4xf32>
    %c0_83 = arith.constant 0 : index
    %c28_84 = arith.constant 28 : index
    %103 = vector.load %arg6[%c0_83, %c28_84] : memref<256x36xf32, #tpu.memory_space<vmem>>, vector<256x4xf32>
    tpu.vector_store %arg6[%c0_83, %c28_84], %102 {strides = array<i32>} : memref<256x36xf32, #tpu.memory_space<vmem>>, vector<256x4xf32>,
    %c0_85 = arith.constant 0 : index
    %104 = arith.index_cast %93 : i32 to index
    %c4_86 = arith.constant 4 : index
    %c4_87 = arith.constant 4 : index
    %105 = vector.load %arg2[%c0_85, %104, %c4_86, %c4_87] : memref<1x20x20x8xf32, #tpu.memory_space<vmem>>, vector<1x16x16x4xf32>
    %106 = vector.shape_cast %105 : vector<1x16x16x4xf32> to vector<16x16x4xf32>
    %107 = vector.shape_cast %106 : vector<16x16x4xf32> to vector<256x4xf32>
    %c0_88 = arith.constant 0 : index
    %c32_89 = arith.constant 32 : index
    %108 = vector.load %arg6[%c0_88, %c32_89] : memref<256x36xf32, #tpu.memory_space<vmem>>, vector<256x4xf32>
    tpu.vector_store %arg6[%c0_88, %c32_89], %107 {strides = array<i32>} : memref<256x36xf32, #tpu.memory_space<vmem>>, vector<256x4xf32>,
    %c0_90 = arith.constant 0 : index
    %c0_91 = arith.constant 0 : index
    %109 = vector.load %arg6[%c0_90, %c0_91] : memref<256x36xf32, #tpu.memory_space<vmem>>, vector<256x36xf32>
    %c1_92 = arith.constant 1 : index
    %c0_93 = arith.constant 0 : index
    %c0_94 = arith.constant 0 : index
    %110 = vector.load %arg3[%c1_92, %c0_93, %c0_94] : memref<2x36x4xf32, #tpu.memory_space<vmem>>, vector<1x36x4xf32>
    %111 = vector.shape_cast %110 : vector<1x36x4xf32> to vector<36x4xf32>
    %cst_95 = arith.constant dense<0.000000e+00> : vector<256x4xf32>
    %112 = tpu.matmul %109, %111, %cst_95 {dimension_numbers = #tpu.dot_dimension_numbers<[1], [0], [0], [1], [0, 0, 1, 1], [], []>} : vector<256x36xf32>, vector<36x4xf32>, vector<256x4xf32> -> vector<256x4xf32>
    %c1_96 = arith.constant 1 : index
    %c0_97 = arith.constant 0 : index
    %113 = vector.load %arg4[%c1_96, %c0_97] : memref<2x4xf32, #tpu.memory_space<vmem>>, vector<1x4xf32>
    %114 = vector.broadcast %113 : vector<1x4xf32> to vector<256x4xf32>
    %115 = arith.addf %112, %114 : vector<256x4xf32>
    %116 = vector.shape_cast %115 : vector<256x4xf32> to vector<16x16x4xf32>
    %c0_98 = arith.constant 0 : index
    %c0_99 = arith.constant 0 : index
    %c0_100 = arith.constant 0 : index
    %c4_101 = arith.constant 4 : index
    %117 = vector.load %arg5[%c0_98, %c0_99, %c0_100, %c4_101] : memref<1x16x16x8xf32, #tpu.memory_space<vmem>>, vector<1x16x16x4xf32>
    %118 = vector.shape_cast %117 : vector<1x16x16x4xf32> to vector<16x16x4xf32>
    %119 = vector.shape_cast %116 : vector<16x16x4xf32> to vector<1x16x16x4xf32>
    tpu.vector_store %arg5[%c0_98, %c0_99, %c0_100, %c4_101], %119 {strides = array<i32>} : memref<1x16x16x8xf32, #tpu.memory_space<vmem>>, vector<1x16x16x4xf32>,
    return
  }
  func.func @transform_0(%arg0: i32, %arg1: i32) -> (i32, i32, i32, i32) {
    %c0_i32 = arith.constant 0 : i32
    %c0_i32_0 = arith.constant 0 : i32
    %c0_i32_1 = arith.constant 0 : i32
    %c0_i32_2 = arith.constant 0 : i32
    return %arg0, %c0_i32, %c0_i32_0, %c0_i32_1 : i32, i32, i32, i32
  }
  func.func @transform_1(%arg0: i32, %arg1: i32) -> (i32, i32, i32) {
    %c0_i32 = arith.constant 0 : i32
    %c0_i32_0 = arith.constant 0 : i32
    %c0_i32_1 = arith.constant 0 : i32
    %c0_i32_2 = arith.constant 0 : i32
    return %c0_i32, %c0_i32_0, %c0_i32_1 : i32, i32, i32
  }
  func.func @transform_2(%arg0: i32, %arg1: i32) -> (i32, i32) {
    %c0_i32 = arith.constant 0 : i32
    %c0_i32_0 = arith.constant 0 : i32
    %c0_i32_1 = arith.constant 0 : i32
    return %c0_i32, %c0_i32_0 : i32, i32
  }
  func.func @transform_3(%arg0: i32, %arg1: i32) -> (i32, i32, i32, i32) {
    %c0_i32 = arith.constant 0 : i32
    %c0_i32_0 = arith.constant 0 : i32
    %c0_i32_1 = arith.constant 0 : i32
    return %arg0, %arg1, %c0_i32, %c0_i32_0 : i32, i32, i32, i32
  }
}

</mosaic_0001>

<bundles_post_ra>
// kernel: dilated_conv_pallas.1
= control target key start
LH: loop header
LB: loop body
LE: loop exit
PB: predicated region body
PF: predicated region fallthrough
CT: control target
= control target key end

     0   :  { %s5309_s12 = smov 0   ;;  %s5311_s13 = smov 0   ;;  %s7818_s0 = inlined_call_operand.vmem [shape: f32[2,20,20,8], index: 0, kind: input, shape index: {}]   ;;  %s7819_s1 = inlined_call_operand.vmem [shape: f32[2,36,4], index: 1, kind: input, shape index: {}]   ;;  %s7820_s2 = inlined_call_operand.vmem [shape: f32[2,4], index: 2, kind: input, shape index: {}]   ;;  %s7821_s3 = inlined_call_operand.vmem [shape: f32[2,16,16,8], index: 3, kind: output, shape index: {}]  }
   0x1   :  { %s5313_s14 = smov 0  }
   0x2 LB: > { %s25_s15 = sadd.s32 1, %s5274_s13  ;;  %p4456_p0 = scmp.ge.s32.totalorder %s5278_s14, 1  ;;  %s5278_s14 = sphi %s5313_s14, %s13_s14   ;;  %s5274_s13 = sphi %s5311_s13, %s7913_s13   ;;  %s5270_s12 = sphi %s5309_s12, %s7912_s12  }
   0x3   : > { %p27_p1 = scmp.ge.s32.totalorder %s25_s15, 2  ;;  %p151_p2 = scmp.lt.s32.totalorder %s5278_s14, 3 }
   0x5   : > { %s7915_s15 = smov (%p27_p1, %s25_s15), 0  ;;  %p152_p3 = pnand %p4456_p0, %p151_p2 }
   0x7   : > { %155 = sbr.rel (%p152_p3) target bundleno = 1496 (0x5d8), region = 32 }
   0xe   : > { %p180_p4 = scmp.lt.s32.totalorder %s5270_s12, 1  ;;  %s5280_s20 = smov 4   ;;  %vm232_vm0 = vcmask 31744   ;;  %vm425_vm1 = vcmask 64544   ;;  %vm618_vm2 = vcmask 97344   ;;  %vm814_vm3 = vcmask 130144  }
   0xf   : > { %s5281_s21 = smov 8   ;;  %s5282_s22 = smov 12   ;;  %vm1007_vm4 = vcmask 162944   ;;  %vm1200_vm5 = vcmask 195744   ;;  %vm1396_vm6 = vcmask 228544   ;;  %vm1954_vm7 = vcmask 1043456  }
  0x10   : > { %s7917_s12 = smov (!%p180_p4, %s5270_s12), 1  ;;  %s5283_s23 = smov 16   ;;  %vm1589_vm8 = vcmask 261344   ;;  %vm1782_vm9 = vcmask 294144   ;;  %vm1857_vm10 = vcmask 293888  }
  0x11   : > { %s5222_s16 = smul.u32 480, %s7917_s12  ;;  %s5284_s24 = smov 20  }
  0x12   : > { %s5285_s25 = smov 24   ;;  %s5286_s26 = smov 28  }
  0x13   : > { %s5333_s19 = scalar_lea.vmem %s7818_s0, %s5222_s16  ;;  %s5287_s10 = smov 32  }
  0x14   : > { %v4492_v0 = vld [vmem:[%s5333_s19 + $0x1a] sm:$0xff]  ;;  %v5337_v1 = vld [vmem:[%s5333_s19 + $0x32] sm:$0xff]  ;;  %v4493_v2 = vld [vmem:[%s5333_s19 + $0x22] sm:$0xff]  ;;  %s5288_s11 = smov 124   ;;  %s5015_s7 = sshll.u32 %s7917_s12, 8 }
  0x15   : > { %329 = vrot.lane.b32.xlu0 %v4492_v0, %s5280_s20  ;;  %333 = vrot.lane.b32.xlu1 %v5337_v1, %s5280_s20  ;;  %v5344_v3 = vld [vmem:[%s5333_s19 + $0x3a] sm:$0xff]  ;;  %v5350_v4 = vld [vmem:[%s5333_s19 + $0x4a] sm:$0xff]  ;;  %s7140_s16 = scalar_lea.vmem %s7821_s3, %s5015_s7 }
  0x16   : > { %v5353_v5 = vld [vmem:[%s5333_s19 + $0x52] sm:$0xff]  ;;  %v5360_v6 = vld [vmem:[%s5333_s19 + $0x62] sm:$0xff]  ;;  %v5363_v7 = vld [vmem:[%s5333_s19 + $0x6a] sm:$0xff] }
  0x17   : > { %v5370_v8 = vld [vmem:[%s5333_s19 + $0x7a] sm:$0xff]  ;;  %v5373_v9 = vld [vmem:[%s5333_s19 + $0x82] sm:$0xff]  ;;  %v5380_v10 = vld [vmem:[%s5333_s19 + $0x92] sm:$0xff] }
  0x18   : > { %v5383_v11 = vld [vmem:[%s5333_s19 + $0x9a] sm:$0xff]  ;;  %v5391_v13 = vld [vmem:[%s5333_s19 + $0x31] sm:$0xff]  ;;  %v5408_v18 = vld [vmem:[%s5333_s19 + $0xc2] sm:$0xff] }
  0x19   : > { %331 = vrot.lane.b32.xlu0 %v4493_v2, %s5280_s20  ;;  %335 = vrot.lane.b32.xlu1 %v5344_v3, %s5280_s20  ;;  %v4460_v12 = vld [vmem:[%s5333_s19 + $0x19] sm:$0xff]  ;;  %v5394_v14 = vld [vmem:[%s5333_s19 + $0xaa] sm:$0xff]  ;;  %235 = vst.msk [vmem:[#allocation2 + $0x10] sm:$0xff] %vm232_vm0, %v5391_v13 }
  0x1a   : > { %v5397_v15 = vld [vmem:[%s5333_s19 + $0xb2] sm:$0xff]  ;;  %233 = vst.msk [vmem:[#allocation2] sm:$0xff] %vm232_vm0, %v4460_v12  ;;  %v4461_v16 = vld [vmem:[%s5333_s19 + $0x21] sm:$0xff]  ;;  %v5413_v19 = vld [vmem:[%s5333_s19 + $0x49] sm:$0xff] }
  0x1b   : > { %234 = vst.msk [vmem:[#allocation2 + $0x8] sm:$0xff] %vm232_vm0, %v4461_v16  ;;  %v5405_v17 = vld [vmem:[%s5333_s19 + $0x39] sm:$0xff]  ;;  %v5416_v20 = vld [vmem:[%s5333_s19 + $0x51] sm:$0xff]  ;;  %237 = vst.msk [vmem:[#allocation2 + $0x20] sm:$0xff] %vm232_vm0, %v5413_v19 }
  0x1c   : > { %236 = vst.msk [vmem:[#allocation2 + $0x18] sm:$0xff] %vm232_vm0, %v5405_v17  ;;  %v5423_v21 = vld [vmem:[%s5333_s19 + $0xca] sm:$0xff]  ;;  %238 = vst.msk [vmem:[#allocation2 + $0x28] sm:$0xff] %vm232_vm0, %v5416_v20  ;;  %v5430_v22 = vld [vmem:[%s5333_s19 + $0x61] sm:$0xff] }
  0x1d   : > { %337 = vrot.lane.b32.xlu0 %v5350_v4, %s5280_s20  ;;  %339 = vrot.lane.b32.xlu1 %v5353_v5, %s5280_s20  ;;  %239 = vst.msk [vmem:[#allocation2 + $0x30] sm:$0xff] %vm232_vm0, %v5430_v22  ;;  %v5435_v23 = vld [vmem:[%s5333_s19 + $0x69] sm:$0xff]  ;;  %v5438_v24 = vld [vmem:[%s5333_s19 + $0x79] sm:$0xff] }
  0x1e   : > { %v5441_v25 = vld [vmem:[%s5333_s19 + $0x81] sm:$0xff]  ;;  %240 = vst.msk [vmem:[#allocation2 + $0x38] sm:$0xff] %vm232_vm0, %v5435_v23  ;;  %241 = vst.msk [vmem:[#allocation2 + $0x40] sm:$0xff] %vm232_vm0, %v5438_v24  ;;  %v5450_v26 = vld [vmem:[%s5333_s19 + $0x91] sm:$0xff] }
  0x1f   : > { %242 = vst.msk [vmem:[#allocation2 + $0x48] sm:$0xff] %vm232_vm0, %v5441_v25  ;;  %v5453_v27 = vld [vmem:[%s5333_s19 + $0x99] sm:$0xff]  ;;  %v5456_v28 = vld [vmem:[%s5333_s19 + $0xa9] sm:$0xff]  ;;  %243 = vst.msk [vmem:[#allocation2 + $0x50] sm:$0xff] %vm232_vm0, %v5450_v26 }
  0x20   : > { %v5459_v29 = vld [vmem:[%s5333_s19 + $0xda] sm:$0xff]  ;;  %v5462_v30 = vld [vmem:[%s5333_s19 + $0xe2] sm:$0xff]  ;;  %244 = vst.msk [vmem:[#allocation2 + $0x58] sm:$0xff] %vm232_vm0, %v5453_v27  ;;  %245 = vst.msk [vmem:[#allocation2 + $0x60] sm:$0xff] %vm232_vm0, %v5456_v28 }
  0x21   : > { %341 = vrot.lane.b32.xlu0 %v5360_v6, %s5280_s20  ;;  %343 = vrot.lane.b32.xlu1 %v5363_v7, %s5280_s20  ;;  %v5471_v31 = vld [vmem:[%s5333_s19 + $0xb1] sm:$0xff]  ;;  %v5474_v32 = vld [vmem:[%s5333_s19 + $0xc1] sm:$0xff] }
  0x22   : > { %v5477_v33 = vld [vmem:[%s5333_s19 + $0xc9] sm:$0xff]  ;;  %246 = vst.msk [vmem:[#allocation2 + $0x68] sm:$0xff] %vm232_vm0, %v5471_v31  ;;  %247 = vst.msk [vmem:[#allocation2 + $0x70] sm:$0xff] %vm232_vm0, %v5474_v32  ;;  %v5490_v34 = vld [vmem:[%s5333_s19 + $0xd9] sm:$0xff] }
  0x23   : > { %248 = vst.msk [vmem:[#allocation2 + $0x78] sm:$0xff] %vm232_vm0, %v5477_v33  ;;  %v5493_v35 = vld [vmem:[%s5333_s19 + $0xe1] sm:$0xff]  ;;  %249 = vst.msk [vmem:[#allocation2 + $0x80] sm:$0xff] %vm232_vm0, %v5490_v34  ;;  %v5500_v36 = vld [vmem:[%s5333_s19 + $0xf1] sm:$0xff] }
  0x24   : > { %250 = vst.msk [vmem:[#allocation2 + $0x88] sm:$0xff] %vm232_vm0, %v5493_v35  ;;  %v5503_v37 = vld [vmem:[%s5333_s19 + $0xf9] sm:$0xff]  ;;  %v5506_v38 = vld [vmem:[%s5333_s19 + $0x109] sm:$0xff]  ;;  %251 = vst.msk [vmem:[#allocation2 + $0x90] sm:$0xff] %vm232_vm0, %v5500_v36 }
  0x25   : > { %345 = vrot.lane.b32.xlu0 %v5370_v8, %s5280_s20  ;;  %347 = vrot.lane.b32.xlu1 %v5373_v9, %s5280_s20  ;;  %252 = vst.msk [vmem:[#allocation2 + $0x98] sm:$0xff] %vm232_vm0, %v5503_v37  ;;  %253 = vst.msk [vmem:[#allocation2 + $0xa0] sm:$0xff] %vm232_vm0, %v5506_v38  ;;  %v5515_v39 = vld [vmem:[%s5333_s19 + $0x111] sm:$0xff]  ;;  %v5518_v40 = vld [vmem:[%s5333_s19 + $0x121] sm:$0xff] }
  0x26   : > { %v5521_v41 = vld [vmem:[%s5333_s19 + $0x129] sm:$0xff]  ;;  %254 = vst.msk [vmem:[#allocation2 + $0xa8] sm:$0xff] %vm232_vm0, %v5515_v39  ;;  %255 = vst.msk [vmem:[#allocation2 + $0xb0] sm:$0xff] %vm232_vm0, %v5518_v40  ;;  %v5534_v42 = vld [vmem:[%s5333_s19 + $0xf2] sm:$0xff] }
  0x27   : > { %256 = vst.msk [vmem:[#allocation2 + $0xb8] sm:$0xff] %vm232_vm0, %v5521_v41  ;;  %v5537_v43 = vld [vmem:[%s5333_s19 + $0xfa] sm:$0xff]  ;;  %v5554_v46 = vld [vmem:[%s5333_s19 + $0x10a] sm:$0xff]  ;;  %v5557_v47 = vld [vmem:[%s5333_s19 + $0x112] sm:$0xff] }
  0x28   : > { %v5540_v44 = vld [vmem:[%s5333_s19 + $0x139] sm:$0xff]  ;;  %v5545_v45 = vld [vmem:[%s5333_s19 + $0x141] sm:$0xff]  ;;  %v5560_v48 = vld [vmem:[%s5333_s19 + $0x151] sm:$0xff] }
  0x29   : > { %349 = vrot.lane.b32.xlu0 %v5380_v10, %s5280_s20  ;;  %351 = vrot.lane.b32.xlu1 %v5383_v11, %s5280_s20  ;;  %257 = vst.msk [vmem:[#allocation2 + $0xc0] sm:$0xff] %vm232_vm0, %v5540_v44  ;;  %258 = vst.msk [vmem:[#allocation2 + $0xc8] sm:$0xff] %vm232_vm0, %v5545_v45  ;;  %v5565_v49 = vld [vmem:[%s5333_s19 + $0x159] sm:$0xff]  ;;  %v5574_v50 = vld [vmem:[%s5333_s19 + $0x122] sm:$0xff] }
  0x2a   : > { %259 = vst.msk [vmem:[#allocation2 + $0xd0] sm:$0xff] %vm232_vm0, %v5560_v48  ;;  %260 = vst.msk [vmem:[#allocation2 + $0xd8] sm:$0xff] %vm232_vm0, %v5565_v49  ;;  %v5577_v51 = vld [vmem:[%s5333_s19 + $0x12a] sm:$0xff]  ;;  %v5594_v54 = vld [vmem:[%s5333_s19 + $0x13a] sm:$0xff] }
  0x2b   : > { %v5580_v52 = vld [vmem:[%s5333_s19 + $0x169] sm:$0xff]  ;;  %v5585_v53 = vld [vmem:[%s5333_s19 + $0x171] sm:$0xff]  ;;  %v5600_v56 = vld [vmem:[%s5333_s19 + $0x181] sm:$0xff] }
  0x2c   : > { %261 = vst.msk [vmem:[#allocation2 + $0xe0] sm:$0xff] %vm232_vm0, %v5580_v52  ;;  %262 = vst.msk [vmem:[#allocation2 + $0xe8] sm:$0xff] %vm232_vm0, %v5585_v53  ;;  %v5597_v55 = vld [vmem:[%s5333_s19 + $0x142] sm:$0xff]  ;;  %v5614_v58 = vld [vmem:[%s5333_s19 + $0x152] sm:$0xff] }
  0x2d   : > { %353 = vrot.lane.b32.xlu0 %v5394_v14, %s5280_s20  ;;  %355 = vrot.lane.b32.xlu1 %v5397_v15, %s5280_s20  ;;  %263 = vst.msk [vmem:[#allocation2 + $0xf0] sm:$0xff] %vm232_vm0, %v5600_v56  ;;  %v5605_v57 = vld [vmem:[%s5333_s19 + $0x189] sm:$0xff]  ;;  %v5617_v59 = vld [vmem:[%s5333_s19 + $0x15a] sm:$0xff] }
  0x2e   : > { %264 = vst.msk [vmem:[#allocation2 + $0xf8] sm:$0xff] %vm232_vm0, %v5605_v57  ;;  %v5624_v60 = vld [vmem:[%s5333_s19 + $0x16a] sm:$0xff]  ;;  %v5627_v61 = vld [vmem:[%s5333_s19 + $0x172] sm:$0xff]  ;;  %v5634_v62 = vld [vmem:[%s5333_s19 + $0x182] sm:$0xff] }
  0x2f   : > { %7852 = vst [vmem:[#allocation3_spill] sm:$0xff] %v5624_v60  ;;  %7853 = vst [vmem:[#allocation4_spill] sm:$0xff] %v5627_v61  ;;  %v5637_v63 = vld [vmem:[%s5333_s19 + $0x18a] sm:$0xff]  ;;  %v4524_v0 = vld [vmem:[%s5333_s19 + $0x1b] sm:$0xff] }
  0x30   : > { %7854 = vst [vmem:[#allocation5_spill] sm:$0xff] %v5634_v62  ;;  %7855 = vst [vmem:[#allocation6_spill] sm:$0xff] %v5637_v63  ;;  %v4525_v2 = vld [vmem:[%s5333_s19 + $0x23] sm:$0xff]  ;;  %v5648_v12 = vld [vmem:[%s5333_s19 + $0x33] sm:$0xff] }
  0x31   : > { %357 = vrot.lane.b32.xlu0 %v5408_v18, %s5280_s20  ;;  %359 = vrot.lane.b32.xlu1 %v5423_v21, %s5280_s20  ;;  %7856 = vst [vmem:[#allocation7_spill] sm:$0xff] %v5648_v12  ;;  %v5651_v16 = vld [vmem:[%s5333_s19 + $0x3b] sm:$0xff] }
  0x32   : > { %7857 = vst [vmem:[#allocation8_spill] sm:$0xff] %v5651_v16 }
  0x35   : > { %361 = vrot.lane.b32.xlu0 %v5459_v29, %s5280_s20  ;;  %363 = vrot.lane.b32.xlu1 %v5462_v30, %s5280_s20 }
  0x39   : > { %365 = vrot.lane.b32.xlu0 %v5534_v42, %s5280_s20  ;;  %367 = vrot.lane.b32.xlu1 %v5537_v43, %s5280_s20 }
  0x3d   : > { %369 = vrot.lane.b32.xlu0 %v5554_v46, %s5280_s20  ;;  %371 = vrot.lane.b32.xlu1 %v5557_v47, %s5280_s20 }
  0x41   : > { %373 = vrot.lane.b32.xlu0 %v5574_v50, %s5280_s20  ;;  %375 = vrot.lane.b32.xlu1 %v5577_v51, %s5280_s20 }
  0x45   : > { %377 = vrot.lane.b32.xlu0 %v5594_v54, %s5280_s20  ;;  %379 = vrot.lane.b32.xlu1 %v5597_v55, %s5280_s20 }
  0x49   : > { %381 = vrot.lane.b32.xlu0 %v5614_v58, %s5280_s20  ;;  %383 = vrot.lane.b32.xlu1 %v5617_v59, %s5280_s20 }
  0x4d   : > { %385 = vrot.lane.b32.xlu0 %v5624_v60, %s5280_s20  ;;  %387 = vrot.lane.b32.xlu1 %v5627_v61, %s5280_s20 }
  0x51   : > { %389 = vrot.lane.b32.xlu0 %v5634_v62, %s5280_s20  ;;  %391 = vrot.lane.b32.xlu1 %v5637_v63, %s5280_s20  ;;  %v5658_v63 = vld [vmem:[%s5333_s19 + $0x4b] sm:$0xff]  ;;  %v5661_v62 = vld [vmem:[%s5333_s19 + $0x53] sm:$0xff] }
  0x52   : > { %7858 = vst [vmem:[#allocation9_spill] sm:$0xff] %v5658_v63  ;;  %7859 = vst [vmem:[#allocation10_spill] sm:$0xff] %v5661_v62 }
  0x55   : > { %522 = vrot.lane.b32.xlu0 %v4524_v0, %s5281_s21  ;;  %524 = vrot.lane.b32.xlu1 %v4525_v2, %s5281_s21  ;;  %v5668_v0 = vld [vmem:[%s5333_s19 + $0x63] sm:$0xff]  ;;  %v5671_v2 = vld [vmem:[%s5333_s19 + $0x6b] sm:$0xff] }
  0x56   : > { %7860 = vst [vmem:[#allocation11_spill] sm:$0xff] %v5668_v0  ;;  %7861 = vst [vmem:[#allocation12_spill] sm:$0xff] %v5671_v2 }
  0x59   : > { %526 = vrot.lane.b32.xlu0 %v5648_v12, %s5281_s21  ;;  %528 = vrot.lane.b32.xlu1 %v5651_v16, %s5281_s21  ;;  %v5678_v16 = vld [vmem:[%s5333_s19 + $0x7b] sm:$0xff]  ;;  %v5681_v12 = vld [vmem:[%s5333_s19 + $0x83] sm:$0xff] }
  0x5a   : > { %7862 = vst [vmem:[#allocation13_spill] sm:$0xff] %v5678_v16  ;;  %7863 = vst [vmem:[#allocation14_spill] sm:$0xff] %v5681_v12 }
  0x5d   : > { %530 = vrot.lane.b32.xlu0 %v5658_v63, %s5281_s21  ;;  %532 = vrot.lane.b32.xlu1 %v5661_v62, %s5281_s21  ;;  %v5688_v62 = vld [vmem:[%s5333_s19 + $0x93] sm:$0xff]  ;;  %v5691_v63 = vld [vmem:[%s5333_s19 + $0x9b] sm:$0xff] }
  0x5e   : > { %7864 = vst [vmem:[#allocation15_spill] sm:$0xff] %v5688_v62  ;;  %7865 = vst [vmem:[#allocation16_spill] sm:$0xff] %v5691_v63 }
  0x61   : > { %534 = vrot.lane.b32.xlu0 %v5668_v0, %s5281_s21  ;;  %536 = vrot.lane.b32.xlu1 %v5671_v2, %s5281_s21  ;;  %v5698_v2 = vld [vmem:[%s5333_s19 + $0xab] sm:$0xff]  ;;  %v5701_v0 = vld [vmem:[%s5333_s19 + $0xb3] sm:$0xff] }
  0x62   : > { %7866 = vst [vmem:[#allocation17_spill] sm:$0xff] %v5698_v2  ;;  %7867 = vst [vmem:[#allocation18_spill] sm:$0xff] %v5701_v0 }
  0x65   : > { %538 = vrot.lane.b32.xlu0 %v5678_v16, %s5281_s21  ;;  %540 = vrot.lane.b32.xlu1 %v5681_v12, %s5281_s21  ;;  %v5708_v12 = vld [vmem:[%s5333_s19 + $0xc3] sm:$0xff]  ;;  %v5711_v16 = vld [vmem:[%s5333_s19 + $0xcb] sm:$0xff] }
  0x66   : > { %7868 = vst [vmem:[#allocation19_spill] sm:$0xff] %v5708_v12  ;;  %7869 = vst [vmem:[#allocation20_spill] sm:$0xff] %v5711_v16 }
  0x69   : > { %542 = vrot.lane.b32.xlu0 %v5688_v62, %s5281_s21  ;;  %544 = vrot.lane.b32.xlu1 %v5691_v63, %s5281_s21  ;;  %v5718_v63 = vld [vmem:[%s5333_s19 + $0xdb] sm:$0xff]  ;;  %v5721_v62 = vld [vmem:[%s5333_s19 + $0xe3] sm:$0xff] }
  0x6a   : > { %7870 = vst [vmem:[#allocation21_spill] sm:$0xff] %v5718_v63  ;;  %7871 = vst [vmem:[#allocation22_spill] sm:$0xff] %v5721_v62 }
  0x6d   : > { %546 = vrot.lane.b32.xlu0 %v5698_v2, %s5281_s21  ;;  %548 = vrot.lane.b32.xlu1 %v5701_v0, %s5281_s21  ;;  %v5728_v0 = vld [vmem:[%s5333_s19 + $0xf3] sm:$0xff]  ;;  %v5731_v2 = vld [vmem:[%s5333_s19 + $0xfb] sm:$0xff] }
  0x6e   : > { %7872 = vst [vmem:[#allocation23_spill] sm:$0xff] %v5728_v0  ;;  %7873 = vst [vmem:[#allocation24_spill] sm:$0xff] %v5731_v2 }
  0x71   : > { %550 = vrot.lane.b32.xlu0 %v5708_v12, %s5281_s21  ;;  %552 = vrot.lane.b32.xlu1 %v5711_v16, %s5281_s21  ;;  %v5738_v16 = vld [vmem:[%s5333_s19 + $0x10b] sm:$0xff]  ;;  %v5741_v12 = vld [vmem:[%s5333_s19 + $0x113] sm:$0xff] }
  0x72   : > { %7874 = vst [vmem:[#allocation25_spill] sm:$0xff] %v5738_v16  ;;  %7875 = vst [vmem:[#allocation26_spill] sm:$0xff] %v5741_v12 }
  0x75   : > { %554 = vrot.lane.b32.xlu0 %v5718_v63, %s5281_s21  ;;  %556 = vrot.lane.b32.xlu1 %v5721_v62, %s5281_s21  ;;  %v5748_v62 = vld [vmem:[%s5333_s19 + $0x123] sm:$0xff]  ;;  %v5751_v63 = vld [vmem:[%s5333_s19 + $0x12b] sm:$0xff] }
  0x76   : > { %7876 = vst [vmem:[#allocation27_spill] sm:$0xff] %v5748_v62  ;;  %7877 = vst [vmem:[#allocation28_spill] sm:$0xff] %v5751_v63 }
  0x79   : > { %558 = vrot.lane.b32.xlu0 %v5728_v0, %s5281_s21  ;;  %560 = vrot.lane.b32.xlu1 %v5731_v2, %s5281_s21  ;;  %v5758_v2 = vld [vmem:[%s5333_s19 + $0x13b] sm:$0xff]  ;;  %v5761_v0 = vld [vmem:[%s5333_s19 + $0x143] sm:$0xff] }
  0x7a   : > { %7878 = vst [vmem:[#allocation29_spill] sm:$0xff] %v5758_v2  ;;  %7879 = vst [vmem:[#allocation30_spill] sm:$0xff] %v5761_v0 }
  0x7d   : > { %562 = vrot.lane.b32.xlu0 %v5738_v16, %s5281_s21  ;;  %564 = vrot.lane.b32.xlu1 %v5741_v12, %s5281_s21  ;;  %v5768_v12 = vld [vmem:[%s5333_s19 + $0x153] sm:$0xff]  ;;  %v5771_v16 = vld [vmem:[%s5333_s19 + $0x15b] sm:$0xff] }
  0x7e   : > { %7880 = vst [vmem:[#allocation31_spill] sm:$0xff] %v5768_v12  ;;  %7881 = vst [vmem:[#allocation32_spill] sm:$0xff] %v5771_v16 }
  0x81   : > { %566 = vrot.lane.b32.xlu0 %v5748_v62, %s5281_s21  ;;  %568 = vrot.lane.b32.xlu1 %v5751_v63, %s5281_s21 }
  0x85   : > { %570 = vrot.lane.b32.xlu0 %v5758_v2, %s5281_s21  ;;  %572 = vrot.lane.b32.xlu1 %v5761_v0, %s5281_s21  ;;  %v5780_v0 = vld [vmem:[%s5333_s19 + $0x16b] sm:$0xff]  ;;  %v5783_v2 = vld [vmem:[%s5333_s19 + $0x173] sm:$0xff] }
  0x87   : > { %v330_v62 = vpop.permute.xlu0 %329  ;;  %v334_v61 = vpop.permute.xlu1 %333 }
  0x88   : > { %426 = vst.msk [vmem:[#allocation2] sm:$0xff] %vm425_vm1, %v330_v62  ;;  %428 = vst.msk [vmem:[#allocation2 + $0x10] sm:$0xff] %vm425_vm1, %v334_v61  ;;  %v5792_v61 = vld [vmem:[%s5333_s19 + $0x183] sm:$0xff]  ;;  %v5795_v62 = vld [vmem:[%s5333_s19 + $0x18b] sm:$0xff] }
  0x89   : > { %574 = vrot.lane.b32.xlu0 %v5768_v12, %s5281_s21  ;;  %576 = vrot.lane.b32.xlu1 %v5771_v16, %s5281_s21 }
  0x8b   : > { %v332_v63 = vpop.permute.xlu0 %331  ;;  %v336_v60 = vpop.permute.xlu1 %335 }
  0x8c   : > { %427 = vst.msk [vmem:[#allocation2 + $0x8] sm:$0xff] %vm425_vm1, %v332_v63  ;;  %429 = vst.msk [vmem:[#allocation2 + $0x18] sm:$0xff] %vm425_vm1, %v336_v60 }
  0x8d   : > { %578 = vrot.lane.b32.xlu0 %v5780_v0, %s5281_s21  ;;  %580 = vrot.lane.b32.xlu1 %v5783_v2, %s5281_s21 }
  0x8f   : > { %v338_v16 = vpop.permute.xlu0 %337  ;;  %v340_v12 = vpop.permute.xlu1 %339 }
  0x90   : > { %430 = vst.msk [vmem:[#allocation2 + $0x20] sm:$0xff] %vm425_vm1, %v338_v16  ;;  %431 = vst.msk [vmem:[#allocation2 + $0x28] sm:$0xff] %vm425_vm1, %v340_v12 }
  0x91   : > { %582 = vrot.lane.b32.xlu0 %v5792_v61, %s5281_s21  ;;  %584 = vrot.lane.b32.xlu1 %v5795_v62, %s5281_s21 }
  0x93   : > { %v342_v60 = vpop.permute.xlu0 %341  ;;  %v344_v63 = vpop.permute.xlu1 %343 }
  0x94   : > { %432 = vst.msk [vmem:[#allocation2 + $0x30] sm:$0xff] %vm425_vm1, %v342_v60  ;;  %433 = vst.msk [vmem:[#allocation2 + $0x38] sm:$0xff] %vm425_vm1, %v344_v63 }
  0x95   : > { %718 = vrot.lane.b32.xlu0 %v5391_v13, %s5282_s22  ;;  %720 = vrot.lane.b32.xlu1 %v5405_v17, %s5282_s22 }
  0x97   : > { %v346_v12 = vpop.permute.xlu0 %345  ;;  %v348_v16 = vpop.permute.xlu1 %347 }
  0x98   : > { %434 = vst.msk [vmem:[#allocation2 + $0x40] sm:$0xff] %vm425_vm1, %v346_v12  ;;  %435 = vst.msk [vmem:[#allocation2 + $0x48] sm:$0xff] %vm425_vm1, %v348_v16 }
  0x99   : > { %722 = vrot.lane.b32.xlu0 %v5413_v19, %s5282_s22  ;;  %724 = vrot.lane.b32.xlu1 %v5416_v20, %s5282_s22 }
  0x9b   : > { %v350_v60 = vpop.permute.xlu0 %349  ;;  %v352_v63 = vpop.permute.xlu1 %351 }
  0x9c   : > { %436 = vst.msk [vmem:[#allocation2 + $0x50] sm:$0xff] %vm425_vm1, %v350_v60  ;;  %437 = vst.msk [vmem:[#allocation2 + $0x58] sm:$0xff] %vm425_vm1, %v352_v63 }
  0x9d   : > { %726 = vrot.lane.b32.xlu0 %v5430_v22, %s5282_s22  ;;  %728 = vrot.lane.b32.xlu1 %v5435_v23, %s5282_s22 }
  0x9f   : > { %v354_v13 = vpop.permute.xlu0 %353  ;;  %v356_v17 = vpop.permute.xlu1 %355 }
  0xa0   : > { %438 = vst.msk [vmem:[#allocation2 + $0x60] sm:$0xff] %vm425_vm1, %v354_v13  ;;  %439 = vst.msk [vmem:[#allocation2 + $0x68] sm:$0xff] %vm425_vm1, %v356_v17 }
  0xa1   : > { %730 = vrot.lane.b32.xlu0 %v5438_v24, %s5282_s22  ;;  %732 = vrot.lane.b32.xlu1 %v5441_v25, %s5282_s22 }
  0xa3   : > { %v358_v12 = vpop.permute.xlu0 %357  ;;  %v360_v16 = vpop.permute.xlu1 %359 }
  0xa4   : > { %440 = vst.msk [vmem:[#allocation2 + $0x70] sm:$0xff] %vm425_vm1, %v358_v12  ;;  %441 = vst.msk [vmem:[#allocation2 + $0x78] sm:$0xff] %vm425_vm1, %v360_v16 }
  0xa5   : > { %734 = vrot.lane.b32.xlu0 %v5450_v26, %s5282_s22  ;;  %736 = vrot.lane.b32.xlu1 %v5453_v27, %s5282_s22 }
  0xa7   : > { %v362_v60 = vpop.permute.xlu0 %361  ;;  %v364_v63 = vpop.permute.xlu1 %363 }
  0xa8   : > { %442 = vst.msk [vmem:[#allocation2 + $0x80] sm:$0xff] %vm425_vm1, %v362_v60  ;;  %443 = vst.msk [vmem:[#allocation2 + $0x88] sm:$0xff] %vm425_vm1, %v364_v63 }
  0xa9   : > { %738 = vrot.lane.b32.xlu0 %v5456_v28, %s5282_s22  ;;  %740 = vrot.lane.b32.xlu1 %v5471_v31, %s5282_s22 }
  0xab   : > { %v366_v13 = vpop.permute.xlu0 %365  ;;  %v368_v17 = vpop.permute.xlu1 %367 }
  0xac   : > { %444 = vst.msk [vmem:[#allocation2 + $0x90] sm:$0xff] %vm425_vm1, %v366_v13  ;;  %445 = vst.msk [vmem:[#allocation2 + $0x98] sm:$0xff] %vm425_vm1, %v368_v17 }
  0xad   : > { %742 = vrot.lane.b32.xlu0 %v5474_v32, %s5282_s22  ;;  %744 = vrot.lane.b32.xlu1 %v5477_v33, %s5282_s22 }
  0xaf   : > { %v370_v12 = vpop.permute.xlu0 %369  ;;  %v372_v16 = vpop.permute.xlu1 %371 }
  0xb0   : > { %446 = vst.msk [vmem:[#allocation2 + $0xa0] sm:$0xff] %vm425_vm1, %v370_v12  ;;  %447 = vst.msk [vmem:[#allocation2 + $0xa8] sm:$0xff] %vm425_vm1, %v372_v16 }
  0xb1   : > { %746 = vrot.lane.b32.xlu0 %v5490_v34, %s5282_s22  ;;  %748 = vrot.lane.b32.xlu1 %v5493_v35, %s5282_s22 }
  0xb3   : > { %v374_v60 = vpop.permute.xlu0 %373  ;;  %v376_v63 = vpop.permute.xlu1 %375 }
  0xb4   : > { %448 = vst.msk [vmem:[#allocation2 + $0xb0] sm:$0xff] %vm425_vm1, %v374_v60  ;;  %449 = vst.msk [vmem:[#allocation2 + $0xb8] sm:$0xff] %vm425_vm1, %v376_v63 }
  0xb5   : > { %750 = vrot.lane.b32.xlu0 %v5500_v36, %s5282_s22  ;;  %752 = vrot.lane.b32.xlu1 %v5503_v37, %s5282_s22 }
  0xb7   : > { %v378_v13 = vpop.permute.xlu0 %377  ;;  %v380_v17 = vpop.permute.xlu1 %379 }
  0xb8   : > { %450 = vst.msk [vmem:[#allocation2 + $0xc0] sm:$0xff] %vm425_vm1, %v378_v13  ;;  %451 = vst.msk [vmem:[#allocation2 + $0xc8] sm:$0xff] %vm425_vm1, %v380_v17 }
  0xb9   : > { %754 = vrot.lane.b32.xlu0 %v5506_v38, %s5282_s22  ;;  %756 = vrot.lane.b32.xlu1 %v5515_v39, %s5282_s22 }
  0xbb   : > { %v382_v12 = vpop.permute.xlu0 %381  ;;  %v384_v16 = vpop.permute.xlu1 %383 }
  0xbc   : > { %452 = vst.msk [vmem:[#allocation2 + $0xd0] sm:$0xff] %vm425_vm1, %v382_v12  ;;  %453 = vst.msk [vmem:[#allocation2 + $0xd8] sm:$0xff] %vm425_vm1, %v384_v16 }
  0xbd   : > { %758 = vrot.lane.b32.xlu0 %v5518_v40, %s5282_s22  ;;  %760 = vrot.lane.b32.xlu1 %v5521_v41, %s5282_s22 }
  0xbf   : > { %v386_v60 = vpop.permute.xlu0 %385  ;;  %v388_v63 = vpop.permute.xlu1 %387 }
  0xc0   : > { %454 = vst.msk [vmem:[#allocation2 + $0xe0] sm:$0xff] %vm425_vm1, %v386_v60  ;;  %455 = vst.msk [vmem:[#allocation2 + $0xe8] sm:$0xff] %vm425_vm1, %v388_v63 }
  0xc1   : > { %762 = vrot.lane.b32.xlu0 %v5540_v44, %s5282_s22  ;;  %764 = vrot.lane.b32.xlu1 %v5545_v45, %s5282_s22 }
  0xc3   : > { %v390_v13 = vpop.permute.xlu0 %389  ;;  %v392_v17 = vpop.permute.xlu1 %391 }
  0xc4   : > { %456 = vst.msk [vmem:[#allocation2 + $0xf0] sm:$0xff] %vm425_vm1, %v390_v13  ;;  %457 = vst.msk [vmem:[#allocation2 + $0xf8] sm:$0xff] %vm425_vm1, %v392_v17  ;;  %v5894_v13 = vld [vmem:[%s5333_s19 + $0x199] sm:$0xff]  ;;  %v5897_v17 = vld [vmem:[%s5333_s19 + $0x1a1] sm:$0xff] }
  0xc5   : > { %766 = vrot.lane.b32.xlu0 %v5560_v48, %s5282_s22  ;;  %768 = vrot.lane.b32.xlu1 %v5565_v49, %s5282_s22 }
  0xc7   : > { %v523_v12 = vpop.permute.xlu0 %522  ;;  %v525_v16 = vpop.permute.xlu1 %524 }
  0xc8   : > { %619 = vst.msk [vmem:[#allocation2] sm:$0xff] %vm618_vm2, %v523_v12  ;;  %620 = vst.msk [vmem:[#allocation2 + $0x8] sm:$0xff] %vm618_vm2, %v525_v16 }
  0xc9   : > { %770 = vrot.lane.b32.xlu0 %v5580_v52, %s5282_s22  ;;  %772 = vrot.lane.b32.xlu1 %v5585_v53, %s5282_s22 }
  0xcb   : > { %v527_v60 = vpop.permute.xlu0 %526  ;;  %v529_v63 = vpop.permute.xlu1 %528 }
  0xcc   : > { %621 = vst.msk [vmem:[#allocation2 + $0x10] sm:$0xff] %vm618_vm2, %v527_v60  ;;  %622 = vst.msk [vmem:[#allocation2 + $0x18] sm:$0xff] %vm618_vm2, %v529_v63 }
  0xcd   : > { %774 = vrot.lane.b32.xlu0 %v5600_v56, %s5282_s22  ;;  %776 = vrot.lane.b32.xlu1 %v5605_v57, %s5282_s22 }
  0xcf   : > { %v531_v12 = vpop.permute.xlu0 %530  ;;  %v533_v16 = vpop.permute.xlu1 %532 }
  0xd0   : > { %623 = vst.msk [vmem:[#allocation2 + $0x20] sm:$0xff] %vm618_vm2, %v531_v12  ;;  %624 = vst.msk [vmem:[#allocation2 + $0x28] sm:$0xff] %vm618_vm2, %v533_v16 }
  0xd1   : > { %778 = vrot.lane.b32.xlu0 %v5894_v13, %s5282_s22  ;;  %780 = vrot.lane.b32.xlu1 %v5897_v17, %s5282_s22 }
  0xd3   : > { %v535_v60 = vpop.permute.xlu0 %534  ;;  %v537_v63 = vpop.permute.xlu1 %536 }
  0xd4   : > { %625 = vst.msk [vmem:[#allocation2 + $0x30] sm:$0xff] %vm618_vm2, %v535_v60  ;;  %626 = vst.msk [vmem:[#allocation2 + $0x38] sm:$0xff] %vm618_vm2, %v537_v63 }
  0xd5   : > { %911 = vrot.lane.b32.xlu0 %v5337_v1, %s5283_s23  ;;  %913 = vrot.lane.b32.xlu1 %v5344_v3, %s5283_s23 }
  0xd7   : > { %v539_v12 = vpop.permute.xlu0 %538  ;;  %v541_v16 = vpop.permute.xlu1 %540 }
  0xd8   : > { %627 = vst.msk [vmem:[#allocation2 + $0x40] sm:$0xff] %vm618_vm2, %v539_v12  ;;  %628 = vst.msk [vmem:[#allocation2 + $0x48] sm:$0xff] %vm618_vm2, %v541_v16 }
  0xd9   : > { %915 = vrot.lane.b32.xlu0 %v5350_v4, %s5283_s23  ;;  %917 = vrot.lane.b32.xlu1 %v5353_v5, %s5283_s23 }
  0xdb   : > { %v543_v60 = vpop.permute.xlu0 %542  ;;  %v545_v63 = vpop.permute.xlu1 %544 }
  0xdc   : > { %629 = vst.msk [vmem:[#allocation2 + $0x50] sm:$0xff] %vm618_vm2, %v543_v60  ;;  %630 = vst.msk [vmem:[#allocation2 + $0x58] sm:$0xff] %vm618_vm2, %v545_v63  ;;  %v5996_v60 = vld [vmem:[%s5333_s19 + $0x19a] sm:$0xff]  ;;  %v5999_v63 = vld [vmem:[%s5333_s19 + $0x1a2] sm:$0xff] }
  0xdd   : > { %919 = vrot.lane.b32.xlu0 %v5360_v6, %s5283_s23  ;;  %921 = vrot.lane.b32.xlu1 %v5363_v7, %s5283_s23 }
  0xdf   : > { %v547_v1 = vpop.permute.xlu0 %546  ;;  %v549_v3 = vpop.permute.xlu1 %548 }
  0xe0   : > { %631 = vst.msk [vmem:[#allocation2 + $0x60] sm:$0xff] %vm618_vm2, %v547_v1  ;;  %632 = vst.msk [vmem:[#allocation2 + $0x68] sm:$0xff] %vm618_vm2, %v549_v3 }
  0xe1   : > { %923 = vrot.lane.b32.xlu0 %v5370_v8, %s5283_s23  ;;  %925 = vrot.lane.b32.xlu1 %v5373_v9, %s5283_s23 }
  0xe3   : > { %v551_v4 = vpop.permute.xlu0 %550  ;;  %v553_v5 = vpop.permute.xlu1 %552 }
  0xe4   : > { %633 = vst.msk [vmem:[#allocation2 + $0x70] sm:$0xff] %vm618_vm2, %v551_v4  ;;  %634 = vst.msk [vmem:[#allocation2 + $0x78] sm:$0xff] %vm618_vm2, %v553_v5 }
  0xe5   : > { %927 = vrot.lane.b32.xlu0 %v5380_v10, %s5283_s23  ;;  %929 = vrot.lane.b32.xlu1 %v5383_v11, %s5283_s23 }
  0xe7   : > { %v555_v6 = vpop.permute.xlu0 %554  ;;  %v557_v7 = vpop.permute.xlu1 %556 }
  0xe8   : > { %635 = vst.msk [vmem:[#allocation2 + $0x80] sm:$0xff] %vm618_vm2, %v555_v6  ;;  %636 = vst.msk [vmem:[#allocation2 + $0x88] sm:$0xff] %vm618_vm2, %v557_v7  ;;  %v7886_v6 = vld [vmem:[#allocation7_spill] sm:$0xff]  ;;  %v7887_v7 = vld [vmem:[#allocation8_spill] sm:$0xff] }
  0xe9   : > { %931 = vrot.lane.b32.xlu0 %v5394_v14, %s5283_s23  ;;  %933 = vrot.lane.b32.xlu1 %v5397_v15, %s5283_s23 }
  0xeb   : > { %v559_v8 = vpop.permute.xlu0 %558  ;;  %v561_v9 = vpop.permute.xlu1 %560 }
  0xec   : > { %637 = vst.msk [vmem:[#allocation2 + $0x90] sm:$0xff] %vm618_vm2, %v559_v8  ;;  %638 = vst.msk [vmem:[#allocation2 + $0x98] sm:$0xff] %vm618_vm2, %v561_v9 }
  0xed   : > { %935 = vrot.lane.b32.xlu0 %v5408_v18, %s5283_s23  ;;  %937 = vrot.lane.b32.xlu1 %v5423_v21, %s5283_s23 }
  0xef   : > { %v563_v10 = vpop.permute.xlu0 %562  ;;  %v565_v11 = vpop.permute.xlu1 %564 }
  0xf0   : > { %639 = vst.msk [vmem:[#allocation2 + $0xa0] sm:$0xff] %vm618_vm2, %v563_v10  ;;  %640 = vst.msk [vmem:[#allocation2 + $0xa8] sm:$0xff] %vm618_vm2, %v565_v11  ;;  %v7888_v10 = vld [vmem:[#allocation9_spill] sm:$0xff]  ;;  %v7889_v11 = vld [vmem:[#allocation10_spill] sm:$0xff] }
  0xf1   : > { %939 = vrot.lane.b32.xlu0 %v5459_v29, %s5283_s23  ;;  %941 = vrot.lane.b32.xlu1 %v5462_v30, %s5283_s23 }
  0xf3   : > { %v567_v14 = vpop.permute.xlu0 %566  ;;  %v569_v15 = vpop.permute.xlu1 %568 }
  0xf4   : > { %641 = vst.msk [vmem:[#allocation2 + $0xb0] sm:$0xff] %vm618_vm2, %v567_v14  ;;  %642 = vst.msk [vmem:[#allocation2 + $0xb8] sm:$0xff] %vm618_vm2, %v569_v15 }
  0xf5   : > { %943 = vrot.lane.b32.xlu0 %v5534_v42, %s5283_s23  ;;  %945 = vrot.lane.b32.xlu1 %v5537_v43, %s5283_s23 }
  0xf7   : > { %v571_v18 = vpop.permute.xlu0 %570  ;;  %v573_v21 = vpop.permute.xlu1 %572 }
  0xf8   : > { %643 = vst.msk [vmem:[#allocation2 + $0xc0] sm:$0xff] %vm618_vm2, %v571_v18  ;;  %644 = vst.msk [vmem:[#allocation2 + $0xc8] sm:$0xff] %vm618_vm2, %v573_v21  ;;  %v7890_v18 = vld [vmem:[#allocation11_spill] sm:$0xff]  ;;  %v7891_v21 = vld [vmem:[#allocation12_spill] sm:$0xff] }
  0xf9   : > { %947 = vrot.lane.b32.xlu0 %v5554_v46, %s5283_s23  ;;  %949 = vrot.lane.b32.xlu1 %v5557_v47, %s5283_s23 }
  0xfb   : > { %v575_v29 = vpop.permute.xlu0 %574  ;;  %v577_v30 = vpop.permute.xlu1 %576 }
  0xfc   : > { %645 = vst.msk [vmem:[#allocation2 + $0xd0] sm:$0xff] %vm618_vm2, %v575_v29  ;;  %646 = vst.msk [vmem:[#allocation2 + $0xd8] sm:$0xff] %vm618_vm2, %v577_v30 }
  0xfd   : > { %951 = vrot.lane.b32.xlu0 %v5574_v50, %s5283_s23  ;;  %953 = vrot.lane.b32.xlu1 %v5577_v51, %s5283_s23 }
  0xff   : > { %v579_v42 = vpop.permute.xlu0 %578  ;;  %v581_v43 = vpop.permute.xlu1 %580 }
 0x100   : > { %647 = vst.msk [vmem:[#allocation2 + $0xe0] sm:$0xff] %vm618_vm2, %v579_v42  ;;  %648 = vst.msk [vmem:[#allocation2 + $0xe8] sm:$0xff] %vm618_vm2, %v581_v43  ;;  %v7892_v42 = vld [vmem:[#allocation13_spill] sm:$0xff]  ;;  %v7893_v43 = vld [vmem:[#allocation14_spill] sm:$0xff] }
 0x101   : > { %955 = vrot.lane.b32.xlu0 %v5594_v54, %s5283_s23  ;;  %957 = vrot.lane.b32.xlu1 %v5597_v55, %s5283_s23  ;;  %v7882_v54 = vld [vmem:[#allocation3_spill] sm:$0xff]  ;;  %v7883_v55 = vld [vmem:[#allocation4_spill] sm:$0xff] }
 0x103   : > { %v583_v46 = vpop.permute.xlu0 %582  ;;  %v585_v47 = vpop.permute.xlu1 %584 }
 0x104   : > { %649 = vst.msk [vmem:[#allocation2 + $0xf0] sm:$0xff] %vm618_vm2, %v583_v46  ;;  %650 = vst.msk [vmem:[#allocation2 + $0xf8] sm:$0xff] %vm618_vm2, %v585_v47 }
 0x105   : > { %959 = vrot.lane.b32.xlu0 %v5614_v58, %s5283_s23  ;;  %961 = vrot.lane.b32.xlu1 %v5617_v59, %s5283_s23  ;;  %v7884_v58 = vld [vmem:[#allocation5_spill] sm:$0xff]  ;;  %v7885_v59 = vld [vmem:[#allocation6_spill] sm:$0xff] }
 0x107   : > { %v719_v50 = vpop.permute.xlu0 %718  ;;  %v721_v51 = vpop.permute.xlu1 %720 }
 0x108   : > { %815 = vst.msk [vmem:[#allocation2] sm:$0xff] %vm814_vm3, %v719_v50  ;;  %816 = vst.msk [vmem:[#allocation2 + $0x8] sm:$0xff] %vm814_vm3, %v721_v51  ;;  %v7894_v50 = vld [vmem:[#allocation15_spill] sm:$0xff]  ;;  %v7895_v51 = vld [vmem:[#allocation16_spill] sm:$0xff] }
 0x109   : > { %963 = vrot.lane.b32.xlu0 %v7882_v54, %s5283_s23  ;;  %965 = vrot.lane.b32.xlu1 %v7883_v55, %s5283_s23 }
 0x10b   : > { %v723_v12 = vpop.permute.xlu0 %722  ;;  %v725_v16 = vpop.permute.xlu1 %724 }
 0x10c   : > { %817 = vst.msk [vmem:[#allocation2 + $0x10] sm:$0xff] %vm814_vm3, %v723_v12  ;;  %818 = vst.msk [vmem:[#allocation2 + $0x18] sm:$0xff] %vm814_vm3, %v725_v16  ;;  %v7896_v12 = vld [vmem:[#allocation17_spill] sm:$0xff]  ;;  %v7897_v16 = vld [vmem:[#allocation18_spill] sm:$0xff] }
 0x10d   : > { %967 = vrot.lane.b32.xlu0 %v7884_v58, %s5283_s23  ;;  %969 = vrot.lane.b32.xlu1 %v7885_v59, %s5283_s23 }
 0x10f   : > { %v727_v1 = vpop.permute.xlu0 %726  ;;  %v729_v3 = vpop.permute.xlu1 %728 }
 0x110   : > { %819 = vst.msk [vmem:[#allocation2 + $0x20] sm:$0xff] %vm814_vm3, %v727_v1  ;;  %820 = vst.msk [vmem:[#allocation2 + $0x28] sm:$0xff] %vm814_vm3, %v729_v3  ;;  %v7898_v1 = vld [vmem:[#allocation19_spill] sm:$0xff]  ;;  %v7899_v3 = vld [vmem:[#allocation20_spill] sm:$0xff] }
 0x111   : > { %971 = vrot.lane.b32.xlu0 %v5996_v60, %s5283_s23  ;;  %973 = vrot.lane.b32.xlu1 %v5999_v63, %s5283_s23 }
 0x113   : > { %v731_v4 = vpop.permute.xlu0 %730  ;;  %v733_v5 = vpop.permute.xlu1 %732 }
 0x114   : > { %821 = vst.msk [vmem:[#allocation2 + $0x30] sm:$0xff] %vm814_vm3, %v731_v4  ;;  %822 = vst.msk [vmem:[#allocation2 + $0x38] sm:$0xff] %vm814_vm3, %v733_v5 }
 0x115   : > { %1104 = vrot.lane.b32.xlu0 %v7886_v6, %s5284_s24  ;;  %1106 = vrot.lane.b32.xlu1 %v7887_v7, %s5284_s24  ;;  %v7900_v6 = vld [vmem:[#allocation21_spill] sm:$0xff]  ;;  %v7901_v7 = vld [vmem:[#allocation22_spill] sm:$0xff] }
 0x117   : > { %v735_v8 = vpop.permute.xlu0 %734  ;;  %v737_v9 = vpop.permute.xlu1 %736 }
 0x118   : > { %823 = vst.msk [vmem:[#allocation2 + $0x40] sm:$0xff] %vm814_vm3, %v735_v8  ;;  %824 = vst.msk [vmem:[#allocation2 + $0x48] sm:$0xff] %vm814_vm3, %v737_v9 }
 0x119   : > { %1108 = vrot.lane.b32.xlu0 %v7888_v10, %s5284_s24  ;;  %1110 = vrot.lane.b32.xlu1 %v7889_v11, %s5284_s24  ;;  %v7902_v10 = vld [vmem:[#allocation23_spill] sm:$0xff]  ;;  %v7903_v11 = vld [vmem:[#allocation24_spill] sm:$0xff] }
 0x11b   : > { %v739_v14 = vpop.permute.xlu0 %738  ;;  %v741_v15 = vpop.permute.xlu1 %740 }
 0x11c   : > { %825 = vst.msk [vmem:[#allocation2 + $0x50] sm:$0xff] %vm814_vm3, %v739_v14  ;;  %826 = vst.msk [vmem:[#allocation2 + $0x58] sm:$0xff] %vm814_vm3, %v741_v15 }
 0x11d   : > { %1112 = vrot.lane.b32.xlu0 %v7890_v18, %s5284_s24  ;;  %1114 = vrot.lane.b32.xlu1 %v7891_v21, %s5284_s24  ;;  %v7904_v18 = vld [vmem:[#allocation25_spill] sm:$0xff]  ;;  %v7905_v21 = vld [vmem:[#allocation26_spill] sm:$0xff] }
 0x11f   : > { %v743_v29 = vpop.permute.xlu0 %742  ;;  %v745_v30 = vpop.permute.xlu1 %744 }
 0x120   : > { %827 = vst.msk [vmem:[#allocation2 + $0x60] sm:$0xff] %vm814_vm3, %v743_v29  ;;  %828 = vst.msk [vmem:[#allocation2 + $0x68] sm:$0xff] %vm814_vm3, %v745_v30 }
 0x121   : > { %1116 = vrot.lane.b32.xlu0 %v7892_v42, %s5284_s24  ;;  %1118 = vrot.lane.b32.xlu1 %v7893_v43, %s5284_s24  ;;  %v7906_v42 = vld [vmem:[#allocation27_spill] sm:$0xff]  ;;  %v7907_v43 = vld [vmem:[#allocation28_spill] sm:$0xff] }
 0x123   : > { %v747_v46 = vpop.permute.xlu0 %746  ;;  %v749_v47 = vpop.permute.xlu1 %748 }
 0x124   : > { %829 = vst.msk [vmem:[#allocation2 + $0x70] sm:$0xff] %vm814_vm3, %v747_v46  ;;  %830 = vst.msk [vmem:[#allocation2 + $0x78] sm:$0xff] %vm814_vm3, %v749_v47 }
 0x125   : > { %1120 = vrot.lane.b32.xlu0 %v7894_v50, %s5284_s24  ;;  %1122 = vrot.lane.b32.xlu1 %v7895_v51, %s5284_s24  ;;  %v7908_v50 = vld [vmem:[#allocation29_spill] sm:$0xff]  ;;  %v7909_v51 = vld [vmem:[#allocation30_spill] sm:$0xff] }
 0x127   : > { %v751_v54 = vpop.permute.xlu0 %750  ;;  %v753_v55 = vpop.permute.xlu1 %752 }
 0x128   : > { %831 = vst.msk [vmem:[#allocation2 + $0x80] sm:$0xff] %vm814_vm3, %v751_v54  ;;  %832 = vst.msk [vmem:[#allocation2 + $0x88] sm:$0xff] %vm814_vm3, %v753_v55 }
 0x129   : > { %1124 = vrot.lane.b32.xlu0 %v7896_v12, %s5284_s24  ;;  %1126 = vrot.lane.b32.xlu1 %v7897_v16, %s5284_s24  ;;  %v7910_v12 = vld [vmem:[#allocation31_spill] sm:$0xff]  ;;  %v7911_v16 = vld [vmem:[#allocation32_spill] sm:$0xff] }
 0x12b   : > { %v755_v58 = vpop.permute.xlu0 %754  ;;  %v757_v59 = vpop.permute.xlu1 %756 }
 0x12c   : > { %833 = vst.msk [vmem:[#allocation2 + $0x90] sm:$0xff] %vm814_vm3, %v755_v58  ;;  %834 = vst.msk [vmem:[#allocation2 + $0x98] sm:$0xff] %vm814_vm3, %v757_v59 }
 0x12d   : > { %1128 = vrot.lane.b32.xlu0 %v7898_v1, %s5284_s24  ;;  %1130 = vrot.lane.b32.xlu1 %v7899_v3, %s5284_s24 }
 0x12f   : > { %v759_v4 = vpop.permute.xlu0 %758  ;;  %v761_v5 = vpop.permute.xlu1 %760 }
 0x130   : > { %835 = vst.msk [vmem:[#allocation2 + $0xa0] sm:$0xff] %vm814_vm3, %v759_v4  ;;  %836 = vst.msk [vmem:[#allocation2 + $0xa8] sm:$0xff] %vm814_vm3, %v761_v5  ;;  %v6098_v4 = vld [vmem:[%s5333_s19 + $0x19b] sm:$0xff]  ;;  %v6101_v5 = vld [vmem:[%s5333_s19 + $0x1a3] sm:$0xff] }
 0x131   : > { %1132 = vrot.lane.b32.xlu0 %v7900_v6, %s5284_s24  ;;  %1134 = vrot.lane.b32.xlu1 %v7901_v7, %s5284_s24 }
 0x133   : > { %v763_v8 = vpop.permute.xlu0 %762  ;;  %v765_v9 = vpop.permute.xlu1 %764 }
 0x134   : > { %837 = vst.msk [vmem:[#allocation2 + $0xb0] sm:$0xff] %vm814_vm3, %v763_v8  ;;  %838 = vst.msk [vmem:[#allocation2 + $0xb8] sm:$0xff] %vm814_vm3, %v765_v9 }
 0x135   : > { %1136 = vrot.lane.b32.xlu0 %v7902_v10, %s5284_s24  ;;  %1138 = vrot.lane.b32.xlu1 %v7903_v11, %s5284_s24  ;;  %v4685_v11 = vld [vmem:[%s5333_s19 + $0x52] sm:$0xff] }
 0x137   : > { %v767_v14 = vpop.permute.xlu0 %766  ;;  %v769_v15 = vpop.permute.xlu1 %768 }
 0x138   : > { %839 = vst.msk [vmem:[#allocation2 + $0xc0] sm:$0xff] %vm814_vm3, %v767_v14  ;;  %840 = vst.msk [vmem:[#allocation2 + $0xc8] sm:$0xff] %vm814_vm3, %v769_v15  ;;  %v4686_v14 = vld [vmem:[%s5333_s19 + $0x62] sm:$0xff]  ;;  %v4687_v15 = vld [vmem:[%s5333_s19 + $0x6a] sm:$0xff] }
 0x139   : > { %1140 = vrot.lane.b32.xlu0 %v7904_v18, %s5284_s24  ;;  %1142 = vrot.lane.b32.xlu1 %v7905_v21, %s5284_s24 }
 0x13b   : > { %v771_v29 = vpop.permute.xlu0 %770  ;;  %v773_v30 = vpop.permute.xlu1 %772 }
 0x13c   : > { %841 = vst.msk [vmem:[#allocation2 + $0xd0] sm:$0xff] %vm814_vm3, %v771_v29  ;;  %842 = vst.msk [vmem:[#allocation2 + $0xd8] sm:$0xff] %vm814_vm3, %v773_v30  ;;  %v4688_v29 = vld [vmem:[%s5333_s19 + $0x7a] sm:$0xff]  ;;  %v4689_v30 = vld [vmem:[%s5333_s19 + $0x82] sm:$0xff] }
 0x13d   : > { %1144 = vrot.lane.b32.xlu0 %v7906_v42, %s5284_s24  ;;  %1146 = vrot.lane.b32.xlu1 %v7907_v43, %s5284_s24 }
 0x13f   : > { %v775_v46 = vpop.permute.xlu0 %774  ;;  %v777_v47 = vpop.permute.xlu1 %776 }
 0x140   : > { %843 = vst.msk [vmem:[#allocation2 + $0xe0] sm:$0xff] %vm814_vm3, %v775_v46  ;;  %844 = vst.msk [vmem:[#allocation2 + $0xe8] sm:$0xff] %vm814_vm3, %v777_v47  ;;  %v4690_v46 = vld [vmem:[%s5333_s19 + $0x92] sm:$0xff]  ;;  %v4691_v47 = vld [vmem:[%s5333_s19 + $0x9a] sm:$0xff] }
 0x141   : > { %1148 = vrot.lane.b32.xlu0 %v7908_v50, %s5284_s24  ;;  %1150 = vrot.lane.b32.xlu1 %v7909_v51, %s5284_s24 }
 0x143   : > { %v779_v54 = vpop.permute.xlu0 %778  ;;  %v781_v55 = vpop.permute.xlu1 %780 }
 0x144   : > { %845 = vst.msk [vmem:[#allocation2 + $0xf0] sm:$0xff] %vm814_vm3, %v779_v54  ;;  %846 = vst.msk [vmem:[#allocation2 + $0xf8] sm:$0xff] %vm814_vm3, %v781_v55  ;;  %v4692_v54 = vld [vmem:[%s5333_s19 + $0xaa] sm:$0xff]  ;;  %v4693_v55 = vld [vmem:[%s5333_s19 + $0xb2] sm:$0xff] }
 0x145   : > { %1152 = vrot.lane.b32.xlu0 %v7910_v12, %s5284_s24  ;;  %1154 = vrot.lane.b32.xlu1 %v7911_v16, %s5284_s24 }
 0x147   : > { %v912_v58 = vpop.permute.xlu0 %911  ;;  %v914_v59 = vpop.permute.xlu1 %913 }
 0x148   : > { %1008 = vst.msk [vmem:[#allocation2] sm:$0xff] %vm1007_vm4, %v912_v58  ;;  %1009 = vst.msk [vmem:[#allocation2 + $0x8] sm:$0xff] %vm1007_vm4, %v914_v59  ;;  %v4694_v58 = vld [vmem:[%s5333_s19 + $0xc2] sm:$0xff]  ;;  %v4695_v59 = vld [vmem:[%s5333_s19 + $0xca] sm:$0xff] }
 0x149   : > { %1156 = vrot.lane.b32.xlu0 %v5780_v0, %s5284_s24  ;;  %1158 = vrot.lane.b32.xlu1 %v5783_v2, %s5284_s24 }
 0x14b   : > { %v916_v1 = vpop.permute.xlu0 %915  ;;  %v918_v3 = vpop.permute.xlu1 %917 }
 0x14c   : > { %1010 = vst.msk [vmem:[#allocation2 + $0x10] sm:$0xff] %vm1007_vm4, %v916_v1  ;;  %1011 = vst.msk [vmem:[#allocation2 + $0x18] sm:$0xff] %vm1007_vm4, %v918_v3 }
 0x14d   : > { %1160 = vrot.lane.b32.xlu0 %v5792_v61, %s5284_s24  ;;  %1162 = vrot.lane.b32.xlu1 %v5795_v62, %s5284_s24 }
 0x14f   : > { %v920_v0 = vpop.permute.xlu0 %919  ;;  %v922_v6 = vpop.permute.xlu1 %921 }
 0x150   : > { %1012 = vst.msk [vmem:[#allocation2 + $0x20] sm:$0xff] %vm1007_vm4, %v920_v0  ;;  %1013 = vst.msk [vmem:[#allocation2 + $0x28] sm:$0xff] %vm1007_vm4, %v922_v6  ;;  %v4696_v0 = vld [vmem:[%s5333_s19 + $0xda] sm:$0xff]  ;;  %v4697_v6 = vld [vmem:[%s5333_s19 + $0xe2] sm:$0xff] }
 0x151   : > { %1164 = vrot.lane.b32.xlu0 %v6098_v4, %s5284_s24  ;;  %1166 = vrot.lane.b32.xlu1 %v6101_v5, %s5284_s24 }
 0x153   : > { %v924_v2 = vpop.permute.xlu0 %923  ;;  %v926_v61 = vpop.permute.xlu1 %925 }
 0x154   : > { %1014 = vst.msk [vmem:[#allocation2 + $0x30] sm:$0xff] %vm1007_vm4, %v924_v2  ;;  %1015 = vst.msk [vmem:[#allocation2 + $0x38] sm:$0xff] %vm1007_vm4, %v926_v61 }
 0x155   : > { %1300 = vrot.lane.b32.xlu0 %v5413_v19, %s5285_s25  ;;  %1302 = vrot.lane.b32.xlu1 %v5416_v20, %s5285_s25 }
 0x157   : > { %v928_v62 = vpop.permute.xlu0 %927  ;;  %v930_v7 = vpop.permute.xlu1 %929 }
 0x158   : > { %1016 = vst.msk [vmem:[#allocation2 + $0x40] sm:$0xff] %vm1007_vm4, %v928_v62  ;;  %1017 = vst.msk [vmem:[#allocation2 + $0x48] sm:$0xff] %vm1007_vm4, %v930_v7  ;;  %v4698_v62 = vld [vmem:[%s5333_s19 + $0xf2] sm:$0xff]  ;;  %v4699_v7 = vld [vmem:[%s5333_s19 + $0xfa] sm:$0xff] }
 0x159   : > { %1304 = vrot.lane.b32.xlu0 %v5430_v22, %s5285_s25  ;;  %1306 = vrot.lane.b32.xlu1 %v5435_v23, %s5285_s25 }
 0x15b   : > { %v932_v8 = vpop.permute.xlu0 %931  ;;  %v934_v9 = vpop.permute.xlu1 %933 }
 0x15c   : > { %1018 = vst.msk [vmem:[#allocation2 + $0x50] sm:$0xff] %vm1007_vm4, %v932_v8  ;;  %1019 = vst.msk [vmem:[#allocation2 + $0x58] sm:$0xff] %vm1007_vm4, %v934_v9 }
 0x15d   : > { %1308 = vrot.lane.b32.xlu0 %v5438_v24, %s5285_s25  ;;  %1310 = vrot.lane.b32.xlu1 %v5441_v25, %s5285_s25 }
 0x15f   : > { %v936_v19 = vpop.permute.xlu0 %935  ;;  %v938_v20 = vpop.permute.xlu1 %937 }
 0x160   : > { %1020 = vst.msk [vmem:[#allocation2 + $0x60] sm:$0xff] %vm1007_vm4, %v936_v19  ;;  %1021 = vst.msk [vmem:[#allocation2 + $0x68] sm:$0xff] %vm1007_vm4, %v938_v20  ;;  %v4700_v19 = vld [vmem:[%s5333_s19 + $0x10a] sm:$0xff]  ;;  %v4701_v20 = vld [vmem:[%s5333_s19 + $0x112] sm:$0xff] }
 0x161   : > { %1312 = vrot.lane.b32.xlu0 %v5450_v26, %s5285_s25  ;;  %1314 = vrot.lane.b32.xlu1 %v5453_v27, %s5285_s25 }
 0x163   : > { %v940_v22 = vpop.permute.xlu0 %939  ;;  %v942_v23 = vpop.permute.xlu1 %941 }
 0x164   : > { %1022 = vst.msk [vmem:[#allocation2 + $0x70] sm:$0xff] %vm1007_vm4, %v940_v22  ;;  %1023 = vst.msk [vmem:[#allocation2 + $0x78] sm:$0xff] %vm1007_vm4, %v942_v23 }
 0x165   : > { %1316 = vrot.lane.b32.xlu0 %v5456_v28, %s5285_s25  ;;  %1318 = vrot.lane.b32.xlu1 %v5471_v31, %s5285_s25 }
 0x167   : > { %v944_v24 = vpop.permute.xlu0 %943  ;;  %v946_v25 = vpop.permute.xlu1 %945 }
 0x168   : > { %1024 = vst.msk [vmem:[#allocation2 + $0x80] sm:$0xff] %vm1007_vm4, %v944_v24  ;;  %1025 = vst.msk [vmem:[#allocation2 + $0x88] sm:$0xff] %vm1007_vm4, %v946_v25  ;;  %v4702_v24 = vld [vmem:[%s5333_s19 + $0x122] sm:$0xff]  ;;  %v4703_v25 = vld [vmem:[%s5333_s19 + $0x12a] sm:$0xff] }
 0x169   : > { %1320 = vrot.lane.b32.xlu0 %v5474_v32, %s5285_s25  ;;  %1322 = vrot.lane.b32.xlu1 %v5477_v33, %s5285_s25 }
 0x16b   : > { %v948_v26 = vpop.permute.xlu0 %947  ;;  %v950_v27 = vpop.permute.xlu1 %949 }
 0x16c   : > { %1026 = vst.msk [vmem:[#allocation2 + $0x90] sm:$0xff] %vm1007_vm4, %v948_v26  ;;  %1027 = vst.msk [vmem:[#allocation2 + $0x98] sm:$0xff] %vm1007_vm4, %v950_v27 }
 0x16d   : > { %1324 = vrot.lane.b32.xlu0 %v5490_v34, %s5285_s25  ;;  %1326 = vrot.lane.b32.xlu1 %v5493_v35, %s5285_s25 }
 0x16f   : > { %v952_v28 = vpop.permute.xlu0 %951  ;;  %v954_v31 = vpop.permute.xlu1 %953 }
 0x170   : > { %1028 = vst.msk [vmem:[#allocation2 + $0xa0] sm:$0xff] %vm1007_vm4, %v952_v28  ;;  %1029 = vst.msk [vmem:[#allocation2 + $0xa8] sm:$0xff] %vm1007_vm4, %v954_v31  ;;  %v4704_v28 = vld [vmem:[%s5333_s19 + $0x13a] sm:$0xff]  ;;  %v4705_v31 = vld [vmem:[%s5333_s19 + $0x142] sm:$0xff] }
 0x171   : > { %1328 = vrot.lane.b32.xlu0 %v5500_v36, %s5285_s25  ;;  %1330 = vrot.lane.b32.xlu1 %v5503_v37, %s5285_s25 }
 0x173   : > { %v956_v32 = vpop.permute.xlu0 %955  ;;  %v958_v33 = vpop.permute.xlu1 %957 }
 0x174   : > { %1030 = vst.msk [vmem:[#allocation2 + $0xb0] sm:$0xff] %vm1007_vm4, %v956_v32  ;;  %1031 = vst.msk [vmem:[#allocation2 + $0xb8] sm:$0xff] %vm1007_vm4, %v958_v33 }
 0x175   : > { %1332 = vrot.lane.b32.xlu0 %v5506_v38, %s5285_s25  ;;  %1334 = vrot.lane.b32.xlu1 %v5515_v39, %s5285_s25 }
 0x177   : > { %v960_v34 = vpop.permute.xlu0 %959  ;;  %v962_v35 = vpop.permute.xlu1 %961 }
 0x178   : > { %1032 = vst.msk [vmem:[#allocation2 + $0xc0] sm:$0xff] %vm1007_vm4, %v960_v34  ;;  %1033 = vst.msk [vmem:[#allocation2 + $0xc8] sm:$0xff] %vm1007_vm4, %v962_v35  ;;  %v4706_v34 = vld [vmem:[%s5333_s19 + $0x152] sm:$0xff]  ;;  %v4707_v35 = vld [vmem:[%s5333_s19 + $0x15a] sm:$0xff] }
 0x179   : > { %1336 = vrot.lane.b32.xlu0 %v5518_v40, %s5285_s25  ;;  %1338 = vrot.lane.b32.xlu1 %v5521_v41, %s5285_s25 }
 0x17b   : > { %v964_v36 = vpop.permute.xlu0 %963  ;;  %v966_v37 = vpop.permute.xlu1 %965 }
 0x17c   : > { %1034 = vst.msk [vmem:[#allocation2 + $0xd0] sm:$0xff] %vm1007_vm4, %v964_v36  ;;  %1035 = vst.msk [vmem:[#allocation2 + $0xd8] sm:$0xff] %vm1007_vm4, %v966_v37 }
 0x17d   : > { %1340 = vrot.lane.b32.xlu0 %v5540_v44, %s5285_s25  ;;  %1342 = vrot.lane.b32.xlu1 %v5545_v45, %s5285_s25 }
 0x17f   : > { %v968_v38 = vpop.permute.xlu0 %967  ;;  %v970_v39 = vpop.permute.xlu1 %969 }
 0x180   : > { %1036 = vst.msk [vmem:[#allocation2 + $0xe0] sm:$0xff] %vm1007_vm4, %v968_v38  ;;  %1037 = vst.msk [vmem:[#allocation2 + $0xe8] sm:$0xff] %vm1007_vm4, %v970_v39  ;;  %v4708_v38 = vld [vmem:[%s5333_s19 + $0x16a] sm:$0xff]  ;;  %v4709_v39 = vld [vmem:[%s5333_s19 + $0x172] sm:$0xff] }
 0x181   : > { %1344 = vrot.lane.b32.xlu0 %v5560_v48, %s5285_s25  ;;  %1346 = vrot.lane.b32.xlu1 %v5565_v49, %s5285_s25 }
 0x183   : > { %v972_v40 = vpop.permute.xlu0 %971  ;;  %v974_v41 = vpop.permute.xlu1 %973 }
 0x184   : > { %1038 = vst.msk [vmem:[#allocation2 + $0xf0] sm:$0xff] %vm1007_vm4, %v972_v40  ;;  %1039 = vst.msk [vmem:[#allocation2 + $0xf8] sm:$0xff] %vm1007_vm4, %v974_v41 }
 0x185   : > { %1348 = vrot.lane.b32.xlu0 %v5580_v52, %s5285_s25  ;;  %1350 = vrot.lane.b32.xlu1 %v5585_v53, %s5285_s25  ;;  %v4682_v52 = vld [vmem:[%s5333_s19 + $0x1b1] sm:$0xff]  ;;  %v4683_v53 = vld [vmem:[%s5333_s19 + $0x1b9] sm:$0xff] }
 0x187   : > { %v1105_v44 = vpop.permute.xlu0 %1104  ;;  %v1107_v45 = vpop.permute.xlu1 %1106 }
 0x188   : > { %1201 = vst.msk [vmem:[#allocation2] sm:$0xff] %vm1200_vm5, %v1105_v44  ;;  %1202 = vst.msk [vmem:[#allocation2 + $0x8] sm:$0xff] %vm1200_vm5, %v1107_v45  ;;  %v1847_v44 = vld [vmem:[%s7819_s1] sm:$0xff]  ;;  %v1848_v45 = vld [vmem:[%s7819_s1 + $0x8] sm:$0xff] }
 0x189   : > { %1352 = vrot.lane.b32.xlu0 %v5600_v56, %s5285_s25  ;;  %1354 = vrot.lane.b32.xlu1 %v5605_v57, %s5285_s25  ;;  %v4684_v57 = vld [vmem:[%s5333_s19 + $0x4a] sm:$0xff] }
 0x18b   : > { %v1109_v48 = vpop.permute.xlu0 %1108  ;;  %v1111_v49 = vpop.permute.xlu1 %1110 }
 0x18c   : > { %1203 = vst.msk [vmem:[#allocation2 + $0x10] sm:$0xff] %vm1200_vm5, %v1109_v48  ;;  %1204 = vst.msk [vmem:[#allocation2 + $0x18] sm:$0xff] %vm1200_vm5, %v1111_v49  ;;  %v5206_v48 = vpack.c.bf16 %v1848_v45, %v1847_v44  ;;  %v4710_v49 = vld [vmem:[%s5333_s19 + $0x182] sm:$0xff] }
 0x18d   : > { %1356 = vrot.lane.b32.xlu0 %v5894_v13, %s5285_s25  ;;  %1358 = vrot.lane.b32.xlu1 %v5897_v17, %s5285_s25  ;;  %v4739_v44 = vld [vmem:[%s5333_s19 + $0x15b] sm:$0xff] }
 0x18e   : > { %5207 = vmatprep.subr.bf16.mxu0 %v5206_v48 }
 0x18f   : > { %v1113_v56 = vpop.permute.xlu0 %1112  ;;  %v1115_v10 = vpop.permute.xlu1 %1114  ;;  %5209 = vmatpush3.bf16.msra.mxu0 %v5206_v48 }
 0x190   : > { %1205 = vst.msk [vmem:[#allocation2 + $0x20] sm:$0xff] %vm1200_vm5, %v1113_v56  ;;  %1206 = vst.msk [vmem:[#allocation2 + $0x28] sm:$0xff] %vm1200_vm5, %v1115_v10  ;;  %v1849_v10 = vld [vmem:[%s7819_s1 + $0x10] sm:$0xff] }
 0x191   : > { %1360 = vrot.lane.b32.xlu0 %v4682_v52, %s5285_s25  ;;  %1362 = vrot.lane.b32.xlu1 %v4683_v53, %s5285_s25  ;;  %v4711_v52 = vld [vmem:[%s5333_s19 + $0x18a] sm:$0xff] }
 0x193   : > { %v1117_v13 = vpop.permute.xlu0 %1116  ;;  %v1119_v17 = vpop.permute.xlu1 %1118 }
 0x194   : > { %1207 = vst.msk [vmem:[#allocation2 + $0x30] sm:$0xff] %vm1200_vm5, %v1117_v13  ;;  %1208 = vst.msk [vmem:[#allocation2 + $0x38] sm:$0xff] %vm1200_vm5, %v1119_v17 }
 0x195   : > { %1493 = vrot.lane.b32.xlu0 %v4684_v57, %s5286_s26  ;;  %1495 = vrot.lane.b32.xlu1 %v4685_v11, %s5286_s26  ;;  %v1850_v57 = vld [vmem:[%s7819_s1 + $0x18] sm:$0xff] }
 0x196   : > { %v5210_v11 = vpack.c.bf16 %v1850_v57, %v1849_v10  ;;  %v4742_v10 = vld [vmem:[%s5333_s19 + $0x183] sm:$0xff]  ;;  %v4743_v57 = vld [vmem:[%s5333_s19 + $0x18b] sm:$0xff] }
 0x197   : > { %v1121_v18 = vpop.permute.xlu0 %1120  ;;  %v1123_v21 = vpop.permute.xlu1 %1122 }
 0x198   : > { %1209 = vst.msk [vmem:[#allocation2 + $0x40] sm:$0xff] %vm1200_vm5, %v1121_v18  ;;  %1210 = vst.msk [vmem:[#allocation2 + $0x48] sm:$0xff] %vm1200_vm5, %v1123_v21  ;;  %5211 = vmatprep.subr.bf16.mxu0 %v5210_v11  ;;  %v4715_v18 = vld [vmem:[%s5333_s19 + $0x1ba] sm:$0xff] }
 0x199   : > { %1497 = vrot.lane.b32.xlu0 %v4686_v14, %s5286_s26  ;;  %1499 = vrot.lane.b32.xlu1 %v4687_v15, %s5286_s26  ;;  %v1851_v14 = vld [vmem:[%s7819_s1 + $0x20] sm:$0xf]  ;;  %v4714_v15 = vld [vmem:[%s5333_s19 + $0x1b2] sm:$0xff] }
 0x19a   : > { %5213 = vmatpush3.bf16.msra.mxu0 %v5210_v11 }
 0x19b   : > { %v1125_v42 = vpop.permute.xlu0 %1124  ;;  %v1127_v43 = vpop.permute.xlu1 %1126  ;;  %5098 = vmatprep.subr.msk.mxu0 %vm1954_vm7, %v1851_v14 }
 0x19c   : > { %1211 = vst.msk [vmem:[#allocation2 + $0x50] sm:$0xff] %vm1200_vm5, %v1125_v42  ;;  %1212 = vst.msk [vmem:[#allocation2 + $0x58] sm:$0xff] %vm1200_vm5, %v1127_v43  ;;  %v4718_v43 = vld [vmem:[%s5333_s19 + $0x63] sm:$0xff] }
 0x19d   : > { %1501 = vrot.lane.b32.xlu0 %v4688_v29, %s5286_s26  ;;  %1503 = vrot.lane.b32.xlu1 %v4689_v30, %s5286_s26 }
 0x19e   : > { %5099 = vmatpush3.msk.msra.mxu0 %vm1954_vm7, %v1851_v14 }
 0x19f   : > { %v1129_v50 = vpop.permute.xlu0 %1128  ;;  %v1131_v51 = vpop.permute.xlu1 %1130 }
 0x1a0   : > { %1213 = vst.msk [vmem:[#allocation2 + $0x60] sm:$0xff] %vm1200_vm5, %v1129_v50  ;;  %1214 = vst.msk [vmem:[#allocation2 + $0x68] sm:$0xff] %vm1200_vm5, %v1131_v51  ;;  %v4720_v51 = vld [vmem:[%s5333_s19 + $0x7b] sm:$0xff] }
 0x1a1   : > { %1505 = vrot.lane.b32.xlu0 %v4690_v46, %s5286_s26  ;;  %1507 = vrot.lane.b32.xlu1 %v4691_v47, %s5286_s26  ;;  %v4719_v46 = vld [vmem:[%s5333_s19 + $0x6b] sm:$0xff] }
 0x1a3   : > { %v1133_v12 = vpop.permute.xlu0 %1132  ;;  %v1135_v16 = vpop.permute.xlu1 %1134 }
 0x1a4   : > { %1215 = vst.msk [vmem:[#allocation2 + $0x70] sm:$0xff] %vm1200_vm5, %v1133_v12  ;;  %1216 = vst.msk [vmem:[#allocation2 + $0x78] sm:$0xff] %vm1200_vm5, %v1135_v16  ;;  %v4722_v16 = vld [vmem:[%s5333_s19 + $0x93] sm:$0xff] }
 0x1a5   : > { %1509 = vrot.lane.b32.xlu0 %v4692_v54, %s5286_s26  ;;  %1511 = vrot.lane.b32.xlu1 %v4693_v55, %s5286_s26  ;;  %v4721_v54 = vld [vmem:[%s5333_s19 + $0x83] sm:$0xff] }
 0x1a7   : > { %v1137_v1 = vpop.permute.xlu0 %1136  ;;  %v1139_v3 = vpop.permute.xlu1 %1138 }
 0x1a8   : > { %1217 = vst.msk [vmem:[#allocation2 + $0x80] sm:$0xff] %vm1200_vm5, %v1137_v1  ;;  %1218 = vst.msk [vmem:[#allocation2 + $0x88] sm:$0xff] %vm1200_vm5, %v1139_v3  ;;  %v4724_v3 = vld [vmem:[%s5333_s19 + $0xab] sm:$0xff] }
 0x1a9   : > { %1513 = vrot.lane.b32.xlu0 %v4694_v58, %s5286_s26  ;;  %1515 = vrot.lane.b32.xlu1 %v4695_v59, %s5286_s26  ;;  %v4723_v58 = vld [vmem:[%s5333_s19 + $0x9b] sm:$0xff] }
 0x1ab   : > { %v1141_v2 = vpop.permute.xlu0 %1140  ;;  %v1143_v61 = vpop.permute.xlu1 %1142 }
 0x1ac   : > { %1219 = vst.msk [vmem:[#allocation2 + $0x90] sm:$0xff] %vm1200_vm5, %v1141_v2  ;;  %1220 = vst.msk [vmem:[#allocation2 + $0x98] sm:$0xff] %vm1200_vm5, %v1143_v61  ;;  %v4726_v61 = vld [vmem:[%s5333_s19 + $0xc3] sm:$0xff] }
 0x1ad   : > { %1517 = vrot.lane.b32.xlu0 %v4696_v0, %s5286_s26  ;;  %1519 = vrot.lane.b32.xlu1 %v4697_v6, %s5286_s26  ;;  %v4725_v0 = vld [vmem:[%s5333_s19 + $0xb3] sm:$0xff] }
 0x1af   : > { %v1145_v8 = vpop.permute.xlu0 %1144  ;;  %v1147_v9 = vpop.permute.xlu1 %1146 }
 0x1b0   : > { %1221 = vst.msk [vmem:[#allocation2 + $0xa0] sm:$0xff] %vm1200_vm5, %v1145_v8  ;;  %1222 = vst.msk [vmem:[#allocation2 + $0xa8] sm:$0xff] %vm1200_vm5, %v1147_v9  ;;  %v4728_v9 = vld [vmem:[%s5333_s19 + $0xdb] sm:$0xff] }
 0x1b1   : > { %1521 = vrot.lane.b32.xlu0 %v4698_v62, %s5286_s26  ;;  %1523 = vrot.lane.b32.xlu1 %v4699_v7, %s5286_s26  ;;  %v4727_v62 = vld [vmem:[%s5333_s19 + $0xcb] sm:$0xff] }
 0x1b3   : > { %v1149_v22 = vpop.permute.xlu0 %1148  ;;  %v1151_v23 = vpop.permute.xlu1 %1150 }
 0x1b4   : > { %1223 = vst.msk [vmem:[#allocation2 + $0xb0] sm:$0xff] %vm1200_vm5, %v1149_v22  ;;  %1224 = vst.msk [vmem:[#allocation2 + $0xb8] sm:$0xff] %vm1200_vm5, %v1151_v23  ;;  %v4730_v23 = vld [vmem:[%s5333_s19 + $0xf3] sm:$0xff] }
 0x1b5   : > { %1525 = vrot.lane.b32.xlu0 %v4700_v19, %s5286_s26  ;;  %1527 = vrot.lane.b32.xlu1 %v4701_v20, %s5286_s26  ;;  %v4729_v19 = vld [vmem:[%s5333_s19 + $0xe3] sm:$0xff] }
 0x1b7   : > { %v1153_v26 = vpop.permute.xlu0 %1152  ;;  %v1155_v27 = vpop.permute.xlu1 %1154 }
 0x1b8   : > { %1225 = vst.msk [vmem:[#allocation2 + $0xc0] sm:$0xff] %vm1200_vm5, %v1153_v26  ;;  %1226 = vst.msk [vmem:[#allocation2 + $0xc8] sm:$0xff] %vm1200_vm5, %v1155_v27  ;;  %v4732_v27 = vld [vmem:[%s5333_s19 + $0x10b] sm:$0xff] }
 0x1b9   : > { %1529 = vrot.lane.b32.xlu0 %v4702_v24, %s5286_s26  ;;  %1531 = vrot.lane.b32.xlu1 %v4703_v25, %s5286_s26  ;;  %v4731_v24 = vld [vmem:[%s5333_s19 + $0xfb] sm:$0xff] }
 0x1bb   : > { %v1157_v32 = vpop.permute.xlu0 %1156  ;;  %v1159_v33 = vpop.permute.xlu1 %1158 }
 0x1bc   : > { %1227 = vst.msk [vmem:[#allocation2 + $0xd0] sm:$0xff] %vm1200_vm5, %v1157_v32  ;;  %1228 = vst.msk [vmem:[#allocation2 + $0xd8] sm:$0xff] %vm1200_vm5, %v1159_v33  ;;  %v4734_v33 = vld [vmem:[%s5333_s19 + $0x123] sm:$0xff] }
 0x1bd   : > { %1533 = vrot.lane.b32.xlu0 %v4704_v28, %s5286_s26  ;;  %1535 = vrot.lane.b32.xlu1 %v4705_v31, %s5286_s26  ;;  %v4733_v28 = vld [vmem:[%s5333_s19 + $0x113] sm:$0xff] }
 0x1bf   : > { %v1161_v36 = vpop.permute.xlu0 %1160  ;;  %v1163_v37 = vpop.permute.xlu1 %1162 }
 0x1c0   : > { %1229 = vst.msk [vmem:[#allocation2 + $0xe0] sm:$0xff] %vm1200_vm5, %v1161_v36  ;;  %1230 = vst.msk [vmem:[#allocation2 + $0xe8] sm:$0xff] %vm1200_vm5, %v1163_v37  ;;  %v4736_v37 = vld [vmem:[%s5333_s19 + $0x13b] sm:$0xff] }
 0x1c1   : > { %1537 = vrot.lane.b32.xlu0 %v4706_v34, %s5286_s26  ;;  %1539 = vrot.lane.b32.xlu1 %v4707_v35, %s5286_s26  ;;  %v4735_v34 = vld [vmem:[%s5333_s19 + $0x12b] sm:$0xff] }
 0x1c3   : > { %v1165_v40 = vpop.permute.xlu0 %1164  ;;  %v1167_v41 = vpop.permute.xlu1 %1166 }
 0x1c4   : > { %1231 = vst.msk [vmem:[#allocation2 + $0xf0] sm:$0xff] %vm1200_vm5, %v1165_v40  ;;  %1232 = vst.msk [vmem:[#allocation2 + $0xf8] sm:$0xff] %vm1200_vm5, %v1167_v41  ;;  %v4738_v41 = vld [vmem:[%s5333_s19 + $0x153] sm:$0xff] }
 0x1c5   : > { %1541 = vrot.lane.b32.xlu0 %v4708_v38, %s5286_s26  ;;  %1543 = vrot.lane.b32.xlu1 %v4709_v39, %s5286_s26  ;;  %v4737_v38 = vld [vmem:[%s5333_s19 + $0x143] sm:$0xff] }
 0x1c7   : > { %v1301_v53 = vpop.permute.xlu0 %1300  ;;  %v1303_v56 = vpop.permute.xlu1 %1302 }
 0x1c8   : > { %1397 = vst.msk [vmem:[#allocation2] sm:$0xff] %vm1396_vm6, %v1301_v53  ;;  %1398 = vst.msk [vmem:[#allocation2 + $0x8] sm:$0xff] %vm1396_vm6, %v1303_v56 }
 0x1c9   : > { %1545 = vrot.lane.b32.xlu0 %v4710_v49, %s5286_s26  ;;  %1547 = vrot.lane.b32.xlu1 %v4711_v52, %s5286_s26  ;;  %v4740_v49 = vld [vmem:[%s5333_s19 + $0x16b] sm:$0xff]  ;;  %v4741_v52 = vld [vmem:[%s5333_s19 + $0x173] sm:$0xff] }
 0x1cb   : > { %v1305_v13 = vpop.permute.xlu0 %1304  ;;  %v1307_v17 = vpop.permute.xlu1 %1306 }
 0x1cc   : > { %1399 = vst.msk [vmem:[#allocation2 + $0x10] sm:$0xff] %vm1396_vm6, %v1305_v13  ;;  %1400 = vst.msk [vmem:[#allocation2 + $0x18] sm:$0xff] %vm1396_vm6, %v1307_v17 }
 0x1cd   : > { %1549 = vrot.lane.b32.xlu0 %v5996_v60, %s5286_s26  ;;  %1551 = vrot.lane.b32.xlu1 %v5999_v63, %s5286_s26  ;;  %v4716_v60 = vld [vmem:[%s5333_s19 + $0x4b] sm:$0xff]  ;;  %v4717_v63 = vld [vmem:[%s5333_s19 + $0x53] sm:$0xff] }
 0x1cf   : > { %v1309_v21 = vpop.permute.xlu0 %1308  ;;  %v1311_v29 = vpop.permute.xlu1 %1310 }
 0x1d0   : > { %1401 = vst.msk [vmem:[#allocation2 + $0x20] sm:$0xff] %vm1396_vm6, %v1309_v21  ;;  %1402 = vst.msk [vmem:[#allocation2 + $0x28] sm:$0xff] %vm1396_vm6, %v1311_v29 }
 0x1d1   : > { %1553 = vrot.lane.b32.xlu0 %v4714_v15, %s5286_s26  ;;  %1555 = vrot.lane.b32.xlu1 %v4715_v18, %s5286_s26  ;;  %v4746_v15 = vld [vmem:[%s5333_s19 + $0x1b3] sm:$0xff]  ;;  %v4747_v18 = vld [vmem:[%s5333_s19 + $0x1bb] sm:$0xff] }
 0x1d3   : > { %v1313_v30 = vpop.permute.xlu0 %1312  ;;  %v1315_v42 = vpop.permute.xlu1 %1314 }
 0x1d4   : > { %1403 = vst.msk [vmem:[#allocation2 + $0x30] sm:$0xff] %vm1396_vm6, %v1313_v30  ;;  %1404 = vst.msk [vmem:[#allocation2 + $0x38] sm:$0xff] %vm1396_vm6, %v1315_v42  ;;  %v2219_v30 = vld [vmem:[%s5333_s19 + $0x18] sm:$0xff]  ;;  %v2220_v42 = vld [vmem:[%s5333_s19 + $0x20] sm:$0xff] }
 0x1d5   : > { %1686 = vrot.lane.b32.xlu0 %v4716_v60, %s5287_s10  ;;  %1688 = vrot.lane.b32.xlu1 %v4717_v63, %s5287_s10  ;;  %v2217_v60 = vld [vmem:[%s5333_s19] sm:$0xff]  ;;  %v2218_v63 = vld [vmem:[%s5333_s19 + $0x8] sm:$0xff] }
 0x1d7   : > { %v1317_v47 = vpop.permute.xlu0 %1316  ;;  %v1319_v50 = vpop.permute.xlu1 %1318 }
 0x1d8   : > { %1405 = vst.msk [vmem:[#allocation2 + $0x40] sm:$0xff] %vm1396_vm6, %v1317_v47  ;;  %1406 = vst.msk [vmem:[#allocation2 + $0x48] sm:$0xff] %vm1396_vm6, %v1319_v50  ;;  %v6427_v47 = vld [vmem:[%s5333_s19 + $0x30] sm:$0xff]  ;;  %v6430_v50 = vld [vmem:[%s5333_s19 + $0x38] sm:$0xff] }
 0x1d9   : > { %1690 = vrot.lane.b32.xlu0 %v4718_v43, %s5287_s10  ;;  %1692 = vrot.lane.b32.xlu1 %v4719_v46, %s5287_s10 }
 0x1db   : > { %v1321_v55 = vpop.permute.xlu0 %1320  ;;  %v1323_v12 = vpop.permute.xlu1 %1322 }
 0x1dc   : > { %1407 = vst.msk [vmem:[#allocation2 + $0x50] sm:$0xff] %vm1396_vm6, %v1321_v55  ;;  %1408 = vst.msk [vmem:[#allocation2 + $0x58] sm:$0xff] %vm1396_vm6, %v1323_v12  ;;  %v6439_v55 = vld [vmem:[%s5333_s19 + $0x48] sm:$0xff]  ;;  %v6442_v12 = vld [vmem:[%s5333_s19 + $0x50] sm:$0xff] }
 0x1dd   : > { %1694 = vrot.lane.b32.xlu0 %v4720_v51, %s5287_s10  ;;  %1696 = vrot.lane.b32.xlu1 %v4721_v54, %s5287_s10 }
 0x1df   : > { %v1325_v59 = vpop.permute.xlu0 %1324  ;;  %v1327_v1 = vpop.permute.xlu1 %1326 }
 0x1e0   : > { %1409 = vst.msk [vmem:[#allocation2 + $0x60] sm:$0xff] %vm1396_vm6, %v1325_v59  ;;  %1410 = vst.msk [vmem:[#allocation2 + $0x68] sm:$0xff] %vm1396_vm6, %v1327_v1  ;;  %v6451_v59 = vld [vmem:[%s5333_s19 + $0x60] sm:$0xff]  ;;  %v6454_v1 = vld [vmem:[%s5333_s19 + $0x68] sm:$0xff] }
 0x1e1   : > { %1698 = vrot.lane.b32.xlu0 %v4722_v16, %s5287_s10  ;;  %1700 = vrot.lane.b32.xlu1 %v4723_v58, %s5287_s10 }
 0x1e3   : > { %v1329_v6 = vpop.permute.xlu0 %1328  ;;  %v1331_v2 = vpop.permute.xlu1 %1330 }
 0x1e4   : > { %1411 = vst.msk [vmem:[#allocation2 + $0x70] sm:$0xff] %vm1396_vm6, %v1329_v6  ;;  %1412 = vst.msk [vmem:[#allocation2 + $0x78] sm:$0xff] %vm1396_vm6, %v1331_v2  ;;  %v6463_v6 = vld [vmem:[%s5333_s19 + $0x78] sm:$0xff]  ;;  %v6466_v2 = vld [vmem:[%s5333_s19 + $0x80] sm:$0xff] }
 0x1e5   : > { %1702 = vrot.lane.b32.xlu0 %v4724_v3, %s5287_s10  ;;  %1704 = vrot.lane.b32.xlu1 %v4725_v0, %s5287_s10 }
 0x1e7   : > { %v1333_v7 = vpop.permute.xlu0 %1332  ;;  %v1335_v8 = vpop.permute.xlu1 %1334 }
 0x1e8   : > { %1413 = vst.msk [vmem:[#allocation2 + $0x80] sm:$0xff] %vm1396_vm6, %v1333_v7  ;;  %1414 = vst.msk [vmem:[#allocation2 + $0x88] sm:$0xff] %vm1396_vm6, %v1335_v8  ;;  %v6475_v7 = vld [vmem:[%s5333_s19 + $0x90] sm:$0xff]  ;;  %v6478_v8 = vld [vmem:[%s5333_s19 + $0x98] sm:$0xff] }
 0x1e9   : > { %1706 = vrot.lane.b32.xlu0 %v4726_v61, %s5287_s10  ;;  %1708 = vrot.lane.b32.xlu1 %v4727_v62, %s5287_s10 }
 0x1eb   : > { %v1337_v20 = vpop.permute.xlu0 %1336  ;;  %v1339_v22 = vpop.permute.xlu1 %1338 }
 0x1ec   : > { %1415 = vst.msk [vmem:[#allocation2 + $0x90] sm:$0xff] %vm1396_vm6, %v1337_v20  ;;  %1416 = vst.msk [vmem:[#allocation2 + $0x98] sm:$0xff] %vm1396_vm6, %v1339_v22  ;;  %v6487_v20 = vld [vmem:[%s5333_s19 + $0xa8] sm:$0xff]  ;;  %v6490_v22 = vld [vmem:[%s5333_s19 + $0xb0] sm:$0xff] }
 0x1ed   : > { %1710 = vrot.lane.b32.xlu0 %v4728_v9, %s5287_s10  ;;  %1712 = vrot.lane.b32.xlu1 %v4729_v19, %s5287_s10 }
 0x1ef   : > { %v1341_v25 = vpop.permute.xlu0 %1340  ;;  %v1343_v26 = vpop.permute.xlu1 %1342 }
 0x1f0   : > { %1417 = vst.msk [vmem:[#allocation2 + $0xa0] sm:$0xff] %vm1396_vm6, %v1341_v25  ;;  %1418 = vst.msk [vmem:[#allocation2 + $0xa8] sm:$0xff] %vm1396_vm6, %v1343_v26  ;;  %v6499_v25 = vld [vmem:[%s5333_s19 + $0xc0] sm:$0xff]  ;;  %v6502_v26 = vld [vmem:[%s5333_s19 + $0xc8] sm:$0xff] }
 0x1f1   : > { %1714 = vrot.lane.b32.xlu0 %v4730_v23, %s5287_s10  ;;  %1716 = vrot.lane.b32.xlu1 %v4731_v24, %s5287_s10 }
 0x1f3   : > { %v1345_v31 = vpop.permute.xlu0 %1344  ;;  %v1347_v32 = vpop.permute.xlu1 %1346 }
 0x1f4   : > { %1419 = vst.msk [vmem:[#allocation2 + $0xb0] sm:$0xff] %vm1396_vm6, %v1345_v31  ;;  %1420 = vst.msk [vmem:[#allocation2 + $0xb8] sm:$0xff] %vm1396_vm6, %v1347_v32  ;;  %v6511_v31 = vld [vmem:[%s5333_s19 + $0xd8] sm:$0xff]  ;;  %v6514_v32 = vld [vmem:[%s5333_s19 + $0xe0] sm:$0xff] }
 0x1f5   : > { %1718 = vrot.lane.b32.xlu0 %v4732_v27, %s5287_s10  ;;  %1720 = vrot.lane.b32.xlu1 %v4733_v28, %s5287_s10 }
 0x1f7   : > { %v1349_v35 = vpop.permute.xlu0 %1348  ;;  %v1351_v36 = vpop.permute.xlu1 %1350 }
 0x1f8   : > { %1421 = vst.msk [vmem:[#allocation2 + $0xc0] sm:$0xff] %vm1396_vm6, %v1349_v35  ;;  %1422 = vst.msk [vmem:[#allocation2 + $0xc8] sm:$0xff] %vm1396_vm6, %v1351_v36  ;;  %v6523_v35 = vld [vmem:[%s5333_s19 + $0xf0] sm:$0xff]  ;;  %v6526_v36 = vld [vmem:[%s5333_s19 + $0xf8] sm:$0xff] }
 0x1f9   : > { %1722 = vrot.lane.b32.xlu0 %v4734_v33, %s5287_s10  ;;  %1724 = vrot.lane.b32.xlu1 %v4735_v34, %s5287_s10 }
 0x1fb   : > { %v1353_v39 = vpop.permute.xlu0 %1352  ;;  %v1355_v40 = vpop.permute.xlu1 %1354 }
 0x1fc   : > { %1423 = vst.msk [vmem:[#allocation2 + $0xd0] sm:$0xff] %vm1396_vm6, %v1353_v39  ;;  %1424 = vst.msk [vmem:[#allocation2 + $0xd8] sm:$0xff] %vm1396_vm6, %v1355_v40  ;;  %v6535_v39 = vld [vmem:[%s5333_s19 + $0x108] sm:$0xff]  ;;  %v6538_v40 = vld [vmem:[%s5333_s19 + $0x110] sm:$0xff] }
 0x1fd   : > { %1726 = vrot.lane.b32.xlu0 %v4736_v37, %s5287_s10  ;;  %1728 = vrot.lane.b32.xlu1 %v4737_v38, %s5287_s10 }
 0x1ff   : > { %v1357_v45 = vpop.permute.xlu0 %1356  ;;  %v1359_v48 = vpop.permute.xlu1 %1358 }
 0x200   : > { %1425 = vst.msk [vmem:[#allocation2 + $0xe0] sm:$0xff] %vm1396_vm6, %v1357_v45  ;;  %1426 = vst.msk [vmem:[#allocation2 + $0xe8] sm:$0xff] %vm1396_vm6, %v1359_v48  ;;  %v6547_v45 = vld [vmem:[%s5333_s19 + $0x120] sm:$0xff]  ;;  %v6550_v48 = vld [vmem:[%s5333_s19 + $0x128] sm:$0xff] }
 0x201   : > { %1730 = vrot.lane.b32.xlu0 %v4738_v41, %s5287_s10  ;;  %1732 = vrot.lane.b32.xlu1 %v4739_v44, %s5287_s10 }
 0x203   : > { %v1361_v53 = vpop.permute.xlu0 %1360  ;;  %v1363_v56 = vpop.permute.xlu1 %1362 }
 0x204   : > { %1427 = vst.msk [vmem:[#allocation2 + $0xf0] sm:$0xff] %vm1396_vm6, %v1361_v53  ;;  %1428 = vst.msk [vmem:[#allocation2 + $0xf8] sm:$0xff] %vm1396_vm6, %v1363_v56  ;;  %v2243_v53 = vld [vmem:[%s5333_s19 + $0x138] sm:$0xff]  ;;  %v2244_v56 = vld [vmem:[%s5333_s19 + $0x140] sm:$0xff] }
 0x205   : > { %1734 = vrot.lane.b32.xlu0 %v4740_v49, %s5287_s10  ;;  %1736 = vrot.lane.b32.xlu1 %v4741_v52, %s5287_s10 }
 0x207   : > { %v1494_v11 = vpop.permute.xlu0 %1493  ;;  %v1496_v13 = vpop.permute.xlu1 %1495 }
 0x208   : > { %1590 = vst.msk [vmem:[#allocation2] sm:$0xff] %vm1589_vm8, %v1494_v11  ;;  %1591 = vst.msk [vmem:[#allocation2 + $0x8] sm:$0xff] %vm1589_vm8, %v1496_v13  ;;  %v2245_v11 = vld [vmem:[%s5333_s19 + $0x150] sm:$0xff]  ;;  %v2246_v13 = vld [vmem:[%s5333_s19 + $0x158] sm:$0xff] }
 0x209   : > { %1738 = vrot.lane.b32.xlu0 %v4742_v10, %s5287_s10  ;;  %1740 = vrot.lane.b32.xlu1 %v4743_v57, %s5287_s10 }
 0x20b   : > { %v1498_v17 = vpop.permute.xlu0 %1497  ;;  %v1500_v14 = vpop.permute.xlu1 %1499 }
 0x20c   : > { %1592 = vst.msk [vmem:[#allocation2 + $0x10] sm:$0xff] %vm1589_vm8, %v1498_v17  ;;  %1593 = vst.msk [vmem:[#allocation2 + $0x18] sm:$0xff] %vm1589_vm8, %v1500_v14 }
 0x20d   : > { %1742 = vrot.lane.b32.xlu0 %v6098_v4, %s5287_s10  ;;  %1744 = vrot.lane.b32.xlu1 %v6101_v5, %s5287_s10 }
 0x20f   : > { %v1502_v21 = vpop.permute.xlu0 %1501  ;;  %v1504_v29 = vpop.permute.xlu1 %1503 }
 0x210   : > { %1594 = vst.msk [vmem:[#allocation2 + $0x20] sm:$0xff] %vm1589_vm8, %v1502_v21  ;;  %1595 = vst.msk [vmem:[#allocation2 + $0x28] sm:$0xff] %vm1589_vm8, %v1504_v29 }
 0x211   : > { %1746 = vrot.lane.b32.xlu0 %v4746_v15, %s5287_s10  ;;  %1748 = vrot.lane.b32.xlu1 %v4747_v18, %s5287_s10  ;;  %v2247_v15 = vld [vmem:[%s5333_s19 + $0x168] sm:$0xff] }
 0x213   : > { %v1506_v4 = vpop.permute.xlu0 %1505  ;;  %v1508_v5 = vpop.permute.xlu1 %1507 }
 0x214   : > { %1596 = vst.msk [vmem:[#allocation2 + $0x30] sm:$0xff] %vm1589_vm8, %v1506_v4  ;;  %1597 = vst.msk [vmem:[#allocation2 + $0x38] sm:$0xff] %vm1589_vm8, %v1508_v5  ;;  %v2473_v4 = vld [vmem:[%s5333_s19 + $0x4] sm:$0xff] }
 0x215   : > { %2281 = vrot.lane.b32.xlu0 %v2217_v60, %s5288_s11  ;;  %2283 = vrot.lane.b32.xlu1 %v2218_v63, %s5288_s11  ;;  %v2248_v63 = vld [vmem:[%s5333_s19 + $0x170] sm:$0xff] }
 0x217   : > { %v1510_v43 = vpop.permute.xlu0 %1509  ;;  %v1512_v46 = vpop.permute.xlu1 %1511 }
 0x218   : > { %1598 = vst.msk [vmem:[#allocation2 + $0x40] sm:$0xff] %vm1589_vm8, %v1510_v43  ;;  %1599 = vst.msk [vmem:[#allocation2 + $0x48] sm:$0xff] %vm1589_vm8, %v1512_v46  ;;  %v2474_v46 = vld [vmem:[%s5333_s19 + $0xc] sm:$0xff] }
 0x219   : > { %2285 = vrot.lane.b32.xlu0 %v2219_v30, %s5288_s11  ;;  %2287 = vrot.lane.b32.xlu1 %v2220_v42, %s5288_s11 }
 0x21b   : > { %v1514_v51 = vpop.permute.xlu0 %1513  ;;  %v1516_v54 = vpop.permute.xlu1 %1515 }
 0x21c   : > { %1600 = vst.msk [vmem:[#allocation2 + $0x50] sm:$0xff] %vm1589_vm8, %v1514_v51  ;;  %1601 = vst.msk [vmem:[#allocation2 + $0x58] sm:$0xff] %vm1589_vm8, %v1516_v54  ;;  %v2475_v51 = vld [vmem:[%s5333_s19 + $0x1c] sm:$0xff] }
 0x21d   : > { %2289 = vrot.lane.b32.xlu0 %v6427_v47, %s5288_s11  ;;  %2291 = vrot.lane.b32.xlu1 %v6430_v50, %s5288_s11 }
 0x21f   : > { %v1518_v16 = vpop.permute.xlu0 %1517  ;;  %v1520_v58 = vpop.permute.xlu1 %1519 }
 0x220   : > { %1602 = vst.msk [vmem:[#allocation2 + $0x60] sm:$0xff] %vm1589_vm8, %v1518_v16  ;;  %1603 = vst.msk [vmem:[#allocation2 + $0x68] sm:$0xff] %vm1589_vm8, %v1520_v58 }
 0x221   : > { %2293 = vrot.lane.b32.xlu0 %v6439_v55, %s5288_s11  ;;  %2295 = vrot.lane.b32.xlu1 %v6442_v12, %s5288_s11 }
 0x223   : > { %v1522_v3 = vpop.permute.xlu0 %1521  ;;  %v1524_v0 = vpop.permute.xlu1 %1523 }
 0x224   : > { %1604 = vst.msk [vmem:[#allocation2 + $0x70] sm:$0xff] %vm1589_vm8, %v1522_v3  ;;  %1605 = vst.msk [vmem:[#allocation2 + $0x78] sm:$0xff] %vm1589_vm8, %v1524_v0  ;;  %v2476_v0 = vld [vmem:[%s5333_s19 + $0x24] sm:$0xff] }
 0x225   : > { %2297 = vrot.lane.b32.xlu0 %v6451_v59, %s5288_s11  ;;  %2299 = vrot.lane.b32.xlu1 %v6454_v1, %s5288_s11 }
 0x227   : > { %v1526_v61 = vpop.permute.xlu0 %1525  ;;  %v1528_v62 = vpop.permute.xlu1 %1527 }
 0x228   : > { %1606 = vst.msk [vmem:[#allocation2 + $0x80] sm:$0xff] %vm1589_vm8, %v1526_v61  ;;  %1607 = vst.msk [vmem:[#allocation2 + $0x88] sm:$0xff] %vm1589_vm8, %v1528_v62  ;;  %v6595_v61 = vld [vmem:[%s5333_s19 + $0x34] sm:$0xff] }
 0x229   : > { %2301 = vrot.lane.b32.xlu0 %v6463_v6, %s5288_s11  ;;  %2303 = vrot.lane.b32.xlu1 %v6466_v2, %s5288_s11 }
 0x22b   : > { %v1530_v9 = vpop.permute.xlu0 %1529  ;;  %v1532_v19 = vpop.permute.xlu1 %1531 }
 0x22c   : > { %1608 = vst.msk [vmem:[#allocation2 + $0x90] sm:$0xff] %vm1589_vm8, %v1530_v9  ;;  %1609 = vst.msk [vmem:[#allocation2 + $0x98] sm:$0xff] %vm1589_vm8, %v1532_v19 }
 0x22d   : > { %2305 = vrot.lane.b32.xlu0 %v6475_v7, %s5288_s11  ;;  %2307 = vrot.lane.b32.xlu1 %v6478_v8, %s5288_s11 }
 0x22f   : > { %v1534_v23 = vpop.permute.xlu0 %1533  ;;  %v1536_v24 = vpop.permute.xlu1 %1535 }
 0x230   : > { %1610 = vst.msk [vmem:[#allocation2 + $0xa0] sm:$0xff] %vm1589_vm8, %v1534_v23  ;;  %1611 = vst.msk [vmem:[#allocation2 + $0xa8] sm:$0xff] %vm1589_vm8, %v1536_v24  ;;  %v6598_v24 = vld [vmem:[%s5333_s19 + $0x3c] sm:$0xff] }
 0x231   : > { %2309 = vrot.lane.b32.xlu0 %v6487_v20, %s5288_s11  ;;  %2311 = vrot.lane.b32.xlu1 %v6490_v22, %s5288_s11 }
 0x233   : > { %v1538_v27 = vpop.permute.xlu0 %1537  ;;  %v1540_v28 = vpop.permute.xlu1 %1539 }
 0x234   : > { %1612 = vst.msk [vmem:[#allocation2 + $0xb0] sm:$0xff] %vm1589_vm8, %v1538_v27  ;;  %1613 = vst.msk [vmem:[#allocation2 + $0xb8] sm:$0xff] %vm1589_vm8, %v1540_v28  ;;  %v6609_v27 = vld [vmem:[%s5333_s19 + $0x4c] sm:$0xff] }
 0x235   : > { %2313 = vrot.lane.b32.xlu0 %v6499_v25, %s5288_s11  ;;  %2315 = vrot.lane.b32.xlu1 %v6502_v26, %s5288_s11 }
 0x237   : > { %v1542_v33 = vpop.permute.xlu0 %1541  ;;  %v1544_v34 = vpop.permute.xlu1 %1543 }
 0x238   : > { %1614 = vst.msk [vmem:[#allocation2 + $0xc0] sm:$0xff] %vm1589_vm8, %v1542_v33  ;;  %1615 = vst.msk [vmem:[#allocation2 + $0xc8] sm:$0xff] %vm1589_vm8, %v1544_v34 }
 0x239   : > { %2317 = vrot.lane.b32.xlu0 %v6511_v31, %s5288_s11  ;;  %2319 = vrot.lane.b32.xlu1 %v6514_v32, %s5288_s11 }
 0x23b   : > { %v1546_v37 = vpop.permute.xlu0 %1545  ;;  %v1548_v38 = vpop.permute.xlu1 %1547 }
 0x23c   : > { %1616 = vst.msk [vmem:[#allocation2 + $0xd0] sm:$0xff] %vm1589_vm8, %v1546_v37  ;;  %1617 = vst.msk [vmem:[#allocation2 + $0xd8] sm:$0xff] %vm1589_vm8, %v1548_v38  ;;  %v6612_v38 = vld [vmem:[%s5333_s19 + $0x54] sm:$0xff] }
 0x23d   : > { %2321 = vrot.lane.b32.xlu0 %v6523_v35, %s5288_s11  ;;  %2323 = vrot.lane.b32.xlu1 %v6526_v36, %s5288_s11 }
 0x23f   : > { %v1550_v41 = vpop.permute.xlu0 %1549  ;;  %v1552_v44 = vpop.permute.xlu1 %1551 }
 0x240   : > { %1618 = vst.msk [vmem:[#allocation2 + $0xe0] sm:$0xff] %vm1589_vm8, %v1550_v41  ;;  %1619 = vst.msk [vmem:[#allocation2 + $0xe8] sm:$0xff] %vm1589_vm8, %v1552_v44  ;;  %v6623_v41 = vld [vmem:[%s5333_s19 + $0x64] sm:$0xff] }
 0x241   : > { %2325 = vrot.lane.b32.xlu0 %v6535_v39, %s5288_s11  ;;  %2327 = vrot.lane.b32.xlu1 %v6538_v40, %s5288_s11 }
 0x243   : > { %v1554_v49 = vpop.permute.xlu0 %1553  ;;  %v1556_v52 = vpop.permute.xlu1 %1555 }
 0x244   : > { %1620 = vst.msk [vmem:[#allocation2 + $0xf0] sm:$0xff] %vm1589_vm8, %v1554_v49  ;;  %1621 = vst.msk [vmem:[#allocation2 + $0xf8] sm:$0xff] %vm1589_vm8, %v1556_v52 }
 0x245   : > { %2329 = vrot.lane.b32.xlu0 %v6547_v45, %s5288_s11  ;;  %2331 = vrot.lane.b32.xlu1 %v6550_v48, %s5288_s11 }
 0x247   : > { %v1687_v10 = vpop.permute.xlu0 %1686  ;;  %v1689_v57 = vpop.permute.xlu1 %1688 }
 0x248   : > { %1783 = vst.msk [vmem:[#allocation2] sm:$0xff] %vm1782_vm9, %v1687_v10  ;;  %1784 = vst.msk [vmem:[#allocation2 + $0x8] sm:$0xff] %vm1782_vm9, %v1689_v57  ;;  %v6637_v10 = vld [vmem:[%s5333_s19 + $0x7c] sm:$0xff] }
 0x249   : > { %2333 = vrot.lane.b32.xlu0 %v2243_v53, %s5288_s11  ;;  %2335 = vrot.lane.b32.xlu1 %v2244_v56, %s5288_s11  ;;  %v6626_v56 = vld [vmem:[%s5333_s19 + $0x6c] sm:$0xff] }
 0x24b   : > { %v1691_v17 = vpop.permute.xlu0 %1690  ;;  %v1693_v14 = vpop.permute.xlu1 %1692 }
 0x24c   : > { %1785 = vst.msk [vmem:[#allocation2 + $0x10] sm:$0xff] %vm1782_vm9, %v1691_v17  ;;  %1786 = vst.msk [vmem:[#allocation2 + $0x18] sm:$0xff] %vm1782_vm9, %v1693_v14  ;;  %v6640_v14 = vld [vmem:[%s5333_s19 + $0x84] sm:$0xff] }
 0x24d   : > { %2337 = vrot.lane.b32.xlu0 %v2245_v11, %s5288_s11  ;;  %2339 = vrot.lane.b32.xlu1 %v2246_v13, %s5288_s11 }
 0x24f   : > { %v1695_v18 = vpop.permute.xlu0 %1694  ;;  %v1697_v21 = vpop.permute.xlu1 %1696  ;;  %v1815_v29 = vld [vmem:[#allocation2] sm:$0xff]  ;;  %v1816_v60 = vld [vmem:[#allocation2 + $0x8] sm:$0xff] }
 0x250   : > { %1787 = vst.msk [vmem:[#allocation2 + $0x20] sm:$0xff] %vm1782_vm9, %v1695_v18  ;;  %1788 = vst.msk [vmem:[#allocation2 + $0x28] sm:$0xff] %vm1782_vm9, %v1697_v21  ;;  %5100 = vmatprep.mubr.msk.f32.mxu0 %vm1857_vm10, %v1815_v29 }
 0x251   : > { %2341 = vrot.lane.b32.xlu0 %v2247_v15, %s5288_s11  ;;  %5101 = vmatmul.mubr.msk.f32.vlgmr.msra.gmra.mrb[0].mxu0 %vm1857_vm10, %v1816_v60  ;;  %v6651_v15 = vld [vmem:[%s5333_s19 + $0x94] sm:$0xff] }
 0x252   : > { %2343 = vrot.lane.b32.xlu1 %v2248_v63, %s5288_s11  ;;  %v6654_v63 = vld [vmem:[%s5333_s19 + $0x9c] sm:$0xff] }
 0x253   : > { %v1699_v5 = vpop.permute.xlu0 %1698  ;;  %v1701_v30 = vpop.permute.xlu1 %1700  ;;  %v1817_v42 = vld [vmem:[#allocation2 + $0x10] sm:$0xff]  ;;  %v1818_v43 = vld [vmem:[#allocation2 + $0x18] sm:$0xff] }
 0x254   : > { %1789 = vst.msk [vmem:[#allocation2 + $0x30] sm:$0xff] %vm1782_vm9, %v1699_v5  ;;  %1790 = vst.msk [vmem:[#allocation2 + $0x38] sm:$0xff] %vm1782_vm9, %v1701_v30  ;;  %5103 = vmatprep.mubr.msk.f32.mxu0 %vm1857_vm10, %v1817_v42 }
 0x255   : > { %2537 = vrot.lane.b32.xlu0 %v2473_v4, %s5280_s20  ;;  %5104 = vmatmul.mubr.msk.f32.gmra.mrb[2].mxu0 %vm1857_vm10, %v1818_v43  ;;  %v6665_v4 = vld [vmem:[%s5333_s19 + $0xac] sm:$0xff] }
 0x256   : > { %2539 = vrot.lane.b32.xlu1 %v2474_v46, %s5280_s20  ;;  %v6668_v46 = vld [vmem:[%s5333_s19 + $0xb4] sm:$0xff] }
 0x257   : > { %v1703_v54 = vpop.permute.xlu0 %1702  ;;  %v1705_v16 = vpop.permute.xlu1 %1704  ;;  %v1819_v58 = vld [vmem:[#allocation2 + $0x20] sm:$0xff]  ;;  %v1820_v3 = vld [vmem:[#allocation2 + $0x28] sm:$0xff] }
 0x258   : > { %1791 = vst.msk [vmem:[#allocation2 + $0x40] sm:$0xff] %vm1782_vm9, %v1703_v54  ;;  %1792 = vst.msk [vmem:[#allocation2 + $0x48] sm:$0xff] %vm1782_vm9, %v1705_v16  ;;  %5106 = vmatprep.mubr.msk.f32.mxu0 %vm1857_vm10, %v1819_v58 }
 0x259   : > { %2541 = vrot.lane.b32.xlu0 %v2475_v51, %s5280_s20  ;;  %5107 = vmatmul.mubr.msk.f32.gmra.mrb[4].mxu0 %vm1857_vm10, %v1820_v3  ;;  %v6679_v51 = vld [vmem:[%s5333_s19 + $0xc4] sm:$0xff] }
 0x25a   : > { %2543 = vrot.lane.b32.xlu1 %v2476_v0, %s5280_s20  ;;  %v6682_v0 = vld [vmem:[%s5333_s19 + $0xcc] sm:$0xff] }
 0x25b   : > { %v1707_v62 = vpop.permute.xlu0 %1706  ;;  %v1709_v9 = vpop.permute.xlu1 %1708  ;;  %v1821_v19 = vld [vmem:[#allocation2 + $0x30] sm:$0xff]  ;;  %v1822_v23 = vld [vmem:[#allocation2 + $0x38] sm:$0xff] }
 0x25c   : > { %1793 = vst.msk [vmem:[#allocation2 + $0x50] sm:$0xff] %vm1782_vm9, %v1707_v62  ;;  %1794 = vst.msk [vmem:[#allocation2 + $0x58] sm:$0xff] %vm1782_vm9, %v1709_v9  ;;  %5109 = vmatprep.mubr.msk.f32.mxu0 %vm1857_vm10, %v1821_v19  ;;  %v6693_v62 = vld [vmem:[%s5333_s19 + $0xdc] sm:$0xff] }
 0x25d   : > { %2545 = vrot.lane.b32.xlu0 %v6595_v61, %s5280_s20  ;;  %5110 = vmatmul.mubr.msk.f32.gmra.mrb[6].mxu0 %vm1857_vm10, %v1822_v23 }
 0x25e   : > { %2547 = vrot.lane.b32.xlu1 %v6598_v24, %s5280_s20 }
 0x25f   : > { %v1711_v28 = vpop.permute.xlu0 %1710  ;;  %v1713_v33 = vpop.permute.xlu1 %1712  ;;  %v1823_v34 = vld [vmem:[#allocation2 + $0x40] sm:$0xff]  ;;  %v1824_v37 = vld [vmem:[#allocation2 + $0x48] sm:$0xff] }
 0x260   : > { %1795 = vst.msk [vmem:[#allocation2 + $0x60] sm:$0xff] %vm1782_vm9, %v1711_v28  ;;  %1796 = vst.msk [vmem:[#allocation2 + $0x68] sm:$0xff] %vm1782_vm9, %v1713_v33  ;;  %5112 = vmatprep.mubr.msk.f32.mxu0 %vm1857_vm10, %v1823_v34  ;;  %v2492_v33 = vld [vmem:[%s5333_s19 + $0xe4] sm:$0xff]  ;;  %v2493_v34 = vld [vmem:[%s5333_s19 + $0xf4] sm:$0xff] }
 0x261   : > { %2549 = vrot.lane.b32.xlu0 %v6609_v27, %s5280_s20  ;;  %5113 = vmatmul.mubr.msk.f32.gmra.mrb[8].mxu0 %vm1857_vm10, %v1824_v37 }
 0x262   : > { %2551 = vrot.lane.b32.xlu1 %v6612_v38, %s5280_s20 }
 0x263   : > { %v1715_v44 = vpop.permute.xlu0 %1714  ;;  %v1717_v49 = vpop.permute.xlu1 %1716  ;;  %v1825_v52 = vld [vmem:[#allocation2 + $0x50] sm:$0xff]  ;;  %v1826_v53 = vld [vmem:[#allocation2 + $0x58] sm:$0xff] }
 0x264   : > { %1797 = vst.msk [vmem:[#allocation2 + $0x70] sm:$0xff] %vm1782_vm9, %v1715_v44  ;;  %1798 = vst.msk [vmem:[#allocation2 + $0x78] sm:$0xff] %vm1782_vm9, %v1717_v49  ;;  %5115 = vmatprep.mubr.msk.f32.mxu0 %vm1857_vm10, %v1825_v52 }
 0x265   : > { %2553 = vrot.lane.b32.xlu0 %v6623_v41, %s5280_s20  ;;  %5116 = vmatmul.mubr.msk.f32.gmra.mrb[10].mxu0 %vm1857_vm10, %v1826_v53  ;;  %v2494_v53 = vld [vmem:[%s5333_s19 + $0xfc] sm:$0xff] }
 0x266   : > { %2555 = vrot.lane.b32.xlu1 %v6626_v56, %s5280_s20 }
 0x267   : > { %v1719_v57 = vpop.permute.xlu0 %1718  ;;  %v1721_v11 = vpop.permute.xlu1 %1720  ;;  %v1827_v13 = vld [vmem:[#allocation2 + $0x60] sm:$0xff]  ;;  %v1828_v17 = vld [vmem:[#allocation2 + $0x68] sm:$0xff] }
 0x268   : > { %1799 = vst.msk [vmem:[#allocation2 + $0x80] sm:$0xff] %vm1782_vm9, %v1719_v57  ;;  %1800 = vst.msk [vmem:[#allocation2 + $0x88] sm:$0xff] %vm1782_vm9, %v1721_v11  ;;  %5118 = vmatprep.mubr.msk.f32.mxu0 %vm1857_vm10, %v1827_v13  ;;  %v2495_v57 = vld [vmem:[%s5333_s19 + $0x10c] sm:$0xff] }
 0x269   : > { %2557 = vrot.lane.b32.xlu0 %v6637_v10, %s5280_s20  ;;  %5119 = vmatmul.mubr.msk.f32.gmra.mrb[12].mxu0 %vm1857_vm10, %v1828_v17 }
 0x26a   : > { %2559 = vrot.lane.b32.xlu1 %v6640_v14, %s5280_s20 }
 0x26b   : > { %v1723_v18 = vpop.permute.xlu0 %1722  ;;  %v1725_v21 = vpop.permute.xlu1 %1724  ;;  %v1829_v29 = vld [vmem:[#allocation2 + $0x70] sm:$0xff]  ;;  %v1830_v60 = vld [vmem:[#allocation2 + $0x78] sm:$0xff] }
 0x26c   : > { %1801 = vst.msk [vmem:[#allocation2 + $0x90] sm:$0xff] %vm1782_vm9, %v1723_v18  ;;  %1802 = vst.msk [vmem:[#allocation2 + $0x98] sm:$0xff] %vm1782_vm9, %v1725_v21  ;;  %5121 = vmatprep.mubr.msk.f32.mxu0 %vm1857_vm10, %v1829_v29  ;;  %v2496_v21 = vld [vmem:[%s5333_s19 + $0x114] sm:$0xff]  ;;  %v2497_v29 = vld [vmem:[%s5333_s19 + $0x124] sm:$0xff] }
 0x26d   : > { %2561 = vrot.lane.b32.xlu0 %v6651_v15, %s5280_s20  ;;  %5122 = vmatmul.mubr.msk.f32.gmra.mrb[14].mxu0 %vm1857_vm10, %v1830_v60 }
 0x26e   : > { %2563 = vrot.lane.b32.xlu1 %v6654_v63, %s5280_s20 }
 0x26f   : > { %v1727_v5 = vpop.permute.xlu0 %1726  ;;  %v1729_v30 = vpop.permute.xlu1 %1728  ;;  %v1831_v42 = vld [vmem:[#allocation2 + $0x80] sm:$0xff]  ;;  %v1832_v43 = vld [vmem:[#allocation2 + $0x88] sm:$0xff] }
 0x270   : > { %1803 = vst.msk [vmem:[#allocation2 + $0xa0] sm:$0xff] %vm1782_vm9, %v1727_v5  ;;  %1804 = vst.msk [vmem:[#allocation2 + $0xa8] sm:$0xff] %vm1782_vm9, %v1729_v30  ;;  %5124 = vmatprep.mubr.msk.f32.mxu0 %vm1857_vm10, %v1831_v42 }
 0x271   : > { %2565 = vrot.lane.b32.xlu0 %v6665_v4, %s5280_s20  ;;  %5125 = vmatmul.mubr.msk.f32.gmra.mrb[16].mxu0 %vm1857_vm10, %v1832_v43  ;;  %v2498_v43 = vld [vmem:[%s5333_s19 + $0x12c] sm:$0xff] }
 0x272   : > { %2567 = vrot.lane.b32.xlu1 %v6668_v46, %s5280_s20 }
 0x273   : > { %v1731_v54 = vpop.permute.xlu0 %1730  ;;  %v1733_v16 = vpop.permute.xlu1 %1732  ;;  %v1833_v58 = vld [vmem:[#allocation2 + $0x90] sm:$0xff]  ;;  %v1834_v3 = vld [vmem:[#allocation2 + $0x98] sm:$0xff] }
 0x274   : > { %1805 = vst.msk [vmem:[#allocation2 + $0xb0] sm:$0xff] %vm1782_vm9, %v1731_v54  ;;  %1806 = vst.msk [vmem:[#allocation2 + $0xb8] sm:$0xff] %vm1782_vm9, %v1733_v16  ;;  %5127 = vmatprep.mubr.msk.f32.mxu0 %vm1857_vm10, %v1833_v58  ;;  %v2499_v54 = vld [vmem:[%s5333_s19 + $0x13c] sm:$0xff]  ;;  %v2410_v58 = vld [vmem:[%s5333_s19 + $0xa] sm:$0xff] }
 0x275   : > { %2569 = vrot.lane.b32.xlu0 %v6679_v51, %s5280_s20  ;;  %5128 = vmatmul.mubr.msk.f32.gmra.mrb[18].mxu0 %vm1857_vm10, %v1834_v3  ;;  %v2409_v16 = vld [vmem:[%s5333_s19 + $0x2] sm:$0xff] }
 0x276   : > { %2571 = vrot.lane.b32.xlu1 %v6682_v0, %s5280_s20 }
 0x277   : > { %v1735_v9 = vpop.permute.xlu0 %1734  ;;  %v1737_v19 = vpop.permute.xlu1 %1736  ;;  %v1835_v23 = vld [vmem:[#allocation2 + $0xa0] sm:$0xff]  ;;  %v1836_v28 = vld [vmem:[#allocation2 + $0xa8] sm:$0xff] }
 0x278   : > { %1807 = vst.msk [vmem:[#allocation2 + $0xc0] sm:$0xff] %vm1782_vm9, %v1735_v9  ;;  %1808 = vst.msk [vmem:[#allocation2 + $0xc8] sm:$0xff] %vm1782_vm9, %v1737_v19  ;;  %5130 = vmatprep.mubr.msk.f32.mxu0 %vm1857_vm10, %v1835_v23 }
 0x279   : > { %2573 = vrot.lane.b32.xlu0 %v6693_v62, %s5280_s20  ;;  %5131 = vmatmul.mubr.msk.f32.gmra.mrb[20].mxu0 %vm1857_vm10, %v1836_v28  ;;  %v2500_v28 = vld [vmem:[%s5333_s19 + $0x144] sm:$0xff] }
 0x27a   : > { %2575 = vrot.lane.b32.xlu1 %v2492_v33, %s5280_s20  ;;  %v2501_v33 = vld [vmem:[%s5333_s19 + $0x154] sm:$0xff] }
 0x27b   : > { %v1739_v37 = vpop.permute.xlu0 %1738  ;;  %v1741_v44 = vpop.permute.xlu1 %1740  ;;  %v1837_v49 = vld [vmem:[#allocation2 + $0xb0] sm:$0xff]  ;;  %v1838_v52 = vld [vmem:[#allocation2 + $0xb8] sm:$0xff] }
 0x27c   : > { %1809 = vst.msk [vmem:[#allocation2 + $0xd0] sm:$0xff] %vm1782_vm9, %v1739_v37  ;;  %1810 = vst.msk [vmem:[#allocation2 + $0xd8] sm:$0xff] %vm1782_vm9, %v1741_v44  ;;  %5133 = vmatprep.mubr.msk.f32.mxu0 %vm1857_vm10, %v1837_v49  ;;  %v2412_v37 = vld [vmem:[%s5333_s19 + $0x22] sm:$0xff] }
 0x27d   : > { %2577 = vrot.lane.b32.xlu0 %v2493_v34, %s5280_s20  ;;  %5134 = vmatmul.mubr.msk.f32.gmra.mrb[22].mxu0 %vm1857_vm10, %v1838_v52  ;;  %v2411_v34 = vld [vmem:[%s5333_s19 + $0x1a] sm:$0xff] }
 0x27e   : > { %2579 = vrot.lane.b32.xlu1 %v2494_v53, %s5280_s20 }
 0x27f   : > { %v1743_v11 = vpop.permute.xlu0 %1742  ;;  %v1745_v13 = vpop.permute.xlu1 %1744  ;;  %v1839_v17 = vld [vmem:[#allocation2 + $0xc0] sm:$0xff]  ;;  %v1840_v18 = vld [vmem:[#allocation2 + $0xc8] sm:$0xff] }
 0x280   : > { %1811 = vst.msk [vmem:[#allocation2 + $0xe0] sm:$0xff] %vm1782_vm9, %v1743_v11  ;;  %1812 = vst.msk [vmem:[#allocation2 + $0xe8] sm:$0xff] %vm1782_vm9, %v1745_v13  ;;  %5136 = vmatprep.mubr.msk.f32.mxu0 %vm1857_vm10, %v1839_v17  ;;  %v2503_v11 = vld [vmem:[%s5333_s19 + $0x16c] sm:$0xff] }
 0x281   : > { %2581 = vrot.lane.b32.xlu0 %v2495_v57, %s5280_s20  ;;  %5137 = vmatmul.mubr.msk.f32.gmra.mrb[24].mxu0 %vm1857_vm10, %v1840_v18  ;;  %v2502_v57 = vld [vmem:[%s5333_s19 + $0x15c] sm:$0xff]  ;;  %v2504_v18 = vld [vmem:[%s5333_s19 + $0x174] sm:$0xff] }
 0x282   : > { %2583 = vrot.lane.b32.xlu1 %v2496_v21, %s5280_s20  ;;  %v6756_v21 = vld [vmem:[%s5333_s19 + $0x32] sm:$0xff] }
 0x283   : > { %v1747_v60 = vpop.permute.xlu0 %1746  ;;  %v1749_v5 = vpop.permute.xlu1 %1748  ;;  %v1841_v30 = vld [vmem:[#allocation2 + $0xd0] sm:$0xff]  ;;  %v1842_v42 = vld [vmem:[#allocation2 + $0xd8] sm:$0xff] }
 0x284   : > { %1813 = vst.msk [vmem:[#allocation2 + $0xf0] sm:$0xff] %vm1782_vm9, %v1747_v60  ;;  %1814 = vst.msk [vmem:[#allocation2 + $0xf8] sm:$0xff] %vm1782_vm9, %v1749_v5  ;;  %5139 = vmatprep.mubr.msk.f32.mxu0 %vm1857_vm10, %v1841_v30  ;;  %v6768_v60 = vld [vmem:[%s5333_s19 + $0x52] sm:$0xff] }
 0x285   : > { %2585 = vrot.lane.b32.xlu0 %v2497_v29, %s5280_s20  ;;  %5140 = vmatmul.mubr.msk.f32.gmra.mrb[26].mxu0 %vm1857_vm10, %v1842_v42  ;;  %v6759_v29 = vld [vmem:[%s5333_s19 + $0x3a] sm:$0xff]  ;;  %v6773_v42 = vld [vmem:[%s5333_s19 + $0x4a] sm:$0xff] }
 0x286   : > { %2587 = vrot.lane.b32.xlu1 %v2498_v43, %s5280_s20 }
 0x287   : > { %v2282_v3 = vpop.permute.xlu0 %2281  ;;  %v2284_v9 = vpop.permute.xlu1 %2283  ;;  %v1843_v19 = vld [vmem:[#allocation2 + $0xe0] sm:$0xff]  ;;  %v1844_v23 = vld [vmem:[#allocation2 + $0xe8] sm:$0xff] }
 0x288   : > { %2377 = vst.msk [vmem:[#allocation2] sm:$0xff] %vm232_vm0, %v2282_v3  ;;  %2378 = vst.msk [vmem:[#allocation2 + $0x8] sm:$0xff] %vm232_vm0, %v2284_v9  ;;  %5142 = vmatprep.mubr.msk.f32.mxu0 %vm1857_vm10, %v1843_v19 }
 0x289   : > { %2589 = vrot.lane.b32.xlu0 %v2499_v54, %s5280_s20  ;;  %5143 = vmatmul.mubr.msk.f32.gmra.mrb[28].mxu0 %vm1857_vm10, %v1844_v23  ;;  %2441 = vst.msk [vmem:[#allocation2] sm:$0xff] %vm425_vm1, %v2409_v16  ;;  %2442 = vst.msk [vmem:[#allocation2 + $0x8] sm:$0xff] %vm425_vm1, %v2410_v58  ;;  %v6786_v16 = vld [vmem:[%s5333_s19 + $0x62] sm:$0xff]  ;;  %v6789_v58 = vld [vmem:[%s5333_s19 + $0x6a] sm:$0xff] }
 0x28a   : > { %2591 = vrot.lane.b32.xlu1 %v2500_v28, %s5280_s20  ;;  %v6832_v28 = vld [vmem:[%s5333_s19 + $0xaa] sm:$0xff] }
 0x28b   : > { %v2286_v44 = vpop.permute.xlu0 %2285  ;;  %v2288_v49 = vpop.permute.xlu1 %2287  ;;  %v1845_v52 = vld [vmem:[#allocation2 + $0xf0] sm:$0xff]  ;;  %v1846_v53 = vld [vmem:[#allocation2 + $0xf8] sm:$0xff] }
 0x28c   : > { %2379 = vst.msk [vmem:[#allocation2 + $0x10] sm:$0xff] %vm232_vm0, %v2286_v44  ;;  %2380 = vst.msk [vmem:[#allocation2 + $0x18] sm:$0xff] %vm232_vm0, %v2288_v49  ;;  %5145 = vmatprep.mubr.msk.f32.mxu0 %vm1857_vm10, %v1845_v52  ;;  %v6848_v44 = vld [vmem:[%s5333_s19 + $0xc2] sm:$0xff]  ;;  %v6851_v49 = vld [vmem:[%s5333_s19 + $0xca] sm:$0xff] }
 0x28d   : > { %2593 = vrot.lane.b32.xlu0 %v2501_v33, %s5280_s20  ;;  %5146 = vmatmul.mubr.msk.f32.gmra.mrb[30].mxu0 %vm1857_vm10, %v1846_v53  ;;  %2443 = vst.msk [vmem:[#allocation2 + $0x10] sm:$0xff] %vm425_vm1, %v2411_v34  ;;  %2444 = vst.msk [vmem:[#allocation2 + $0x18] sm:$0xff] %vm425_vm1, %v2412_v37  ;;  %v6835_v33 = vld [vmem:[%s5333_s19 + $0xb2] sm:$0xff] }
 0x28e   : > { %2595 = vrot.lane.b32.xlu1 %v2502_v57, %s5280_s20 }
 0x28f   : > { %v2290_v13 = vpop.permute.xlu0 %2289  ;;  %v2292_v17 = vpop.permute.xlu1 %2291 }
 0x290   : > { %2381 = vst.msk [vmem:[#allocation2 + $0x20] sm:$0xff] %vm232_vm0, %v2290_v13  ;;  %2382 = vst.msk [vmem:[#allocation2 + $0x28] sm:$0xff] %vm232_vm0, %v2292_v17 }
 0x291   : > { %2597 = vrot.lane.b32.xlu0 %v2503_v11, %s5280_s20  ;;  %2445 = vst.msk [vmem:[#allocation2 + $0x20] sm:$0xff] %vm425_vm1, %v6756_v21  ;;  %2446 = vst.msk [vmem:[#allocation2 + $0x28] sm:$0xff] %vm425_vm1, %v6759_v29 }
 0x292   : > { %2599 = vrot.lane.b32.xlu1 %v2504_v18, %s5280_s20 }
 0x293   : > { %v2294_v5 = vpop.permute.xlu0 %2293  ;;  %v2296_v30 = vpop.permute.xlu1 %2295 }
 0x294   : > { %2383 = vst.msk [vmem:[#allocation2 + $0x30] sm:$0xff] %vm232_vm0, %v2294_v5  ;;  %2384 = vst.msk [vmem:[#allocation2 + $0x38] sm:$0xff] %vm232_vm0, %v2296_v30 }
 0x295   : > { %2729 = vrot.lane.b32.xlu0 %v6427_v47, %s5281_s21  ;;  %2447 = vst.msk [vmem:[#allocation2 + $0x30] sm:$0xff] %vm425_vm1, %v6773_v42  ;;  %2448 = vst.msk [vmem:[#allocation2 + $0x38] sm:$0xff] %vm425_vm1, %v6768_v60  ;;  %v6800_v47 = vld [vmem:[%s5333_s19 + $0x7a] sm:$0xff] }
 0x296   : > { %2731 = vrot.lane.b32.xlu1 %v6430_v50, %s5281_s21  ;;  %v6803_v50 = vld [vmem:[%s5333_s19 + $0x82] sm:$0xff] }
 0x297   : > { %v2298_v43 = vpop.permute.xlu0 %2297  ;;  %v2300_v54 = vpop.permute.xlu1 %2299 }
 0x298   : > { %2385 = vst.msk [vmem:[#allocation2 + $0x40] sm:$0xff] %vm232_vm0, %v2298_v43  ;;  %2386 = vst.msk [vmem:[#allocation2 + $0x48] sm:$0xff] %vm232_vm0, %v2300_v54 }
 0x299   : > { %2733 = vrot.lane.b32.xlu0 %v6439_v55, %s5281_s21  ;;  %2449 = vst.msk [vmem:[#allocation2 + $0x40] sm:$0xff] %vm425_vm1, %v6786_v16  ;;  %2450 = vst.msk [vmem:[#allocation2 + $0x48] sm:$0xff] %vm425_vm1, %v6789_v58  ;;  %v6816_v55 = vld [vmem:[%s5333_s19 + $0x92] sm:$0xff] }
 0x29a   : > { %2735 = vrot.lane.b32.xlu1 %v6442_v12, %s5281_s21  ;;  %v6819_v12 = vld [vmem:[%s5333_s19 + $0x9a] sm:$0xff] }
 0x29b   : > { %v2302_v3 = vpop.permute.xlu0 %2301  ;;  %v2304_v9 = vpop.permute.xlu1 %2303 }
 0x29c   : > { %2387 = vst.msk [vmem:[#allocation2 + $0x50] sm:$0xff] %vm232_vm0, %v2302_v3  ;;  %2388 = vst.msk [vmem:[#allocation2 + $0x58] sm:$0xff] %vm232_vm0, %v2304_v9 }
 0x29d   : > { %2737 = vrot.lane.b32.xlu0 %v6451_v59, %s5281_s21  ;;  %2451 = vst.msk [vmem:[#allocation2 + $0x50] sm:$0xff] %vm425_vm1, %v6800_v47  ;;  %2452 = vst.msk [vmem:[#allocation2 + $0x58] sm:$0xff] %vm425_vm1, %v6803_v50 }
 0x29e   : > { %2739 = vrot.lane.b32.xlu1 %v6454_v1, %s5281_s21 }
 0x29f   : > { %v2306_v19 = vpop.permute.xlu0 %2305  ;;  %v2308_v23 = vpop.permute.xlu1 %2307 }
 0x2a0   : > { %2389 = vst.msk [vmem:[#allocation2 + $0x60] sm:$0xff] %vm232_vm0, %v2306_v19  ;;  %2390 = vst.msk [vmem:[#allocation2 + $0x68] sm:$0xff] %vm232_vm0, %v2308_v23  ;;  %v6963_v23 = vld [vmem:[%s5333_s19 + $0x172] sm:$0xff] }
 0x2a1   : > { %2741 = vrot.lane.b32.xlu0 %v6463_v6, %s5281_s21  ;;  %2453 = vst.msk [vmem:[#allocation2 + $0x60] sm:$0xff] %vm425_vm1, %v6816_v55  ;;  %2454 = vst.msk [vmem:[#allocation2 + $0x68] sm:$0xff] %vm425_vm1, %v6819_v12 }
 0x2a2   : > { %2743 = vrot.lane.b32.xlu1 %v6466_v2, %s5281_s21 }
 0x2a3   : > { %v2310_v34 = vpop.permute.xlu0 %2309  ;;  %v2312_v37 = vpop.permute.xlu1 %2311 }
 0x2a4   : > { %2391 = vst.msk [vmem:[#allocation2 + $0x70] sm:$0xff] %vm232_vm0, %v2310_v34  ;;  %2392 = vst.msk [vmem:[#allocation2 + $0x78] sm:$0xff] %vm232_vm0, %v2312_v37  ;;  %v4975_v37 = vld [vmem:[%s7819_s1 + $0x30] sm:$0xff] }
 0x2a5   : > { %2745 = vrot.lane.b32.xlu0 %v6475_v7, %s5281_s21  ;;  %2455 = vst.msk [vmem:[#allocation2 + $0x70] sm:$0xff] %vm425_vm1, %v6832_v28  ;;  %2456 = vst.msk [vmem:[#allocation2 + $0x78] sm:$0xff] %vm425_vm1, %v6835_v33  ;;  %v6864_v7 = vld [vmem:[%s5333_s19 + $0xda] sm:$0xff] }
 0x2a6   : > { %2747 = vrot.lane.b32.xlu1 %v6478_v8, %s5281_s21  ;;  %v6867_v8 = vld [vmem:[%s5333_s19 + $0xe2] sm:$0xff] }
 0x2a7   : > { %v2314_v52 = vpop.permute.xlu0 %2313  ;;  %v2316_v53 = vpop.permute.xlu1 %2315 }
 0x2a8   : > { %2393 = vst.msk [vmem:[#allocation2 + $0x80] sm:$0xff] %vm232_vm0, %v2314_v52  ;;  %2394 = vst.msk [vmem:[#allocation2 + $0x88] sm:$0xff] %vm232_vm0, %v2316_v53  ;;  %v4976_v53 = vld [vmem:[%s7819_s1 + $0x38] sm:$0xff] }
 0x2a9   : > { %2749 = vrot.lane.b32.xlu0 %v6487_v20, %s5281_s21  ;;  %2457 = vst.msk [vmem:[#allocation2 + $0x80] sm:$0xff] %vm425_vm1, %v6848_v44  ;;  %2458 = vst.msk [vmem:[#allocation2 + $0x88] sm:$0xff] %vm425_vm1, %v6851_v49  ;;  %v6880_v20 = vld [vmem:[%s5333_s19 + $0xf2] sm:$0xff] }
 0x2aa   : > { %2751 = vrot.lane.b32.xlu1 %v6490_v22, %s5281_s21  ;;  %v6883_v22 = vld [vmem:[%s5333_s19 + $0xfa] sm:$0xff] }
 0x2ab   : > { %v2318_v57 = vpop.permute.xlu0 %2317  ;;  %v2320_v11 = vpop.permute.xlu1 %2319 }
 0x2ac   : > { %2395 = vst.msk [vmem:[#allocation2 + $0x90] sm:$0xff] %vm232_vm0, %v2318_v57  ;;  %2396 = vst.msk [vmem:[#allocation2 + $0x98] sm:$0xff] %vm232_vm0, %v2320_v11  ;;  %v4977_v57 = vld [vmem:[%s7819_s1 + $0x40] sm:$0xff] }
 0x2ad   : > { %2753 = vrot.lane.b32.xlu0 %v6499_v25, %s5281_s21  ;;  %2459 = vst.msk [vmem:[#allocation2 + $0x90] sm:$0xff] %vm425_vm1, %v6864_v7  ;;  %2460 = vst.msk [vmem:[#allocation2 + $0x98] sm:$0xff] %vm425_vm1, %v6867_v8  ;;  %v6896_v25 = vld [vmem:[%s5333_s19 + $0x10a] sm:$0xff] }
 0x2ae   : > { %2755 = vrot.lane.b32.xlu1 %v6502_v26, %s5281_s21  ;;  %v6899_v26 = vld [vmem:[%s5333_s19 + $0x112] sm:$0xff] }
 0x2af   : > { %v2322_v13 = vpop.permute.xlu0 %2321  ;;  %v2324_v17 = vpop.permute.xlu1 %2323 }
 0x2b0   : > { %2397 = vst.msk [vmem:[#allocation2 + $0xa0] sm:$0xff] %vm232_vm0, %v2322_v13  ;;  %2398 = vst.msk [vmem:[#allocation2 + $0xa8] sm:$0xff] %vm232_vm0, %v2324_v17  ;;  %v5218_v13 = vpack.c.bf16 %v4977_v57, %v4976_v53  ;;  %v4978_v17 = vld [vmem:[%s7819_s1 + $0x48] sm:$0xf]  ;;  %v4885_v57 = vld [vmem:[%s5333_s19 + $0xb0] sm:$0xff] }
 0x2b1   : > { %2757 = vrot.lane.b32.xlu0 %v6511_v31, %s5281_s21  ;;  %2461 = vst.msk [vmem:[#allocation2 + $0xa0] sm:$0xff] %vm425_vm1, %v6880_v20  ;;  %2462 = vst.msk [vmem:[#allocation2 + $0xa8] sm:$0xff] %vm425_vm1, %v6883_v22  ;;  %v6912_v31 = vld [vmem:[%s5333_s19 + $0x122] sm:$0xff] }
 0x2b2   : > { %2759 = vrot.lane.b32.xlu1 %v6514_v32, %s5281_s21  ;;  %v6915_v32 = vld [vmem:[%s5333_s19 + $0x12a] sm:$0xff] }
 0x2b3   : > { %v2326_v18 = vpop.permute.xlu0 %2325  ;;  %v2328_v5 = vpop.permute.xlu1 %2327 }
 0x2b4   : > { %2399 = vst.msk [vmem:[#allocation2 + $0xb0] sm:$0xff] %vm232_vm0, %v2326_v18  ;;  %2400 = vst.msk [vmem:[#allocation2 + $0xb8] sm:$0xff] %vm232_vm0, %v2328_v5 }
 0x2b5   : > { %2761 = vrot.lane.b32.xlu0 %v6523_v35, %s5281_s21  ;;  %2463 = vst.msk [vmem:[#allocation2 + $0xb0] sm:$0xff] %vm425_vm1, %v6896_v25  ;;  %2464 = vst.msk [vmem:[#allocation2 + $0xb8] sm:$0xff] %vm425_vm1, %v6899_v26  ;;  %v6928_v35 = vld [vmem:[%s5333_s19 + $0x13a] sm:$0xff] }
 0x2b6   : > { %2763 = vrot.lane.b32.xlu1 %v6526_v36, %s5281_s21  ;;  %v6931_v36 = vld [vmem:[%s5333_s19 + $0x142] sm:$0xff] }
 0x2b7   : > { %v2330_v30 = vpop.permute.xlu0 %2329  ;;  %v2332_v43 = vpop.permute.xlu1 %2331 }
 0x2b8   : > { %2401 = vst.msk [vmem:[#allocation2 + $0xc0] sm:$0xff] %vm232_vm0, %v2330_v30  ;;  %2402 = vst.msk [vmem:[#allocation2 + $0xc8] sm:$0xff] %vm232_vm0, %v2332_v43 }
 0x2b9   : > { %2765 = vrot.lane.b32.xlu0 %v6535_v39, %s5281_s21  ;;  %2465 = vst.msk [vmem:[#allocation2 + $0xc0] sm:$0xff] %vm425_vm1, %v6912_v31  ;;  %2466 = vst.msk [vmem:[#allocation2 + $0xc8] sm:$0xff] %vm425_vm1, %v6915_v32  ;;  %v6944_v39 = vld [vmem:[%s5333_s19 + $0x152] sm:$0xff] }
 0x2ba   : > { %2767 = vrot.lane.b32.xlu1 %v6538_v40, %s5281_s21  ;;  %v6947_v40 = vld [vmem:[%s5333_s19 + $0x15a] sm:$0xff] }
 0x2bb   : > { %v2334_v54 = vpop.permute.xlu0 %2333  ;;  %v2336_v3 = vpop.permute.xlu1 %2335 }
 0x2bc   : > { %2403 = vst.msk [vmem:[#allocation2 + $0xd0] sm:$0xff] %vm232_vm0, %v2334_v54  ;;  %2404 = vst.msk [vmem:[#allocation2 + $0xd8] sm:$0xff] %vm232_vm0, %v2336_v3 }
 0x2bd   : > { %2769 = vrot.lane.b32.xlu0 %v6547_v45, %s5281_s21  ;;  %2467 = vst.msk [vmem:[#allocation2 + $0xd0] sm:$0xff] %vm425_vm1, %v6928_v35  ;;  %2468 = vst.msk [vmem:[#allocation2 + $0xd8] sm:$0xff] %vm425_vm1, %v6931_v36  ;;  %v6960_v45 = vld [vmem:[%s5333_s19 + $0x16a] sm:$0xff] }
 0x2be   : > { %2771 = vrot.lane.b32.xlu1 %v6550_v48, %s5281_s21 }
 0x2bf   : > { %v2338_v9 = vpop.permute.xlu0 %2337  ;;  %v2340_v19 = vpop.permute.xlu1 %2339 }
 0x2c0   : > { %2405 = vst.msk [vmem:[#allocation2 + $0xe0] sm:$0xff] %vm232_vm0, %v2338_v9  ;;  %2406 = vst.msk [vmem:[#allocation2 + $0xe8] sm:$0xff] %vm232_vm0, %v2340_v19  ;;  %v4882_v19 = vld [vmem:[%s5333_s19 + $0x90] sm:$0xff] }
 0x2c1   : > { %2921 = vrot.lane.b32.xlu0 %v6756_v21, %s5282_s22  ;;  %2469 = vst.msk [vmem:[#allocation2 + $0xe0] sm:$0xff] %vm425_vm1, %v6944_v39  ;;  %2470 = vst.msk [vmem:[#allocation2 + $0xe8] sm:$0xff] %vm425_vm1, %v6947_v40 }
 0x2c2   : > { %2923 = vrot.lane.b32.xlu1 %v6759_v29, %s5282_s22  ;;  %v4974_v29 = vld [vmem:[%s7819_s1 + $0x28] sm:$0xff] }
 0x2c3   : > { %v2342_v48 = vpop.permute.xlu0 %2341  ;;  %v5214_v52 = vpack.c.bf16 %v4975_v37, %v4974_v29 }
 0x2c4   : > { %2407 = vst.msk [vmem:[#allocation2 + $0xf0] sm:$0xff] %vm232_vm0, %v2342_v48  ;;  %v2344_v34 = vpop.permute.xlu1 %2343 }
 0x2c5   : > { %2408 = vst.msk [vmem:[#allocation2 + $0xf8] sm:$0xff] %vm232_vm0, %v2344_v34  ;;  %3113 = vrot.lane.b32.xlu0 %v6595_v61, %s5283_s23  ;;  %5215 = vmatprep.subr.bf16.mxu1 %v5214_v52  ;;  %v4883_v34 = vld [vmem:[%s5333_s19 + $0x98] sm:$0xff] }
 0x2c6   : > { %2471 = vst.msk [vmem:[#allocation2 + $0xf0] sm:$0xff] %vm425_vm1, %v6960_v45  ;;  %3115 = vrot.lane.b32.xlu1 %v6598_v24, %s5283_s23  ;;  %2472 = vst.msk [vmem:[#allocation2 + $0xf8] sm:$0xff] %vm425_vm1, %v6963_v23  ;;  %5217 = vmatpush3.bf16.msra.mxu1 %v5214_v52 }
 0x2c7   : > { %v2538_v21 = vpop.permute.xlu0 %2537  ;;  %5219 = vmatprep.subr.bf16.mxu1 %v5218_v13 }
 0x2c8   : > { %2633 = vst.msk [vmem:[#allocation2] sm:$0xff] %vm618_vm2, %v2538_v21  ;;  %v2540_v61 = vpop.permute.xlu1 %2539 }
 0x2c9   : > { %2634 = vst.msk [vmem:[#allocation2 + $0x8] sm:$0xff] %vm618_vm2, %v2540_v61  ;;  %3308 = vrot.lane.b32.xlu0 %v6451_v59, %s5284_s24 }
 0x2ca   : > { %3310 = vrot.lane.b32.xlu1 %v6454_v1, %s5284_s24  ;;  %5221 = vmatpush3.bf16.msra.mxu1 %v5218_v13 }
 0x2cb   : > { %v2542_v24 = vpop.permute.xlu0 %2541  ;;  %5156 = vmatprep.subr.msk.mxu1 %vm1954_vm7, %v4978_v17 }
 0x2cc   : > { %2635 = vst.msk [vmem:[#allocation2 + $0x10] sm:$0xff] %vm618_vm2, %v2542_v24  ;;  %v2544_v11 = vpop.permute.xlu1 %2543  ;;  %v4884_v24 = vld [vmem:[%s5333_s19 + $0xa8] sm:$0xff] }
 0x2cd   : > { %2636 = vst.msk [vmem:[#allocation2 + $0x18] sm:$0xff] %vm618_vm2, %v2544_v11  ;;  %3500 = vrot.lane.b32.xlu0 %v6786_v16, %s5285_s25 }
 0x2ce   : > { %2925 = vrot.lane.b32.xlu1 %v6773_v42, %s5282_s22  ;;  %5157 = vmatpush3.msk.msra.mxu1 %vm1954_vm7, %v4978_v17 }
 0x2cf   : > { %v2546_v59 = vpop.permute.xlu0 %2545 }
 0x2d0   : > { %2637 = vst.msk [vmem:[#allocation2 + $0x20] sm:$0xff] %vm618_vm2, %v2546_v59  ;;  %v2548_v1 = vpop.permute.xlu1 %2547 }
 0x2d1   : > { %2638 = vst.msk [vmem:[#allocation2 + $0x28] sm:$0xff] %vm618_vm2, %v2548_v1  ;;  %3502 = vrot.lane.b32.xlu0 %v6789_v58, %s5285_s25 }
 0x2d2   : > { %3692 = vrot.lane.b32.xlu1 %v6623_v41, %s5286_s26 }
 0x2d3   : > { %v2550_v42 = vpop.permute.xlu0 %2549 }
 0x2d4   : > { %2639 = vst.msk [vmem:[#allocation2 + $0x30] sm:$0xff] %vm618_vm2, %v2550_v42  ;;  %v2552_v18 = vpop.permute.xlu1 %2551  ;;  %v4886_v42 = vld [vmem:[%s5333_s19 + $0xc0] sm:$0xff] }
 0x2d5   : > { %2640 = vst.msk [vmem:[#allocation2 + $0x38] sm:$0xff] %vm618_vm2, %v2552_v18  ;;  %2927 = vrot.lane.b32.xlu0 %v6768_v60, %s5282_s22 }
 0x2d6   : > { %3117 = vrot.lane.b32.xlu1 %v6609_v27, %s5283_s23 }
 0x2d7   : > { %v2554_v5 = vpop.permute.xlu0 %2553 }
 0x2d8   : > { %2641 = vst.msk [vmem:[#allocation2 + $0x40] sm:$0xff] %vm618_vm2, %v2554_v5  ;;  %v2556_v30 = vpop.permute.xlu1 %2555  ;;  %v4887_v5 = vld [vmem:[%s5333_s19 + $0xc8] sm:$0xff] }
 0x2d9   : > { %2642 = vst.msk [vmem:[#allocation2 + $0x48] sm:$0xff] %vm618_vm2, %v2556_v30  ;;  %3694 = vrot.lane.b32.xlu0 %v6626_v56, %s5286_s26 }
 0x2da   : > { %3119 = vrot.lane.b32.xlu1 %v6612_v38, %s5283_s23 }
 0x2db   : > { %v2558_v43 = vpop.permute.xlu0 %2557 }
 0x2dc   : > { %2643 = vst.msk [vmem:[#allocation2 + $0x50] sm:$0xff] %vm618_vm2, %v2558_v43  ;;  %v2560_v54 = vpop.permute.xlu1 %2559 }
 0x2dd   : > { %2644 = vst.msk [vmem:[#allocation2 + $0x58] sm:$0xff] %vm618_vm2, %v2560_v54  ;;  %3312 = vrot.lane.b32.xlu0 %v6463_v6, %s5284_s24  ;;  %v7134_v54 = vld [vmem:[%s7820_s2] ss:$0 sm:$0xff] }
 0x2de   : > { %3314 = vrot.lane.b32.xlu1 %v6466_v2, %s5284_s24 }
 0x2df   : > { %v2562_v27 = vpop.permute.xlu0 %2561 }
 0x2e0   : > { %2645 = vst.msk [vmem:[#allocation2 + $0x60] sm:$0xff] %vm618_vm2, %v2562_v27  ;;  %v2564_v60 = vpop.permute.xlu1 %2563 }
 0x2e1   : > { %2646 = vst.msk [vmem:[#allocation2 + $0x68] sm:$0xff] %vm618_vm2, %v2564_v60  ;;  %3504 = vrot.lane.b32.xlu0 %v6800_v47, %s5285_s25 }
 0x2e2   : > { %2929 = vrot.lane.b32.xlu1 %v6786_v16, %s5282_s22 }
 0x2e3   : > { %v2566_v38 = vpop.permute.xlu0 %2565 }
 0x2e4   : > { %2647 = vst.msk [vmem:[#allocation2 + $0x70] sm:$0xff] %vm618_vm2, %v2566_v38  ;;  %v2568_v3 = vpop.permute.xlu1 %2567 }
 0x2e5   : > { %2648 = vst.msk [vmem:[#allocation2 + $0x78] sm:$0xff] %vm618_vm2, %v2568_v3  ;;  %3506 = vrot.lane.b32.xlu0 %v6803_v50, %s5285_s25 }
 0x2e6   : > { %3696 = vrot.lane.b32.xlu1 %v6637_v10, %s5286_s26 }
 0x2e7   : > { %v2570_v6 = vpop.permute.xlu0 %2569 }
 0x2e8   : > { %2649 = vst.msk [vmem:[#allocation2 + $0x80] sm:$0xff] %vm618_vm2, %v2570_v6  ;;  %v2572_v2 = vpop.permute.xlu1 %2571 }
 0x2e9   : > { %2650 = vst.msk [vmem:[#allocation2 + $0x88] sm:$0xff] %vm618_vm2, %v2572_v2  ;;  %2931 = vrot.lane.b32.xlu0 %v6789_v58, %s5282_s22 }
 0x2ea   : > { %3121 = vrot.lane.b32.xlu1 %v6623_v41, %s5283_s23 }
 0x2eb   : > { %v2574_v16 = vpop.permute.xlu0 %2573 }
 0x2ec   : > { %2651 = vst.msk [vmem:[#allocation2 + $0x90] sm:$0xff] %vm618_vm2, %v2574_v16  ;;  %v2576_v9 = vpop.permute.xlu1 %2575 }
 0x2ed   : > { %2652 = vst.msk [vmem:[#allocation2 + $0x98] sm:$0xff] %vm618_vm2, %v2576_v9  ;;  %3698 = vrot.lane.b32.xlu0 %v6640_v14, %s5286_s26 }
 0x2ee   : > { %3123 = vrot.lane.b32.xlu1 %v6626_v56, %s5283_s23 }
 0x2ef   : > { %v2578_v48 = vpop.permute.xlu0 %2577 }
 0x2f0   : > { %2653 = vst.msk [vmem:[#allocation2 + $0xa0] sm:$0xff] %vm618_vm2, %v2578_v48  ;;  %v2580_v58 = vpop.permute.xlu1 %2579 }
 0x2f1   : > { %2654 = vst.msk [vmem:[#allocation2 + $0xa8] sm:$0xff] %vm618_vm2, %v2580_v58  ;;  %3316 = vrot.lane.b32.xlu0 %v4882_v19, %s5284_s24  ;;  %v4888_v19 = vld [vmem:[%s5333_s19 + $0xd8] sm:$0xff] }
 0x2f2   : > { %3318 = vrot.lane.b32.xlu1 %v4883_v34, %s5284_s24  ;;  %v4889_v34 = vld [vmem:[%s5333_s19 + $0xe0] sm:$0xff] }
 0x2f3   : > { %v2582_v41 = vpop.permute.xlu0 %2581 }
 0x2f4   : > { %2655 = vst.msk [vmem:[#allocation2 + $0xb0] sm:$0xff] %vm618_vm2, %v2582_v41  ;;  %v2584_v21 = vpop.permute.xlu1 %2583 }
 0x2f5   : > { %2656 = vst.msk [vmem:[#allocation2 + $0xb8] sm:$0xff] %vm618_vm2, %v2584_v21  ;;  %3508 = vrot.lane.b32.xlu0 %v6816_v55, %s5285_s25 }
 0x2f6   : > { %2933 = vrot.lane.b32.xlu1 %v6800_v47, %s5282_s22 }
 0x2f7   : > { %v2586_v56 = vpop.permute.xlu0 %2585 }
 0x2f8   : > { %2657 = vst.msk [vmem:[#allocation2 + $0xc0] sm:$0xff] %vm618_vm2, %v2586_v56  ;;  %v2588_v29 = vpop.permute.xlu1 %2587 }
 0x2f9   : > { %2658 = vst.msk [vmem:[#allocation2 + $0xc8] sm:$0xff] %vm618_vm2, %v2588_v29  ;;  %3510 = vrot.lane.b32.xlu0 %v6819_v12, %s5285_s25 }
 0x2fa   : > { %3700 = vrot.lane.b32.xlu1 %v6651_v15, %s5286_s26 }
 0x2fb   : > { %v2590_v37 = vpop.permute.xlu0 %2589 }
 0x2fc   : > { %2659 = vst.msk [vmem:[#allocation2 + $0xd0] sm:$0xff] %vm618_vm2, %v2590_v37  ;;  %v2592_v61 = vpop.permute.xlu1 %2591 }
 0x2fd   : > { %2660 = vst.msk [vmem:[#allocation2 + $0xd8] sm:$0xff] %vm618_vm2, %v2592_v61  ;;  %2935 = vrot.lane.b32.xlu0 %v6803_v50, %s5282_s22 }
 0x2fe   : > { %3125 = vrot.lane.b32.xlu1 %v6637_v10, %s5283_s23 }
 0x2ff   : > { %v2594_v47 = vpop.permute.xlu0 %2593 }
 0x300   : > { %2661 = vst.msk [vmem:[#allocation2 + $0xe0] sm:$0xff] %vm618_vm2, %v2594_v47  ;;  %v2596_v52 = vpop.permute.xlu1 %2595 }
 0x301   : > { %2662 = vst.msk [vmem:[#allocation2 + $0xe8] sm:$0xff] %vm618_vm2, %v2596_v52  ;;  %3702 = vrot.lane.b32.xlu0 %v6654_v63, %s5286_s26 }
 0x302   : > { %3127 = vrot.lane.b32.xlu1 %v6640_v14, %s5283_s23 }
 0x303   : > { %v2598_v53 = vpop.permute.xlu0 %2597 }
 0x304   : > { %2663 = vst.msk [vmem:[#allocation2 + $0xf0] sm:$0xff] %vm618_vm2, %v2598_v53  ;;  %v2600_v50 = vpop.permute.xlu1 %2599 }
 0x305   : > { %2664 = vst.msk [vmem:[#allocation2 + $0xf8] sm:$0xff] %vm618_vm2, %v2600_v50  ;;  %3320 = vrot.lane.b32.xlu0 %v4884_v24, %s5284_s24 }
 0x306   : > { %3322 = vrot.lane.b32.xlu1 %v4885_v57, %s5284_s24 }
 0x307   : > { %v2730_v10 = vpop.permute.xlu0 %2729 }
 0x308   : > { %2825 = vst.msk [vmem:[#allocation2] sm:$0xff] %vm814_vm3, %v2730_v10  ;;  %v2732_v11 = vpop.permute.xlu1 %2731 }
 0x309   : > { %2826 = vst.msk [vmem:[#allocation2 + $0x8] sm:$0xff] %vm814_vm3, %v2732_v11  ;;  %3512 = vrot.lane.b32.xlu0 %v6832_v28, %s5285_s25 }
 0x30a   : > { %2937 = vrot.lane.b32.xlu1 %v6816_v55, %s5282_s22 }
 0x30b   : > { %v2734_v14 = vpop.permute.xlu0 %2733 }
 0x30c   : > { %2827 = vst.msk [vmem:[#allocation2 + $0x10] sm:$0xff] %vm814_vm3, %v2734_v14  ;;  %v2736_v13 = vpop.permute.xlu1 %2735  ;;  %v4858_v14 = vld [vmem:[%s5333_s19 + $0xc4] sm:$0xff] }
 0x30d   : > { %2828 = vst.msk [vmem:[#allocation2 + $0x18] sm:$0xff] %vm814_vm3, %v2736_v13  ;;  %3514 = vrot.lane.b32.xlu0 %v6835_v33, %s5285_s25 }
 0x30e   : > { %3704 = vrot.lane.b32.xlu1 %v6665_v4, %s5286_s26 }
 0x30f   : > { %v2738_v59 = vpop.permute.xlu0 %2737 }
 0x310   : > { %2829 = vst.msk [vmem:[#allocation2 + $0x20] sm:$0xff] %vm814_vm3, %v2738_v59  ;;  %v2740_v1 = vpop.permute.xlu1 %2739 }
 0x311   : > { %2830 = vst.msk [vmem:[#allocation2 + $0x28] sm:$0xff] %vm814_vm3, %v2740_v1  ;;  %2939 = vrot.lane.b32.xlu0 %v6819_v12, %s5282_s22 }
 0x312   : > { %3129 = vrot.lane.b32.xlu1 %v6651_v15, %s5283_s23 }
 0x313   : > { %v2742_v55 = vpop.permute.xlu0 %2741 }
 0x314   : > { %2831 = vst.msk [vmem:[#allocation2 + $0x30] sm:$0xff] %vm814_vm3, %v2742_v55  ;;  %v2744_v17 = vpop.permute.xlu1 %2743 }
 0x315   : > { %2832 = vst.msk [vmem:[#allocation2 + $0x38] sm:$0xff] %vm814_vm3, %v2744_v17  ;;  %3706 = vrot.lane.b32.xlu0 %v6668_v46, %s5286_s26  ;;  %v7210_v17 = vld [vmem:[%s5333_s19 + $0xe4] sm:$0xff] }
 0x316   : > { %3131 = vrot.lane.b32.xlu1 %v6654_v63, %s5283_s23 }
 0x317   : > { %v2746_v18 = vpop.permute.xlu0 %2745 }
 0x318   : > { %2833 = vst.msk [vmem:[#allocation2 + $0x40] sm:$0xff] %vm814_vm3, %v2746_v18  ;;  %v2748_v12 = vpop.permute.xlu1 %2747  ;;  %v4859_v18 = vld [vmem:[%s5333_s19 + $0xcc] sm:$0xff] }
 0x319   : > { %2834 = vst.msk [vmem:[#allocation2 + $0x48] sm:$0xff] %vm814_vm3, %v2748_v12  ;;  %3324 = vrot.lane.b32.xlu0 %v4886_v42, %s5284_s24 }
 0x31a   : > { %3326 = vrot.lane.b32.xlu1 %v4887_v5, %s5284_s24 }
 0x31b   : > { %v2750_v15 = vpop.permute.xlu0 %2749 }
 0x31c   : > { %2835 = vst.msk [vmem:[#allocation2 + $0x50] sm:$0xff] %vm814_vm3, %v2750_v15  ;;  %v2752_v30 = vpop.permute.xlu1 %2751 }
 0x31d   : > { %2836 = vst.msk [vmem:[#allocation2 + $0x58] sm:$0xff] %vm814_vm3, %v2752_v30  ;;  %3516 = vrot.lane.b32.xlu0 %v6848_v44, %s5285_s25 }
 0x31e   : > { %2941 = vrot.lane.b32.xlu1 %v6832_v28, %s5282_s22 }
 0x31f   : > { %v2754_v63 = vpop.permute.xlu0 %2753 }
 0x320   : > { %2837 = vst.msk [vmem:[#allocation2 + $0x60] sm:$0xff] %vm814_vm3, %v2754_v63  ;;  %v2756_v43 = vpop.permute.xlu1 %2755  ;;  %v4890_v63 = vld [vmem:[%s5333_s19 + $0xf0] sm:$0xff] }
 0x321   : > { %2838 = vst.msk [vmem:[#allocation2 + $0x68] sm:$0xff] %vm814_vm3, %v2756_v43  ;;  %3518 = vrot.lane.b32.xlu0 %v6851_v49, %s5285_s25 }
 0x322   : > { %3708 = vrot.lane.b32.xlu1 %v6679_v51, %s5286_s26 }
 0x323   : > { %v2758_v27 = vpop.permute.xlu0 %2757 }
 0x324   : > { %2839 = vst.msk [vmem:[#allocation2 + $0x70] sm:$0xff] %vm814_vm3, %v2758_v27  ;;  %v2760_v28 = vpop.permute.xlu1 %2759  ;;  %v5102_v60 = vpop.f32.mrb[0].mxu0  ;;  %v4891_v27 = vld [vmem:[%s5333_s19 + $0xf8] sm:$0xff] }
 0x325   : > { %2840 = vst.msk [vmem:[#allocation2 + $0x78] sm:$0xff] %vm814_vm3, %v2760_v28  ;;  %v2030_v51 = vadd.f32 %v5102_v60, %v7134_v54  ;;  %2943 = vrot.lane.b32.xlu0 %v6835_v33, %s5282_s22  ;;  %v2024_v38 = vpop.f32.mrb[1].mxu0 }
 0x326   : > { %v2025_v3 = vadd.f32 %v7134_v54, %v2024_v38  ;;  %3133 = vrot.lane.b32.xlu1 %v6665_v4, %s5283_s23 }
 0x327   : > { %2184 = vst.msk [vmem:[%s7140_s16 + $0x8] sm:$0xff] %vm232_vm0, %v2030_v51  ;;  %v2762_v6 = vpop.permute.xlu0 %2761 }
 0x328   : > { %2183 = vst.msk [vmem:[%s7140_s16] sm:$0xff] %vm232_vm0, %v2025_v3  ;;  %v2764_v2 = vpop.permute.xlu1 %2763  ;;  %v5105_v16 = vpop.f32.mrb[2].mxu0 }
 0x329   : > { %2841 = vst.msk [vmem:[#allocation2 + $0x80] sm:$0xff] %vm814_vm3, %v2762_v6  ;;  %2842 = vst.msk [vmem:[#allocation2 + $0x88] sm:$0xff] %vm814_vm3, %v2764_v2  ;;  %v2040_v33 = vadd.f32 %v5105_v16, %v7134_v54  ;;  %3710 = vrot.lane.b32.xlu0 %v6682_v0, %s5286_s26  ;;  %v2034_v9 = vpop.f32.mrb[3].mxu0 }
 0x32a   : > { %v2035_v4 = vadd.f32 %v7134_v54, %v2034_v9  ;;  %3135 = vrot.lane.b32.xlu1 %v6668_v46, %s5283_s23 }
 0x32b   : > { %2186 = vst.msk [vmem:[%s7140_s16 + $0x18] sm:$0xff] %vm232_vm0, %v2040_v33  ;;  %v2766_v48 = vpop.permute.xlu0 %2765 }
 0x32c   : > { %2185 = vst.msk [vmem:[%s7140_s16 + $0x10] sm:$0xff] %vm232_vm0, %v2035_v4  ;;  %v2768_v58 = vpop.permute.xlu1 %2767  ;;  %v5108_v41 = vpop.f32.mrb[4].mxu0 }
 0x32d   : > { %2843 = vst.msk [vmem:[#allocation2 + $0x90] sm:$0xff] %vm814_vm3, %v2766_v48  ;;  %2844 = vst.msk [vmem:[#allocation2 + $0x98] sm:$0xff] %vm814_vm3, %v2768_v58  ;;  %v2050_v0 = vadd.f32 %v5108_v41, %v7134_v54  ;;  %3328 = vrot.lane.b32.xlu0 %v4888_v19, %s5284_s24  ;;  %v2044_v46 = vpop.f32.mrb[5].mxu0  ;;  %v7251_v48 = vld [vmem:[%s5333_s19 + $0xf4] sm:$0xff] }
 0x32e   : > { %v2045_v21 = vadd.f32 %v7134_v54, %v2044_v46  ;;  %3330 = vrot.lane.b32.xlu1 %v4889_v34, %s5284_s24 }
 0x32f   : > { %2188 = vst.msk [vmem:[%s7140_s16 + $0x28] sm:$0xff] %vm232_vm0, %v2050_v0  ;;  %v2770_v56 = vpop.permute.xlu0 %2769 }
 0x330   : > { %2187 = vst.msk [vmem:[%s7140_s16 + $0x20] sm:$0xff] %vm232_vm0, %v2045_v21  ;;  %v2772_v29 = vpop.permute.xlu1 %2771  ;;  %v5111_v37 = vpop.f32.mrb[6].mxu0  ;;  %v4860_v21 = vld [vmem:[%s5333_s19 + $0xdc] sm:$0xff] }
 0x331   : > { %2845 = vst.msk [vmem:[#allocation2 + $0xa0] sm:$0xff] %vm814_vm3, %v2770_v56  ;;  %2846 = vst.msk [vmem:[#allocation2 + $0xa8] sm:$0xff] %vm814_vm3, %v2772_v29  ;;  %v2060_v61 = vadd.f32 %v5111_v37, %v7134_v54  ;;  %3520 = vrot.lane.b32.xlu0 %v6864_v7, %s5285_s25  ;;  %v2054_v47 = vpop.f32.mrb[7].mxu0 }
 0x332   : > { %v2055_v52 = vadd.f32 %v7134_v54, %v2054_v47  ;;  %2945 = vrot.lane.b32.xlu1 %v6848_v44, %s5282_s22 }
 0x333   : > { %2190 = vst.msk [vmem:[%s7140_s16 + $0x38] sm:$0xff] %vm232_vm0, %v2060_v61  ;;  %v2922_v24 = vpop.permute.xlu0 %2921 }
 0x334   : > { %2189 = vst.msk [vmem:[%s7140_s16 + $0x30] sm:$0xff] %vm232_vm0, %v2055_v52  ;;  %v2924_v53 = vpop.permute.xlu1 %2923  ;;  %v5114_v57 = vpop.f32.mrb[8].mxu0 }
 0x335   : > { %3017 = vst.msk [vmem:[#allocation2] sm:$0xff] %vm1007_vm4, %v2922_v24  ;;  %3018 = vst.msk [vmem:[#allocation2 + $0x8] sm:$0xff] %vm1007_vm4, %v2924_v53  ;;  %v2070_v50 = vadd.f32 %v5114_v57, %v7134_v54  ;;  %3522 = vrot.lane.b32.xlu0 %v6867_v8, %s5285_s25  ;;  %v2064_v10 = vpop.f32.mrb[9].mxu0  ;;  %v7277_v24 = vld [vmem:[%s5333_s19 + $0xfc] sm:$0xff] }
 0x336   : > { %v2065_v44 = vadd.f32 %v7134_v54, %v2064_v10  ;;  %3712 = vrot.lane.b32.xlu1 %v6693_v62, %s5286_s26 }
 0x337   : > { %2192 = vst.msk [vmem:[%s7140_s16 + $0x48] sm:$0xff] %vm232_vm0, %v2070_v50  ;;  %v3114_v11 = vpop.permute.xlu0 %3113 }
 0x338   : > { %2191 = vst.msk [vmem:[%s7140_s16 + $0x40] sm:$0xff] %vm232_vm0, %v2065_v44  ;;  %v3116_v13 = vpop.permute.xlu1 %3115  ;;  %v5117_v59 = vpop.f32.mrb[10].mxu0 }
 0x339   : > { %3209 = vst.msk [vmem:[#allocation2] sm:$0xff] %vm1200_vm5, %v3114_v11  ;;  %3210 = vst.msk [vmem:[#allocation2 + $0x8] sm:$0xff] %vm1200_vm5, %v3116_v13  ;;  %v2080_v1 = vadd.f32 %v5117_v59, %v7134_v54  ;;  %2947 = vrot.lane.b32.xlu0 %v6851_v49, %s5282_s22  ;;  %v2074_v62 = vpop.f32.mrb[11].mxu0  ;;  %v4892_v11 = vld [vmem:[%s5333_s19 + $0x108] sm:$0xff]  ;;  %v4893_v59 = vld [vmem:[%s5333_s19 + $0x110] sm:$0xff] }
 0x33a   : > { %v2075_v55 = vadd.f32 %v7134_v54, %v2074_v62  ;;  %3137 = vrot.lane.b32.xlu1 %v4858_v14, %s5283_s23 }
 0x33b   : > { %2194 = vst.msk [vmem:[%s7140_s16 + $0x58] sm:$0xff] %vm232_vm0, %v2080_v1  ;;  %v3309_v42 = vpop.permute.xlu0 %3308 }
 0x33c   : > { %2193 = vst.msk [vmem:[%s7140_s16 + $0x50] sm:$0xff] %vm232_vm0, %v2075_v55  ;;  %v3311_v49 = vpop.permute.xlu1 %3310  ;;  %v5120_v5 = vpop.f32.mrb[12].mxu0 }
 0x33d   : > { %3404 = vst.msk [vmem:[#allocation2] sm:$0xff] %vm1396_vm6, %v3309_v42  ;;  %3405 = vst.msk [vmem:[#allocation2 + $0x8] sm:$0xff] %vm1396_vm6, %v3311_v49  ;;  %v2090_v12 = vadd.f32 %v5120_v5, %v7134_v54  ;;  %3714 = vrot.lane.b32.xlu0 %v7210_v17, %s5286_s26  ;;  %v2084_v15 = vpop.f32.mrb[13].mxu0 }
 0x33e   : > { %v2085_v30 = vadd.f32 %v7134_v54, %v2084_v15  ;;  %3139 = vrot.lane.b32.xlu1 %v4859_v18, %s5283_s23 }
 0x33f   : > { %2196 = vst.msk [vmem:[%s7140_s16 + $0x68] sm:$0xff] %vm232_vm0, %v2090_v12  ;;  %v3501_v43 = vpop.permute.xlu0 %3500 }
 0x340   : > { %2195 = vst.msk [vmem:[%s7140_s16 + $0x60] sm:$0xff] %vm232_vm0, %v2085_v30  ;;  %v2926_v28 = vpop.permute.xlu1 %2925  ;;  %v5123_v60 = vpop.f32.mrb[14].mxu0 }
 0x341   : > { %3596 = vst.msk [vmem:[#allocation2] sm:$0xff] %vm1589_vm8, %v3501_v43  ;;  %v2100_v51 = vadd.f32 %v5123_v60, %v7134_v54  ;;  %3332 = vrot.lane.b32.xlu0 %v4890_v63, %s5284_s24  ;;  %v2094_v38 = vpop.f32.mrb[15].mxu0  ;;  %v7319_v43 = vld [vmem:[%s5333_s19 + $0x10c] sm:$0xff] }
 0x342   : > { %3019 = vst.msk [vmem:[#allocation2 + $0x10] sm:$0xff] %vm1007_vm4, %v2926_v28  ;;  %v2095_v3 = vadd.f32 %v7134_v54, %v2094_v38  ;;  %3334 = vrot.lane.b32.xlu1 %v4891_v27, %s5284_s24 }
 0x343   : > { %2198 = vst.msk [vmem:[%s7140_s16 + $0x78] sm:$0xff] %vm232_vm0, %v2100_v51  ;;  %v3503_v6 = vpop.permute.xlu0 %3502 }
 0x344   : > { %2197 = vst.msk [vmem:[%s7140_s16 + $0x70] sm:$0xff] %vm232_vm0, %v2095_v3  ;;  %v3693_v2 = vpop.permute.xlu1 %3692  ;;  %v5126_v16 = vpop.f32.mrb[16].mxu0 }
 0x345   : > { %3597 = vst.msk [vmem:[#allocation2 + $0x8] sm:$0xff] %vm1589_vm8, %v3503_v6  ;;  %v2110_v33 = vadd.f32 %v5126_v16, %v7134_v54  ;;  %3524 = vrot.lane.b32.xlu0 %v6880_v20, %s5285_s25  ;;  %v2104_v9 = vpop.f32.mrb[17].mxu0 }
 0x346   : > { %3788 = vst.msk [vmem:[#allocation2] sm:$0xff] %vm1782_vm9, %v3693_v2  ;;  %v2105_v4 = vadd.f32 %v7134_v54, %v2104_v9  ;;  %2949 = vrot.lane.b32.xlu1 %v6864_v7, %s5282_s22 }
 0x347   : > { %2200 = vst.msk [vmem:[%s7140_s16 + $0x88] sm:$0xff] %vm232_vm0, %v2110_v33  ;;  %v2928_v19 = vpop.permute.xlu0 %2927 }
 0x348   : > { %2199 = vst.msk [vmem:[%s7140_s16 + $0x80] sm:$0xff] %vm232_vm0, %v2105_v4  ;;  %v3118_v34 = vpop.permute.xlu1 %3117  ;;  %v5129_v58 = vpop.f32.mrb[18].mxu0  ;;  %v4957_v4 = vld [vmem:[%s5333_s19 + $0x114] sm:$0xff] }
 0x349   : > { %3020 = vst.msk [vmem:[#allocation2 + $0x18] sm:$0xff] %vm1007_vm4, %v2928_v19  ;;  %v2120_v41 = vadd.f32 %v5129_v58, %v7134_v54  ;;  %3526 = vrot.lane.b32.xlu0 %v6883_v22, %s5285_s25  ;;  %v2114_v7 = vpop.f32.mrb[19].mxu0  ;;  %v4895_v58 = vld [vmem:[%s5333_s19 + $0x128] sm:$0xff] }
 0x34a   : > { %3211 = vst.msk [vmem:[#allocation2 + $0x10] sm:$0xff] %vm1200_vm5, %v3118_v34  ;;  %v2115_v0 = vadd.f32 %v7134_v54, %v2114_v7  ;;  %3716 = vrot.lane.b32.xlu1 %v7251_v48, %s5286_s26 }
 0x34b   : > { %2202 = vst.msk [vmem:[%s7140_s16 + $0x98] sm:$0xff] %vm232_vm0, %v2120_v41  ;;  %v3695_v46 = vpop.permute.xlu0 %3694 }
 0x34c   : > { %2201 = vst.msk [vmem:[%s7140_s16 + $0x90] sm:$0xff] %vm232_vm0, %v2115_v0  ;;  %v3120_v56 = vpop.permute.xlu1 %3119  ;;  %v5132_v29 = vpop.f32.mrb[20].mxu0 }
 0x34d   : > { %3789 = vst.msk [vmem:[#allocation2 + $0x8] sm:$0xff] %vm1782_vm9, %v3695_v46  ;;  %v3820_v37 = vld [vmem:[#allocation2] sm:$0xff]  ;;  %v2130_v61 = vadd.f32 %v5132_v29, %v7134_v54  ;;  %2951 = vrot.lane.b32.xlu0 %v6867_v8, %s5282_s22  ;;  %v2124_v47 = vpop.f32.mrb[21].mxu0 }
 0x34e   : > { %3212 = vst.msk [vmem:[#allocation2 + $0x18] sm:$0xff] %vm1200_vm5, %v3120_v56  ;;  %5158 = vmatprep.mubr.msk.f32.mxu1 %vm1857_vm10, %v3820_v37  ;;  %v2125_v52 = vadd.f32 %v7134_v54, %v2124_v47  ;;  %3141 = vrot.lane.b32.xlu1 %v4860_v21, %s5283_s23  ;;  %v4958_v21 = vld [vmem:[%s5333_s19 + $0x124] sm:$0xff] }
 0x34f   : > { %2204 = vst.msk [vmem:[%s7140_s16 + $0xa8] sm:$0xff] %vm232_vm0, %v2130_v61  ;;  %v3313_v53 = vpop.permute.xlu0 %3312  ;;  %v4959_v61 = vld [vmem:[%s5333_s19 + $0x12c] sm:$0xff] }
 0x350   : > { %2203 = vst.msk [vmem:[%s7140_s16 + $0xa0] sm:$0xff] %vm232_vm0, %v2125_v52  ;;  %v3315_v8 = vpop.permute.xlu1 %3314  ;;  %v5135_v57 = vpop.f32.mrb[22].mxu0 }
 0x351   : > { %3406 = vst.msk [vmem:[#allocation2 + $0x10] sm:$0xff] %vm1396_vm6, %v3313_v53  ;;  %3407 = vst.msk [vmem:[#allocation2 + $0x18] sm:$0xff] %vm1396_vm6, %v3315_v8  ;;  %v2140_v50 = vadd.f32 %v5135_v57, %v7134_v54  ;;  %3718 = vrot.lane.b32.xlu0 %v7277_v24, %s5286_s26  ;;  %v2134_v10 = vpop.f32.mrb[23].mxu0  ;;  %v4897_v8 = vld [vmem:[%s5333_s19 + $0x140] sm:$0xff] }
 0x352   : > { %v2135_v44 = vadd.f32 %v7134_v54, %v2134_v10  ;;  %3143 = vrot.lane.b32.xlu1 %v7210_v17, %s5283_s23 }
 0x353   : > { %2206 = vst.msk [vmem:[%s7140_s16 + $0xb8] sm:$0xff] %vm232_vm0, %v2140_v50  ;;  %v3505_v14 = vpop.permute.xlu0 %3504 }
 0x354   : > { %v3821_v13 = vld [vmem:[#allocation2 + $0x8] sm:$0xff]  ;;  %2205 = vst.msk [vmem:[%s7140_s16 + $0xb0] sm:$0xff] %vm232_vm0, %v2135_v44  ;;  %v2930_v1 = vpop.permute.xlu1 %2929  ;;  %v5138_v62 = vpop.f32.mrb[24].mxu0 }
 0x355   : > { %3598 = vst.msk [vmem:[#allocation2 + $0x10] sm:$0xff] %vm1589_vm8, %v3505_v14  ;;  %5159 = vmatmul.mubr.msk.f32.vlgmr.msra.gmra.mrb[0].mxu1 %vm1857_vm10, %v3821_v13  ;;  %v2150_v55 = vadd.f32 %v5138_v62, %v7134_v54  ;;  %3336 = vrot.lane.b32.xlu0 %v4892_v11, %s5284_s24  ;;  %v2144_v17 = vpop.f32.mrb[25].mxu0  ;;  %v4960_v11 = vld [vmem:[%s5333_s19 + $0x13c] sm:$0xff] }
 0x356   : > { %3021 = vst.msk [vmem:[#allocation2 + $0x20] sm:$0xff] %vm1007_vm4, %v2930_v1  ;;  %v2145_v42 = vadd.f32 %v7134_v54, %v2144_v17  ;;  %3338 = vrot.lane.b32.xlu1 %v4893_v59, %s5284_s24  ;;  %v4898_v17 = vld [vmem:[%s5333_s19 + $0x150] sm:$0xff] }
 0x357   : > { %2208 = vst.msk [vmem:[%s7140_s16 + $0xc8] sm:$0xff] %vm232_vm0, %v2150_v55  ;;  %v3507_v18 = vpop.permute.xlu0 %3506 }
 0x358   : > { %2207 = vst.msk [vmem:[%s7140_s16 + $0xc0] sm:$0xff] %vm232_vm0, %v2145_v42  ;;  %v3697_v49 = vpop.permute.xlu1 %3696  ;;  %v5141_v5 = vpop.f32.mrb[26].mxu0 }
 0x359   : > { %3599 = vst.msk [vmem:[#allocation2 + $0x18] sm:$0xff] %vm1589_vm8, %v3507_v18  ;;  %v2160_v12 = vadd.f32 %v5141_v5, %v7134_v54  ;;  %3528 = vrot.lane.b32.xlu0 %v6896_v25, %s5285_s25  ;;  %v2154_v15 = vpop.f32.mrb[27].mxu0 }
 0x35a   : > { %3790 = vst.msk [vmem:[#allocation2 + $0x10] sm:$0xff] %vm1782_vm9, %v3697_v49  ;;  %v2155_v30 = vadd.f32 %v7134_v54, %v2154_v15  ;;  %2953 = vrot.lane.b32.xlu1 %v6880_v20, %s5282_s22  ;;  %v4899_v49 = vld [vmem:[%s5333_s19 + $0x158] sm:$0xff] }
 0x35b   : > { %2210 = vst.msk [vmem:[%s7140_s16 + $0xd8] sm:$0xff] %vm232_vm0, %v2160_v12  ;;  %v2932_v63 = vpop.permute.xlu0 %2931 }
 0x35c   : > { %2209 = vst.msk [vmem:[%s7140_s16 + $0xd0] sm:$0xff] %vm232_vm0, %v2155_v30  ;;  %v3122_v27 = vpop.permute.xlu1 %3121  ;;  %v5144_v28 = vpop.f32.mrb[28].mxu0 }
 0x35d   : > { %3022 = vst.msk [vmem:[#allocation2 + $0x28] sm:$0xff] %vm1007_vm4, %v2932_v63  ;;  %v2170_v60 = vadd.f32 %v5144_v28, %v7134_v54  ;;  %3530 = vrot.lane.b32.xlu0 %v6899_v26, %s5285_s25  ;;  %v2164_v20 = vpop.f32.mrb[29].mxu0 }
 0x35e   : > { %3213 = vst.msk [vmem:[#allocation2 + $0x20] sm:$0xff] %vm1200_vm5, %v3122_v27  ;;  %v2165_v51 = vadd.f32 %v7134_v54, %v2164_v20  ;;  %3720 = vrot.lane.b32.xlu1 %v7319_v43, %s5286_s26  ;;  %v4963_v20 = vld [vmem:[%s5333_s19 + $0x15c] sm:$0xff] }
 0x35f   : > { %2212 = vst.msk [vmem:[%s7140_s16 + $0xe8] sm:$0xff] %vm232_vm0, %v2170_v60  ;;  %v3699_v38 = vpop.permute.xlu0 %3698 }
 0x360   : > { %2211 = vst.msk [vmem:[%s7140_s16 + $0xe0] sm:$0xff] %vm232_vm0, %v2165_v51  ;;  %v3124_v3 = vpop.permute.xlu1 %3123  ;;  %v5147_v6 = vpop.f32.mrb[30].mxu0 }
 0x361   : > { %3791 = vst.msk [vmem:[#allocation2 + $0x18] sm:$0xff] %vm1782_vm9, %v3699_v38  ;;  %v3822_v2 = vld [vmem:[#allocation2 + $0x10] sm:$0xff]  ;;  %v2180_v16 = vadd.f32 %v5147_v6, %v7134_v54  ;;  %2955 = vrot.lane.b32.xlu0 %v6883_v22, %s5282_s22  ;;  %v2174_v33 = vpop.f32.mrb[31].mxu0  ;;  %v4894_v22 = vld [vmem:[%s5333_s19 + $0x120] sm:$0xff]  ;;  %v4900_v6 = vld [vmem:[%s5333_s19 + $0x168] sm:$0xff] }
 0x362   : > { %3214 = vst.msk [vmem:[#allocation2 + $0x28] sm:$0xff] %vm1200_vm5, %v3124_v3  ;;  %5161 = vmatprep.mubr.msk.f32.mxu1 %vm1857_vm10, %v3822_v2  ;;  %v2175_v9 = vadd.f32 %v7134_v54, %v2174_v33  ;;  %3145 = vrot.lane.b32.xlu1 %v7251_v48, %s5283_s23 }
 0x363   : > { %2214 = vst.msk [vmem:[%s7140_s16 + $0xf8] sm:$0xff] %vm232_vm0, %v2180_v16  ;;  %v3317_v19 = vpop.permute.xlu0 %3316  ;;  %v4901_v16 = vld [vmem:[%s5333_s19 + $0x170] sm:$0xff] }
 0x364   : > { %2213 = vst.msk [vmem:[%s7140_s16 + $0xf0] sm:$0xff] %vm232_vm0, %v2175_v9  ;;  %v3319_v34 = vpop.permute.xlu1 %3318 }
 0x365   : > { %3408 = vst.msk [vmem:[#allocation2 + $0x20] sm:$0xff] %vm1396_vm6, %v3317_v19  ;;  %3409 = vst.msk [vmem:[#allocation2 + $0x28] sm:$0xff] %vm1396_vm6, %v3319_v34  ;;  %3722 = vrot.lane.b32.xlu0 %v4957_v4, %s5286_s26 }
 0x366   : > { %3147 = vrot.lane.b32.xlu1 %v7277_v24, %s5283_s23  ;;  %v4896_v24 = vld [vmem:[%s5333_s19 + $0x138] sm:$0xff] }
 0x367   : > { %v3509_v54 = vpop.permute.xlu0 %3508 }
 0x368   : > { %v3823_v48 = vld [vmem:[#allocation2 + $0x18] sm:$0xff]  ;;  %3600 = vst.msk [vmem:[#allocation2 + $0x20] sm:$0xff] %vm1589_vm8, %v3509_v54  ;;  %v2934_v41 = vpop.permute.xlu1 %2933  ;;  %v4964_v54 = vld [vmem:[%s5333_s19 + $0x16c] sm:$0xff] }
 0x369   : > { %5162 = vmatmul.mubr.msk.f32.gmra.mrb[2].mxu1 %vm1857_vm10, %v3823_v48  ;;  %3023 = vst.msk [vmem:[#allocation2 + $0x30] sm:$0xff] %vm1007_vm4, %v2934_v41  ;;  %3340 = vrot.lane.b32.xlu0 %v4894_v22, %s5284_s24 }
 0x36a   : > { %3342 = vrot.lane.b32.xlu1 %v4895_v58, %s5284_s24 }
 0x36b   : > { %v3511_v7 = vpop.permute.xlu0 %3510 }
 0x36c   : > { %3601 = vst.msk [vmem:[#allocation2 + $0x28] sm:$0xff] %vm1589_vm8, %v3511_v7  ;;  %v3701_v0 = vpop.permute.xlu1 %3700 }
 0x36d   : > { %3792 = vst.msk [vmem:[#allocation2 + $0x20] sm:$0xff] %vm1782_vm9, %v3701_v0  ;;  %3532 = vrot.lane.b32.xlu0 %v6912_v31, %s5285_s25  ;;  %v4902_v0 = vld [vmem:[%s5333_s19 + $0x180] sm:$0xff] }
 0x36e   : > { %2957 = vrot.lane.b32.xlu1 %v6896_v25, %s5282_s22 }
 0x36f   : > { %v2936_v46 = vpop.permute.xlu0 %2935 }
 0x370   : > { %3024 = vst.msk [vmem:[#allocation2 + $0x38] sm:$0xff] %vm1007_vm4, %v2936_v46  ;;  %v3126_v56 = vpop.permute.xlu1 %3125 }
 0x371   : > { %3215 = vst.msk [vmem:[#allocation2 + $0x30] sm:$0xff] %vm1200_vm5, %v3126_v56  ;;  %3534 = vrot.lane.b32.xlu0 %v6915_v32, %s5285_s25 }
 0x372   : > { %3724 = vrot.lane.b32.xlu1 %v4958_v21, %s5286_s26 }
 0x373   : > { %v3703_v29 = vpop.permute.xlu0 %3702 }
 0x374   : > { %3793 = vst.msk [vmem:[#allocation2 + $0x28] sm:$0xff] %vm1782_vm9, %v3703_v29  ;;  %v3128_v37 = vpop.permute.xlu1 %3127  ;;  %v3824_v25 = vld [vmem:[#allocation2 + $0x20] sm:$0xff] }
 0x375   : > { %3216 = vst.msk [vmem:[#allocation2 + $0x38] sm:$0xff] %vm1200_vm5, %v3128_v37  ;;  %2959 = vrot.lane.b32.xlu0 %v6899_v26, %s5282_s22  ;;  %5164 = vmatprep.mubr.msk.f32.mxu1 %vm1857_vm10, %v3824_v25  ;;  %v4934_v29 = vld [vmem:[%s5333_s19 + $0x182] sm:$0xff] }
 0x376   : > { %3149 = vrot.lane.b32.xlu1 %v7319_v43, %s5283_s23  ;;  %v4962_v43 = vld [vmem:[%s5333_s19 + $0x154] sm:$0xff] }
 0x377   : > { %v3321_v47 = vpop.permute.xlu0 %3320 }
 0x378   : > { %3410 = vst.msk [vmem:[#allocation2 + $0x30] sm:$0xff] %vm1396_vm6, %v3321_v47  ;;  %v3323_v52 = vpop.permute.xlu1 %3322  ;;  %v4840_v47 = vld [vmem:[%s5333_s19 + $0x16a] sm:$0xff] }
 0x379   : > { %3411 = vst.msk [vmem:[#allocation2 + $0x38] sm:$0xff] %vm1396_vm6, %v3323_v52  ;;  %3726 = vrot.lane.b32.xlu0 %v4959_v61, %s5286_s26 }
 0x37a   : > { %3151 = vrot.lane.b32.xlu1 %v4957_v4, %s5283_s23 }
 0x37b   : > { %v3513_v53 = vpop.permute.xlu0 %3512  ;;  %v3825_v26 = vld [vmem:[#allocation2 + $0x28] sm:$0xff] }
 0x37c   : > { %3602 = vst.msk [vmem:[#allocation2 + $0x30] sm:$0xff] %vm1589_vm8, %v3513_v53  ;;  %v2938_v57 = vpop.permute.xlu1 %2937  ;;  %5165 = vmatmul.mubr.msk.f32.gmra.mrb[4].mxu1 %vm1857_vm10, %v3825_v26 }
 0x37d   : > { %3025 = vst.msk [vmem:[#allocation2 + $0x40] sm:$0xff] %vm1007_vm4, %v2938_v57  ;;  %3344 = vrot.lane.b32.xlu0 %v4896_v24, %s5284_s24 }
 0x37e   : > { %3346 = vrot.lane.b32.xlu1 %v4897_v8, %s5284_s24 }
 0x37f   : > { %v3515_v50 = vpop.permute.xlu0 %3514 }
 0x380   : > { %3603 = vst.msk [vmem:[#allocation2 + $0x38] sm:$0xff] %vm1589_vm8, %v3515_v50  ;;  %v3705_v10 = vpop.permute.xlu1 %3704  ;;  %v4841_v50 = vld [vmem:[%s5333_s19 + $0x172] sm:$0xff] }
 0x381   : > { %3794 = vst.msk [vmem:[#allocation2 + $0x30] sm:$0xff] %vm1782_vm9, %v3705_v10  ;;  %3536 = vrot.lane.b32.xlu0 %v6928_v35, %s5285_s25 }
 0x382   : > { %2961 = vrot.lane.b32.xlu1 %v6912_v31, %s5282_s22  ;;  %v4961_v31 = vld [vmem:[%s5333_s19 + $0x144] sm:$0xff] }
 0x383   : > { %v2940_v44 = vpop.permute.xlu0 %2939 }
 0x384   : > { %3026 = vst.msk [vmem:[#allocation2 + $0x48] sm:$0xff] %vm1007_vm4, %v2940_v44  ;;  %v3130_v14 = vpop.permute.xlu1 %3129 }
 0x385   : > { %3217 = vst.msk [vmem:[#allocation2 + $0x40] sm:$0xff] %vm1200_vm5, %v3130_v14  ;;  %3538 = vrot.lane.b32.xlu0 %v6931_v36, %s5285_s25 }
 0x386   : > { %3728 = vrot.lane.b32.xlu1 %v4960_v11, %s5286_s26 }
 0x387   : > { %v3707_v13 = vpop.permute.xlu0 %3706 }
 0x388   : > { %3795 = vst.msk [vmem:[#allocation2 + $0x38] sm:$0xff] %vm1782_vm9, %v3707_v13  ;;  %v3132_v59 = vpop.permute.xlu1 %3131  ;;  %v3826_v1 = vld [vmem:[#allocation2 + $0x30] sm:$0xff] }
 0x389   : > { %3218 = vst.msk [vmem:[#allocation2 + $0x48] sm:$0xff] %vm1200_vm5, %v3132_v59  ;;  %2963 = vrot.lane.b32.xlu0 %v6915_v32, %s5282_s22  ;;  %5167 = vmatprep.mubr.msk.f32.mxu1 %vm1857_vm10, %v3826_v1  ;;  %v4904_v59 = vld [vmem:[%s5333_s19 + $0x198] sm:$0xff] }
 0x38a   : > { %3153 = vrot.lane.b32.xlu1 %v4958_v21, %s5283_s23  ;;  %v7490_v21 = vld [vmem:[%s5333_s19 + $0x188] sm:$0xff] }
 0x38b   : > { %v3325_v62 = vpop.permute.xlu0 %3324 }
 0x38c   : > { %3412 = vst.msk [vmem:[#allocation2 + $0x40] sm:$0xff] %vm1396_vm6, %v3325_v62  ;;  %v3327_v55 = vpop.permute.xlu1 %3326 }
 0x38d   : > { %3413 = vst.msk [vmem:[#allocation2 + $0x48] sm:$0xff] %vm1396_vm6, %v3327_v55  ;;  %3730 = vrot.lane.b32.xlu0 %v4961_v31, %s5286_s26  ;;  %v4905_v55 = vld [vmem:[%s5333_s19 + $0x1a0] sm:$0xff] }
 0x38e   : > { %3155 = vrot.lane.b32.xlu1 %v4959_v61, %s5283_s23 }
 0x38f   : > { %v3517_v42 = vpop.permute.xlu0 %3516  ;;  %v3827_v18 = vld [vmem:[#allocation2 + $0x38] sm:$0xff] }
 0x390   : > { %3604 = vst.msk [vmem:[#allocation2 + $0x40] sm:$0xff] %vm1589_vm8, %v3517_v42  ;;  %v2942_v32 = vpop.permute.xlu1 %2941  ;;  %5168 = vmatmul.mubr.msk.f32.gmra.mrb[6].mxu1 %vm1857_vm10, %v3827_v18  ;;  %v4936_v42 = vld [vmem:[%s5333_s19 + $0x19a] sm:$0xff] }
 0x391   : > { %3027 = vst.msk [vmem:[#allocation2 + $0x50] sm:$0xff] %vm1007_vm4, %v2942_v32  ;;  %3348 = vrot.lane.b32.xlu0 %v4898_v17, %s5284_s24 }
 0x392   : > { %2773 = vrot.lane.b32.xlu1 %v4896_v24, %s5281_s21  ;;  %v4935_v24 = vld [vmem:[%s5333_s19 + $0x18a] sm:$0xff] }
 0x393   : > { %v3519_v5 = vpop.permute.xlu0 %3518 }
 0x394   : > { %3605 = vst.msk [vmem:[#allocation2 + $0x48] sm:$0xff] %vm1589_vm8, %v3519_v5  ;;  %v3709_v12 = vpop.permute.xlu1 %3708 }
 0x395   : > { %3796 = vst.msk [vmem:[#allocation2 + $0x40] sm:$0xff] %vm1782_vm9, %v3709_v12  ;;  %3350 = vrot.lane.b32.xlu0 %v4899_v49, %s5284_s24  ;;  %v4937_v12 = vld [vmem:[%s5333_s19 + $0x1a2] sm:$0xff] }
 0x396   : > { %3540 = vrot.lane.b32.xlu1 %v6944_v39, %s5285_s25 }
 0x397   : > { %v2944_v15 = vpop.permute.xlu0 %2943 }
 0x398   : > { %3028 = vst.msk [vmem:[#allocation2 + $0x58] sm:$0xff] %vm1007_vm4, %v2944_v15  ;;  %v3134_v30 = vpop.permute.xlu1 %3133 }
 0x399   : > { %3219 = vst.msk [vmem:[#allocation2 + $0x50] sm:$0xff] %vm1200_vm5, %v3134_v30  ;;  %2775 = vrot.lane.b32.xlu0 %v4897_v8, %s5281_s21  ;;  %v4966_v8 = vld [vmem:[%s5333_s19 + $0x184] sm:$0xff]  ;;  %v4968_v30 = vld [vmem:[%s5333_s19 + $0x19c] sm:$0xff] }
 0x39a   : > { %2965 = vrot.lane.b32.xlu1 %v6928_v35, %s5282_s22 }
 0x39b   : > { %v3711_v63 = vpop.permute.xlu0 %3710 }
 0x39c   : > { %3797 = vst.msk [vmem:[#allocation2 + $0x48] sm:$0xff] %vm1782_vm9, %v3711_v63  ;;  %v3136_v27 = vpop.permute.xlu1 %3135  ;;  %v3828_v28 = vld [vmem:[#allocation2 + $0x40] sm:$0xff] }
 0x39d   : > { %3220 = vst.msk [vmem:[#allocation2 + $0x58] sm:$0xff] %vm1200_vm5, %v3136_v27  ;;  %3542 = vrot.lane.b32.xlu0 %v6947_v40, %s5285_s25  ;;  %5170 = vmatprep.mubr.msk.f32.mxu1 %vm1857_vm10, %v3828_v28  ;;  %v4969_v28 = vld [vmem:[%s5333_s19 + $0x1a4] sm:$0xff] }
 0x39e   : > { %3732 = vrot.lane.b32.xlu1 %v4962_v43, %s5286_s26 }
 0x39f   : > { %v3329_v60 = vpop.permute.xlu0 %3328 }
 0x3a0   : > { %3414 = vst.msk [vmem:[#allocation2 + $0x50] sm:$0xff] %vm1396_vm6, %v3329_v60  ;;  %v3331_v35 = vpop.permute.xlu1 %3330 }
 0x3a1   : > { %3415 = vst.msk [vmem:[#allocation2 + $0x58] sm:$0xff] %vm1396_vm6, %v3331_v35  ;;  %2967 = vrot.lane.b32.xlu0 %v6931_v36, %s5282_s22 }
 0x3a2   : > { %3157 = vrot.lane.b32.xlu1 %v4960_v11, %s5283_s23  ;;  %v4967_v11 = vld [vmem:[%s5333_s19 + $0x18c] sm:$0xff] }
 0x3a3   : > { %v3521_v51 = vpop.permute.xlu0 %3520  ;;  %v3829_v38 = vld [vmem:[#allocation2 + $0x48] sm:$0xff] }
 0x3a4   : > { %3606 = vst.msk [vmem:[#allocation2 + $0x50] sm:$0xff] %vm1589_vm8, %v3521_v51  ;;  %v2946_v3 = vpop.permute.xlu1 %2945  ;;  %5171 = vmatmul.mubr.msk.f32.gmra.mrb[8].mxu1 %vm1857_vm10, %v3829_v38  ;;  %v4906_v51 = vld [vmem:[%s5333_s19 + $0x1b0] sm:$0xff] }
 0x3a5   : > { %3029 = vst.msk [vmem:[#allocation2 + $0x60] sm:$0xff] %vm1007_vm4, %v2946_v3  ;;  %3734 = vrot.lane.b32.xlu0 %v4963_v20, %s5286_s26 }
 0x3a6   : > { %3159 = vrot.lane.b32.xlu1 %v4961_v31, %s5283_s23 }
 0x3a7   : > { %v3523_v2 = vpop.permute.xlu0 %3522 }
 0x3a8   : > { %3607 = vst.msk [vmem:[#allocation2 + $0x58] sm:$0xff] %vm1589_vm8, %v3523_v2  ;;  %v3713_v36 = vpop.permute.xlu1 %3712 }
 0x3a9   : > { %3798 = vst.msk [vmem:[#allocation2 + $0x50] sm:$0xff] %vm1782_vm9, %v3713_v36  ;;  %3352 = vrot.lane.b32.xlu0 %v4900_v6, %s5284_s24 }
 0x3aa   : > { %2777 = vrot.lane.b32.xlu1 %v4898_v17, %s5281_s21 }
 0x3ab   : > { %v2948_v33 = vpop.permute.xlu0 %2947 }
 0x3ac   : > { %3030 = vst.msk [vmem:[#allocation2 + $0x68] sm:$0xff] %vm1007_vm4, %v2948_v33  ;;  %v3138_v9 = vpop.permute.xlu1 %3137 }
 0x3ad   : > { %3221 = vst.msk [vmem:[#allocation2 + $0x60] sm:$0xff] %vm1200_vm5, %v3138_v9  ;;  %3354 = vrot.lane.b32.xlu0 %v4901_v16, %s5284_s24 }
 0x3ae   : > { %3544 = vrot.lane.b32.xlu1 %v6960_v45, %s5285_s25 }
 0x3af   : > { %v3715_v4 = vpop.permute.xlu0 %3714 }
 0x3b0   : > { %3799 = vst.msk [vmem:[#allocation2 + $0x58] sm:$0xff] %vm1782_vm9, %v3715_v4  ;;  %v3140_v19 = vpop.permute.xlu1 %3139  ;;  %v3830_v34 = vld [vmem:[#allocation2 + $0x50] sm:$0xff] }
 0x3b1   : > { %3222 = vst.msk [vmem:[#allocation2 + $0x68] sm:$0xff] %vm1200_vm5, %v3140_v19  ;;  %2779 = vrot.lane.b32.xlu0 %v4899_v49, %s5281_s21  ;;  %5173 = vmatprep.mubr.msk.f32.mxu1 %vm1857_vm10, %v3830_v34  ;;  %v4939_v19 = vld [vmem:[%s5333_s19 + $0x1ba] sm:$0xff] }
 0x3b2   : > { %2969 = vrot.lane.b32.xlu1 %v6944_v39, %s5282_s22  ;;  %v4965_v39 = vld [vmem:[%s5333_s19 + $0x174] sm:$0xff] }
 0x3b3   : > { %v3333_v22 = vpop.permute.xlu0 %3332 }
 0x3b4   : > { %3416 = vst.msk [vmem:[#allocation2 + $0x60] sm:$0xff] %vm1396_vm6, %v3333_v22  ;;  %v3335_v45 = vpop.permute.xlu1 %3334  ;;  %v4970_v22 = vld [vmem:[%s5333_s19 + $0x1b4] sm:$0xff] }
 0x3b5   : > { %3417 = vst.msk [vmem:[#allocation2 + $0x68] sm:$0xff] %vm1396_vm6, %v3335_v45  ;;  %3546 = vrot.lane.b32.xlu0 %v6963_v23, %s5285_s25 }
 0x3b6   : > { %3736 = vrot.lane.b32.xlu1 %v4964_v54, %s5286_s26 }
 0x3b7   : > { %v3525_v48 = vpop.permute.xlu0 %3524  ;;  %v3831_v58 = vld [vmem:[#allocation2 + $0x58] sm:$0xff] }
 0x3b8   : > { %3608 = vst.msk [vmem:[#allocation2 + $0x60] sm:$0xff] %vm1589_vm8, %v3525_v48  ;;  %v2950_v41 = vpop.permute.xlu1 %2949  ;;  %5174 = vmatmul.mubr.msk.f32.gmra.mrb[10].mxu1 %vm1857_vm10, %v3831_v58 }
 0x3b9   : > { %3031 = vst.msk [vmem:[#allocation2 + $0x70] sm:$0xff] %vm1007_vm4, %v2950_v41  ;;  %2971 = vrot.lane.b32.xlu0 %v6947_v40, %s5282_s22  ;;  %v4971_v41 = vld [vmem:[%s5333_s19 + $0x1bc] sm:$0xff] }
 0x3ba   : > { %3161 = vrot.lane.b32.xlu1 %v4962_v43, %s5283_s23 }
 0x3bb   : > { %v3527_v23 = vpop.permute.xlu0 %3526 }
 0x3bc   : > { %3609 = vst.msk [vmem:[#allocation2 + $0x68] sm:$0xff] %vm1589_vm8, %v3527_v23  ;;  %v3717_v7 = vpop.permute.xlu1 %3716 }
 0x3bd   : > { %3800 = vst.msk [vmem:[#allocation2 + $0x60] sm:$0xff] %vm1782_vm9, %v3717_v7  ;;  %3738 = vrot.lane.b32.xlu0 %v4965_v39, %s5286_s26  ;;  %v4908_v7 = vld [vmem:[%s5333_s19 + $0x1c8] sm:$0xff] }
 0x3be   : > { %3163 = vrot.lane.b32.xlu1 %v4963_v20, %s5283_s23 }
 0x3bf   : > { %v2952_v46 = vpop.permute.xlu0 %2951 }
 0x3c0   : > { %3032 = vst.msk [vmem:[#allocation2 + $0x78] sm:$0xff] %vm1007_vm4, %v2952_v46  ;;  %v3142_v40 = vpop.permute.xlu1 %3141 }
 0x3c1   : > { %3223 = vst.msk [vmem:[#allocation2 + $0x70] sm:$0xff] %vm1200_vm5, %v3142_v40  ;;  %3356 = vrot.lane.b32.xlu0 %v4902_v0, %s5284_s24  ;;  %v4909_v40 = vld [vmem:[%s5333_s19 + $0x1d0] sm:$0xff] }
 0x3c2   : > { %2781 = vrot.lane.b32.xlu1 %v4900_v6, %s5281_s21  ;;  %v4907_v6 = vld [vmem:[%s5333_s19 + $0x1b8] sm:$0xff] }
 0x3c3   : > { %v3719_v56 = vpop.permute.xlu0 %3718 }
 0x3c4   : > { %3801 = vst.msk [vmem:[#allocation2 + $0x68] sm:$0xff] %vm1782_vm9, %v3719_v56  ;;  %v3144_v37 = vpop.permute.xlu1 %3143  ;;  %v3832_v25 = vld [vmem:[#allocation2 + $0x60] sm:$0xff]  ;;  %v4940_v56 = vld [vmem:[%s5333_s19 + $0x1ca] sm:$0xff] }
 0x3c5   : > { %3224 = vst.msk [vmem:[#allocation2 + $0x78] sm:$0xff] %vm1200_vm5, %v3144_v37  ;;  %3358 = vrot.lane.b32.xlu0 %v7490_v21, %s5284_s24  ;;  %5176 = vmatprep.mubr.msk.f32.mxu1 %vm1857_vm10, %v3832_v25  ;;  %v4941_v37 = vld [vmem:[%s5333_s19 + $0x1d2] sm:$0xff] }
 0x3c6   : > { %3548 = vrot.lane.b32.xlu1 %v4934_v29, %s5285_s25 }
 0x3c7   : > { %v3337_v61 = vpop.permute.xlu0 %3336 }
 0x3c8   : > { %3418 = vst.msk [vmem:[#allocation2 + $0x70] sm:$0xff] %vm1396_vm6, %v3337_v61  ;;  %v3339_v52 = vpop.permute.xlu1 %3338  ;;  %v4972_v61 = vld [vmem:[%s5333_s19 + $0x1cc] sm:$0xff] }
 0x3c9   : > { %3419 = vst.msk [vmem:[#allocation2 + $0x78] sm:$0xff] %vm1396_vm6, %v3339_v52  ;;  %2783 = vrot.lane.b32.xlu0 %v4901_v16, %s5281_s21  ;;  %v4938_v16 = vld [vmem:[%s5333_s19 + $0x1b2] sm:$0xff] }
 0x3ca   : > { %2973 = vrot.lane.b32.xlu1 %v4840_v47, %s5282_s22  ;;  %v4973_v52 = vld [vmem:[%s5333_s19 + $0x1d4] sm:$0xff] }
 0x3cb   : > { %v3529_v53 = vpop.permute.xlu0 %3528  ;;  %v3833_v26 = vld [vmem:[#allocation2 + $0x68] sm:$0xff] }
 0x3cc   : > { %3610 = vst.msk [vmem:[#allocation2 + $0x70] sm:$0xff] %vm1589_vm8, %v3529_v53  ;;  %v2954_v57 = vpop.permute.xlu1 %2953  ;;  %5177 = vmatmul.mubr.msk.f32.gmra.mrb[12].mxu1 %vm1857_vm10, %v3833_v26 }
 0x3cd   : > { %3033 = vst.msk [vmem:[#allocation2 + $0x80] sm:$0xff] %vm1007_vm4, %v2954_v57  ;;  %3550 = vrot.lane.b32.xlu0 %v4935_v24, %s5285_s25 }
 0x3ce   : > { %3740 = vrot.lane.b32.xlu1 %v4966_v8, %s5286_s26 }
 0x3cf   : > { %v3531_v10 = vpop.permute.xlu0 %3530 }
 0x3d0   : > { %3611 = vst.msk [vmem:[#allocation2 + $0x78] sm:$0xff] %vm1589_vm8, %v3531_v10  ;;  %v3721_v44 = vpop.permute.xlu1 %3720 }
 0x3d1   : > { %3802 = vst.msk [vmem:[#allocation2 + $0x70] sm:$0xff] %vm1782_vm9, %v3721_v44  ;;  %2975 = vrot.lane.b32.xlu0 %v4841_v50, %s5282_s22 }
 0x3d2   : > { %3165 = vrot.lane.b32.xlu1 %v4964_v54, %s5283_s23 }
 0x3d3   : > { %v2956_v14 = vpop.permute.xlu0 %2955 }
 0x3d4   : > { %3034 = vst.msk [vmem:[#allocation2 + $0x88] sm:$0xff] %vm1007_vm4, %v2956_v14  ;;  %v3146_v13 = vpop.permute.xlu1 %3145 }
 0x3d5   : > { %3225 = vst.msk [vmem:[#allocation2 + $0x80] sm:$0xff] %vm1200_vm5, %v3146_v13  ;;  %3742 = vrot.lane.b32.xlu0 %v4967_v11, %s5286_s26 }
 0x3d6   : > { %3167 = vrot.lane.b32.xlu1 %v4965_v39, %s5283_s23 }
 0x3d7   : > { %v3723_v1 = vpop.permute.xlu0 %3722 }
 0x3d8   : > { %3803 = vst.msk [vmem:[#allocation2 + $0x78] sm:$0xff] %vm1782_vm9, %v3723_v1  ;;  %v3148_v31 = vpop.permute.xlu1 %3147  ;;  %v3834_v62 = vld [vmem:[#allocation2 + $0x70] sm:$0xff] }
 0x3d9   : > { %3226 = vst.msk [vmem:[#allocation2 + $0x88] sm:$0xff] %vm1200_vm5, %v3148_v31  ;;  %3360 = vrot.lane.b32.xlu0 %v4904_v59, %s5284_s24  ;;  %5179 = vmatprep.mubr.msk.f32.mxu1 %vm1857_vm10, %v3834_v62  ;;  %v7621_v31 = vld [vmem:[%s7820_s2 + $0x1] ss:$0 sm:$0xff] }
 0x3da   : > { %2785 = vrot.lane.b32.xlu1 %v4902_v0, %s5281_s21 }
 0x3db   : > { %v3341_v17 = vpop.permute.xlu0 %3340 }
 0x3dc   : > { %3420 = vst.msk [vmem:[#allocation2 + $0x80] sm:$0xff] %vm1396_vm6, %v3341_v17  ;;  %v3343_v18 = vpop.permute.xlu1 %3342 }
 0x3dd   : > { %3421 = vst.msk [vmem:[#allocation2 + $0x88] sm:$0xff] %vm1396_vm6, %v3343_v18  ;;  %3362 = vrot.lane.b32.xlu0 %v4905_v55, %s5284_s24 }
 0x3de   : > { %3552 = vrot.lane.b32.xlu1 %v4936_v42, %s5285_s25 }
 0x3df   : > { %v3533_v32 = vpop.permute.xlu0 %3532  ;;  %v3835_v49 = vld [vmem:[#allocation2 + $0x78] sm:$0xff] }
 0x3e0   : > { %3612 = vst.msk [vmem:[#allocation2 + $0x80] sm:$0xff] %vm1589_vm8, %v3533_v32  ;;  %v2958_v5 = vpop.permute.xlu1 %2957  ;;  %5180 = vmatmul.mubr.msk.f32.gmra.mrb[14].mxu1 %vm1857_vm10, %v3835_v49 }
 0x3e1   : > { %3035 = vst.msk [vmem:[#allocation2 + $0x90] sm:$0xff] %vm1007_vm4, %v2958_v5  ;;  %2787 = vrot.lane.b32.xlu0 %v7490_v21, %s5281_s21 }
 0x3e2   : > { %2977 = vrot.lane.b32.xlu1 %v4934_v29, %s5282_s22 }
 0x3e3   : > { %v3535_v15 = vpop.permute.xlu0 %3534 }
 0x3e4   : > { %3613 = vst.msk [vmem:[#allocation2 + $0x88] sm:$0xff] %vm1589_vm8, %v3535_v15  ;;  %v3725_v63 = vpop.permute.xlu1 %3724 }
 0x3e5   : > { %3804 = vst.msk [vmem:[#allocation2 + $0x80] sm:$0xff] %vm1782_vm9, %v3725_v63  ;;  %3554 = vrot.lane.b32.xlu0 %v4937_v12, %s5285_s25 }
 0x3e6   : > { %3744 = vrot.lane.b32.xlu1 %v4968_v30, %s5286_s26 }
 0x3e7   : > { %v2960_v43 = vpop.permute.xlu0 %2959 }
 0x3e8   : > { %3036 = vst.msk [vmem:[#allocation2 + $0x98] sm:$0xff] %vm1007_vm4, %v2960_v43  ;;  %v3150_v27 = vpop.permute.xlu1 %3149 }
 0x3e9   : > { %3227 = vst.msk [vmem:[#allocation2 + $0x90] sm:$0xff] %vm1200_vm5, %v3150_v27  ;;  %2979 = vrot.lane.b32.xlu0 %v4935_v24, %s5282_s22 }
 0x3ea   : > { %3169 = vrot.lane.b32.xlu1 %v4966_v8, %s5283_s23 }
 0x3eb   : > { %v3727_v60 = vpop.permute.xlu0 %3726 }
 0x3ec   : > { %3805 = vst.msk [vmem:[#allocation2 + $0x88] sm:$0xff] %vm1782_vm9, %v3727_v60  ;;  %v3152_v35 = vpop.permute.xlu1 %3151  ;;  %v3836_v20 = vld [vmem:[#allocation2 + $0x80] sm:$0xff] }
 0x3ed   : > { %3228 = vst.msk [vmem:[#allocation2 + $0x98] sm:$0xff] %vm1200_vm5, %v3152_v35  ;;  %3746 = vrot.lane.b32.xlu0 %v4969_v28, %s5286_s26  ;;  %5182 = vmatprep.mubr.msk.f32.mxu1 %vm1857_vm10, %v3836_v20 }
 0x3ee   : > { %3171 = vrot.lane.b32.xlu1 %v4967_v11, %s5283_s23 }
 0x3ef   : > { %v3345_v38 = vpop.permute.xlu0 %3344 }
 0x3f0   : > { %3422 = vst.msk [vmem:[#allocation2 + $0x90] sm:$0xff] %vm1396_vm6, %v3345_v38  ;;  %v3347_v3 = vpop.permute.xlu1 %3346 }
 0x3f1   : > { %3423 = vst.msk [vmem:[#allocation2 + $0x98] sm:$0xff] %vm1396_vm6, %v3347_v3  ;;  %3364 = vrot.lane.b32.xlu0 %v4906_v51, %s5284_s24 }
 0x3f2   : > { %2789 = vrot.lane.b32.xlu1 %v4904_v59, %s5281_s21 }
 0x3f3   : > { %v3537_v2 = vpop.permute.xlu0 %3536  ;;  %v3837_v36 = vld [vmem:[#allocation2 + $0x88] sm:$0xff] }
 0x3f4   : > { %3614 = vst.msk [vmem:[#allocation2 + $0x90] sm:$0xff] %vm1589_vm8, %v3537_v2  ;;  %v2962_v33 = vpop.permute.xlu1 %2961  ;;  %5183 = vmatmul.mubr.msk.f32.gmra.mrb[16].mxu1 %vm1857_vm10, %v3837_v36 }
 0x3f5   : > { %3037 = vst.msk [vmem:[#allocation2 + $0xa0] sm:$0xff] %vm1007_vm4, %v2962_v33  ;;  %3366 = vrot.lane.b32.xlu0 %v4907_v6, %s5284_s24 }
 0x3f6   : > { %3556 = vrot.lane.b32.xlu1 %v4938_v16, %s5285_s25 }
 0x3f7   : > { %v3539_v9 = vpop.permute.xlu0 %3538 }
 0x3f8   : > { %3615 = vst.msk [vmem:[#allocation2 + $0x98] sm:$0xff] %vm1589_vm8, %v3539_v9  ;;  %v3729_v4 = vpop.permute.xlu1 %3728 }
 0x3f9   : > { %3806 = vst.msk [vmem:[#allocation2 + $0x90] sm:$0xff] %vm1782_vm9, %v3729_v4  ;;  %2791 = vrot.lane.b32.xlu0 %v4905_v55, %s5281_s21 }
 0x3fa   : > { %2981 = vrot.lane.b32.xlu1 %v4936_v42, %s5282_s22 }
 0x3fb   : > { %v2964_v34 = vpop.permute.xlu0 %2963 }
 0x3fc   : > { %3038 = vst.msk [vmem:[#allocation2 + $0xa8] sm:$0xff] %vm1007_vm4, %v2964_v34  ;;  %v3154_v54 = vpop.permute.xlu1 %3153 }
 0x3fd   : > { %3229 = vst.msk [vmem:[#allocation2 + $0xa0] sm:$0xff] %vm1200_vm5, %v3154_v54  ;;  %3558 = vrot.lane.b32.xlu0 %v4939_v19, %s5285_s25 }
 0x3fe   : > { %3748 = vrot.lane.b32.xlu1 %v4970_v22, %s5286_s26 }
 0x3ff   : > { %v3731_v45 = vpop.permute.xlu0 %3730 }
 0x400   : > { %3807 = vst.msk [vmem:[#allocation2 + $0x98] sm:$0xff] %vm1782_vm9, %v3731_v45  ;;  %v3156_v48 = vpop.permute.xlu1 %3155  ;;  %v3838_v58 = vld [vmem:[#allocation2 + $0x90] sm:$0xff] }
 0x401   : > { %3230 = vst.msk [vmem:[#allocation2 + $0xa8] sm:$0xff] %vm1200_vm5, %v3156_v48  ;;  %2983 = vrot.lane.b32.xlu0 %v4937_v12, %s5282_s22  ;;  %5185 = vmatprep.mubr.msk.f32.mxu1 %vm1857_vm10, %v3838_v58 }
 0x402   : > { %3173 = vrot.lane.b32.xlu1 %v4968_v30, %s5283_s23 }
 0x403   : > { %v3349_v39 = vpop.permute.xlu0 %3348 }
 0x404   : > { %3424 = vst.msk [vmem:[#allocation2 + $0xa0] sm:$0xff] %vm1396_vm6, %v3349_v39  ;;  %v2774_v23 = vpop.permute.xlu1 %2773 }
 0x405   : > { %2847 = vst.msk [vmem:[#allocation2 + $0xb0] sm:$0xff] %vm814_vm3, %v2774_v23  ;;  %3750 = vrot.lane.b32.xlu0 %v4971_v41, %s5286_s26 }
 0x406   : > { %3175 = vrot.lane.b32.xlu1 %v4969_v28, %s5283_s23 }
 0x407   : > { %v3351_v0 = vpop.permute.xlu0 %3350  ;;  %v3839_v46 = vld [vmem:[#allocation2 + $0x98] sm:$0xff] }
 0x408   : > { %3425 = vst.msk [vmem:[#allocation2 + $0xa8] sm:$0xff] %vm1396_vm6, %v3351_v0  ;;  %v3541_v21 = vpop.permute.xlu1 %3540  ;;  %5186 = vmatmul.mubr.msk.f32.gmra.mrb[18].mxu1 %vm1857_vm10, %v3839_v46 }
 0x409   : > { %3616 = vst.msk [vmem:[#allocation2 + $0xa0] sm:$0xff] %vm1589_vm8, %v3541_v21  ;;  %3368 = vrot.lane.b32.xlu0 %v4908_v7, %s5284_s24 }
 0x40a   : > { %3370 = vrot.lane.b32.xlu1 %v4909_v40, %s5284_s24 }
 0x40b   : > { %v2776_v29 = vpop.permute.xlu0 %2775 }
 0x40c   : > { %2848 = vst.msk [vmem:[#allocation2 + $0xb8] sm:$0xff] %vm814_vm3, %v2776_v29  ;;  %v2966_v25 = vpop.permute.xlu1 %2965 }
 0x40d   : > { %3039 = vst.msk [vmem:[#allocation2 + $0xb0] sm:$0xff] %vm1007_vm4, %v2966_v25  ;;  %3560 = vrot.lane.b32.xlu0 %v4940_v56, %s5285_s25 }
 0x40e   : > { %3562 = vrot.lane.b32.xlu1 %v4941_v37, %s5285_s25 }
 0x40f   : > { %v3543_v47 = vpop.permute.xlu0 %3542 }
 0x410   : > { %3617 = vst.msk [vmem:[#allocation2 + $0xa8] sm:$0xff] %vm1589_vm8, %v3543_v47  ;;  %v3733_v24 = vpop.permute.xlu1 %3732 }
 0x411   : > { %3808 = vst.msk [vmem:[#allocation2 + $0xa0] sm:$0xff] %vm1782_vm9, %v3733_v24  ;;  %3752 = vrot.lane.b32.xlu0 %v4972_v61, %s5286_s26 }
 0x412   : > { %3754 = vrot.lane.b32.xlu1 %v4973_v52, %s5286_s26 }
 0x413   : > { %v2968_v53 = vpop.permute.xlu0 %2967 }
 0x414   : > { %3040 = vst.msk [vmem:[#allocation2 + $0xb8] sm:$0xff] %vm1007_vm4, %v2968_v53  ;;  %v3158_v26 = vpop.permute.xlu1 %3157 }
 0x415   : > { %3231 = vst.msk [vmem:[#allocation2 + $0xb0] sm:$0xff] %vm1200_vm5, %v3158_v26 }
 0x417   : > { %v3735_v8 = vpop.permute.xlu0 %3734 }
 0x418   : > { %3809 = vst.msk [vmem:[#allocation2 + $0xa8] sm:$0xff] %vm1782_vm9, %v3735_v8  ;;  %v3160_v57 = vpop.permute.xlu1 %3159  ;;  %v3840_v50 = vld [vmem:[#allocation2 + $0xa0] sm:$0xff] }
 0x419   : > { %3232 = vst.msk [vmem:[#allocation2 + $0xb8] sm:$0xff] %vm1200_vm5, %v3160_v57  ;;  %5188 = vmatprep.mubr.msk.f32.mxu1 %vm1857_vm10, %v3840_v50 }
 0x41b   : > { %v3353_v10 = vpop.permute.xlu0 %3352 }
 0x41c   : > { %3426 = vst.msk [vmem:[#allocation2 + $0xb0] sm:$0xff] %vm1396_vm6, %v3353_v10  ;;  %v2778_v44 = vpop.permute.xlu1 %2777 }
 0x41d   : > { %2849 = vst.msk [vmem:[#allocation2 + $0xc0] sm:$0xff] %vm814_vm3, %v2778_v44 }
 0x41f   : > { %v3355_v11 = vpop.permute.xlu0 %3354  ;;  %v3841_v14 = vld [vmem:[#allocation2 + $0xa8] sm:$0xff] }
 0x420   : > { %3427 = vst.msk [vmem:[#allocation2 + $0xb8] sm:$0xff] %vm1396_vm6, %v3355_v11  ;;  %v3545_v13 = vpop.permute.xlu1 %3544  ;;  %5189 = vmatmul.mubr.msk.f32.gmra.mrb[20].mxu1 %vm1857_vm10, %v3841_v14 }
 0x421   : > { %3618 = vst.msk [vmem:[#allocation2 + $0xb0] sm:$0xff] %vm1589_vm8, %v3545_v13 }
 0x423   : > { %v2780_v59 = vpop.permute.xlu0 %2779 }
 0x424   : > { %2850 = vst.msk [vmem:[#allocation2 + $0xc8] sm:$0xff] %vm814_vm3, %v2780_v59  ;;  %v2970_v1 = vpop.permute.xlu1 %2969 }
 0x425   : > { %3041 = vst.msk [vmem:[#allocation2 + $0xc0] sm:$0xff] %vm1007_vm4, %v2970_v1 }
 0x427   : > { %v3547_v62 = vpop.permute.xlu0 %3546 }
 0x428   : > { %v5160_v55 = vpop.f32.mrb[0].mxu1  ;;  %3619 = vst.msk [vmem:[#allocation2 + $0xb8] sm:$0xff] %vm1589_vm8, %v3547_v62  ;;  %v3737_v42 = vpop.permute.xlu1 %3736 }
 0x429   : > { %v4034_v17 = vadd.f32 %v5160_v55, %v7621_v31  ;;  %v4028_v18 = vpop.f32.mrb[1].mxu1  ;;  %3810 = vst.msk [vmem:[#allocation2 + $0xb0] sm:$0xff] %vm1782_vm9, %v3737_v42 }
 0x42a   : > { %v4029_v32 = vadd.f32 %v7621_v31, %v4028_v18 }
 0x42b   : > { %4221 = vrot.lane.b32.xlu1 %v4034_v17, %s5280_s20  ;;  %v2972_v49 = vpop.permute.xlu0 %2971 }
 0x42c   : > { %4219 = vrot.lane.b32.xlu0 %v4029_v32, %s5280_s20  ;;  %3042 = vst.msk [vmem:[#allocation2 + $0xc8] sm:$0xff] %vm1007_vm4, %v2972_v49  ;;  %v3162_v5 = vpop.permute.xlu1 %3161 }
 0x42d   : > { %3233 = vst.msk [vmem:[#allocation2 + $0xc0] sm:$0xff] %vm1200_vm5, %v3162_v5 }
 0x42f   : > { %v3739_v12 = vpop.permute.xlu0 %3738 }
 0x430   : > { %3811 = vst.msk [vmem:[#allocation2 + $0xb8] sm:$0xff] %vm1782_vm9, %v3739_v12  ;;  %v3164_v15 = vpop.permute.xlu1 %3163  ;;  %v3842_v30 = vld [vmem:[#allocation2 + $0xb0] sm:$0xff] }
 0x431   : > { %3234 = vst.msk [vmem:[#allocation2 + $0xc8] sm:$0xff] %vm1200_vm5, %v3164_v15  ;;  %5191 = vmatprep.mubr.msk.f32.mxu1 %vm1857_vm10, %v3842_v30 }
 0x433   : > { %v3357_v63 = vpop.permute.xlu0 %3356 }
 0x434   : > { %3428 = vst.msk [vmem:[#allocation2 + $0xc0] sm:$0xff] %vm1396_vm6, %v3357_v63  ;;  %v2782_v43 = vpop.permute.xlu1 %2781 }
 0x435   : > { %2851 = vst.msk [vmem:[#allocation2 + $0xd0] sm:$0xff] %vm814_vm3, %v2782_v43 }
 0x437   : > { %v3359_v27 = vpop.permute.xlu0 %3358  ;;  %v3843_v28 = vld [vmem:[#allocation2 + $0xb8] sm:$0xff] }
 0x438   : > { %3429 = vst.msk [vmem:[#allocation2 + $0xc8] sm:$0xff] %vm1396_vm6, %v3359_v27  ;;  %v3549_v60 = vpop.permute.xlu1 %3548  ;;  %5192 = vmatmul.mubr.msk.f32.gmra.mrb[22].mxu1 %vm1857_vm10, %v3843_v28 }
 0x439   : > { %3620 = vst.msk [vmem:[#allocation2 + $0xc0] sm:$0xff] %vm1589_vm8, %v3549_v60 }
 0x43b   : > { %v2784_v35 = vpop.permute.xlu0 %2783 }
 0x43c   : > { %v5163_v20 = vpop.f32.mrb[2].mxu1  ;;  %2852 = vst.msk [vmem:[#allocation2 + $0xd8] sm:$0xff] %vm814_vm3, %v2784_v35  ;;  %v2974_v38 = vpop.permute.xlu1 %2973 }
 0x43d   : > { %v4044_v51 = vadd.f32 %v5163_v20, %v7621_v31  ;;  %v4038_v3 = vpop.f32.mrb[3].mxu1  ;;  %3043 = vst.msk [vmem:[#allocation2 + $0xd0] sm:$0xff] %vm1007_vm4, %v2974_v38 }
 0x43e   : > { %v4039_v6 = vadd.f32 %v7621_v31, %v4038_v3 }
 0x43f   : > { %4225 = vrot.lane.b32.xlu1 %v4044_v51, %s5280_s20  ;;  %v3551_v2 = vpop.permute.xlu0 %3550 }
 0x440   : > { %4223 = vrot.lane.b32.xlu0 %v4039_v6, %s5280_s20  ;;  %3621 = vst.msk [vmem:[#allocation2 + $0xc8] sm:$0xff] %vm1589_vm8, %v3551_v2  ;;  %v3741_v36 = vpop.permute.xlu1 %3740 }
 0x441   : > { %3812 = vst.msk [vmem:[#allocation2 + $0xc0] sm:$0xff] %vm1782_vm9, %v3741_v36 }
 0x443   : > { %v2976_v16 = vpop.permute.xlu0 %2975 }
 0x444   : > { %3044 = vst.msk [vmem:[#allocation2 + $0xd8] sm:$0xff] %vm1007_vm4, %v2976_v16  ;;  %v3166_v33 = vpop.permute.xlu1 %3165 }
 0x445   : > { %3235 = vst.msk [vmem:[#allocation2 + $0xd0] sm:$0xff] %vm1200_vm5, %v3166_v33 }
 0x447   : > { %v3743_v9 = vpop.permute.xlu0 %3742 }
 0x448   : > { %3813 = vst.msk [vmem:[#allocation2 + $0xc8] sm:$0xff] %vm1782_vm9, %v3743_v9  ;;  %v3168_v4 = vpop.permute.xlu1 %3167  ;;  %v3844_v19 = vld [vmem:[#allocation2 + $0xc0] sm:$0xff] }
 0x449   : > { %3236 = vst.msk [vmem:[#allocation2 + $0xd8] sm:$0xff] %vm1200_vm5, %v3168_v4  ;;  %5194 = vmatprep.mubr.msk.f32.mxu1 %vm1857_vm10, %v3844_v19 }
 0x44b   : > { %v3361_v34 = vpop.permute.xlu0 %3360 }
 0x44c   : > { %3430 = vst.msk [vmem:[#allocation2 + $0xd0] sm:$0xff] %vm1396_vm6, %v3361_v34  ;;  %v2786_v22 = vpop.permute.xlu1 %2785 }
 0x44d   : > { %2853 = vst.msk [vmem:[#allocation2 + $0xe0] sm:$0xff] %vm814_vm3, %v2786_v22 }
 0x44f   : > { %v3363_v54 = vpop.permute.xlu0 %3362  ;;  %v5166_v45 = vpop.f32.mrb[4].mxu1  ;;  %v3845_v48 = vld [vmem:[#allocation2 + $0xc8] sm:$0xff] }
 0x450   : > { %3431 = vst.msk [vmem:[#allocation2 + $0xd8] sm:$0xff] %vm1396_vm6, %v3363_v54  ;;  %v4054_v58 = vadd.f32 %v5166_v45, %v7621_v31  ;;  %v3553_v41 = vpop.permute.xlu1 %3552  ;;  %v4048_v39 = vpop.f32.mrb[5].mxu1  ;;  %5195 = vmatmul.mubr.msk.f32.gmra.mrb[24].mxu1 %vm1857_vm10, %v3845_v48 }
 0x451   : > { %3622 = vst.msk [vmem:[#allocation2 + $0xd0] sm:$0xff] %vm1589_vm8, %v3553_v41  ;;  %v4049_v23 = vadd.f32 %v7621_v31, %v4048_v39 }
 0x452   : > { %4229 = vrot.lane.b32.xlu1 %v4054_v58, %s5280_s20 }
 0x453   : > { %v2788_v7 = vpop.permute.xlu0 %2787  ;;  %4227 = vrot.lane.b32.xlu0 %v4049_v23, %s5280_s20 }
 0x454   : > { %2854 = vst.msk [vmem:[#allocation2 + $0xe8] sm:$0xff] %vm814_vm3, %v2788_v7  ;;  %v2978_v0 = vpop.permute.xlu1 %2977 }
 0x455   : > { %3045 = vst.msk [vmem:[#allocation2 + $0xe0] sm:$0xff] %vm1007_vm4, %v2978_v0 }
 0x457   : > { %v3555_v46 = vpop.permute.xlu0 %3554 }
 0x458   : > { %3623 = vst.msk [vmem:[#allocation2 + $0xd8] sm:$0xff] %vm1589_vm8, %v3555_v46  ;;  %v3745_v40 = vpop.permute.xlu1 %3744 }
 0x459   : > { %3814 = vst.msk [vmem:[#allocation2 + $0xd0] sm:$0xff] %vm1782_vm9, %v3745_v40 }
 0x45b   : > { %v2980_v21 = vpop.permute.xlu0 %2979 }
 0x45c   : > { %3046 = vst.msk [vmem:[#allocation2 + $0xe8] sm:$0xff] %vm1007_vm4, %v2980_v21  ;;  %v3170_v56 = vpop.permute.xlu1 %3169 }
 0x45d   : > { %3237 = vst.msk [vmem:[#allocation2 + $0xe0] sm:$0xff] %vm1200_vm5, %v3170_v56 }
 0x45f   : > { %v3747_v29 = vpop.permute.xlu0 %3746 }
 0x460   : > { %3815 = vst.msk [vmem:[#allocation2 + $0xd8] sm:$0xff] %vm1782_vm9, %v3747_v29  ;;  %v3172_v37 = vpop.permute.xlu1 %3171  ;;  %v3846_v25 = vld [vmem:[#allocation2 + $0xd0] sm:$0xff] }
 0x461   : > { %3238 = vst.msk [vmem:[#allocation2 + $0xe8] sm:$0xff] %vm1200_vm5, %v3172_v37  ;;  %5197 = vmatprep.mubr.msk.f32.mxu1 %vm1857_vm10, %v3846_v25 }
 0x463   : > { %v3365_v61 = vpop.permute.xlu0 %3364  ;;  %v5169_v47 = vpop.f32.mrb[6].mxu1 }
 0x464   : > { %3432 = vst.msk [vmem:[#allocation2 + $0xe0] sm:$0xff] %vm1396_vm6, %v3365_v61  ;;  %v4064_v52 = vadd.f32 %v5169_v47, %v7621_v31  ;;  %v2790_v24 = vpop.permute.xlu1 %2789  ;;  %v4058_v53 = vpop.f32.mrb[7].mxu1 }
 0x465   : > { %2855 = vst.msk [vmem:[#allocation2 + $0xf0] sm:$0xff] %vm814_vm3, %v2790_v24  ;;  %v4059_v26 = vadd.f32 %v7621_v31, %v4058_v53 }
 0x466   : > { %4233 = vrot.lane.b32.xlu1 %v4064_v52, %s5280_s20 }
 0x467   : > { %v3367_v8 = vpop.permute.xlu0 %3366  ;;  %4231 = vrot.lane.b32.xlu0 %v4059_v26, %s5280_s20  ;;  %v3847_v57 = vld [vmem:[#allocation2 + $0xd8] sm:$0xff] }
 0x468   : > { %3433 = vst.msk [vmem:[#allocation2 + $0xe8] sm:$0xff] %vm1396_vm6, %v3367_v8  ;;  %v3557_v50 = vpop.permute.xlu1 %3556  ;;  %5198 = vmatmul.mubr.msk.f32.gmra.mrb[26].mxu1 %vm1857_vm10, %v3847_v57 }
 0x469   : > { %3624 = vst.msk [vmem:[#allocation2 + $0xe0] sm:$0xff] %vm1589_vm8, %v3557_v50 }
 0x46b   : > { %v2792_v10 = vpop.permute.xlu0 %2791 }
 0x46c   : > { %2856 = vst.msk [vmem:[#allocation2 + $0xf8] sm:$0xff] %vm814_vm3, %v2792_v10  ;;  %v2982_v44 = vpop.permute.xlu1 %2981 }
 0x46d   : > { %3047 = vst.msk [vmem:[#allocation2 + $0xf0] sm:$0xff] %vm1007_vm4, %v2982_v44 }
 0x46f   : > { %v3559_v11 = vpop.permute.xlu0 %3558 }
 0x470   : > { %3625 = vst.msk [vmem:[#allocation2 + $0xe8] sm:$0xff] %vm1589_vm8, %v3559_v11  ;;  %v3749_v14 = vpop.permute.xlu1 %3748 }
 0x471   : > { %3816 = vst.msk [vmem:[#allocation2 + $0xe0] sm:$0xff] %vm1782_vm9, %v3749_v14 }
 0x473   : > { %v2984_v13 = vpop.permute.xlu0 %2983 }
 0x474   : > { %3048 = vst.msk [vmem:[#allocation2 + $0xf8] sm:$0xff] %vm1007_vm4, %v2984_v13  ;;  %v3174_v59 = vpop.permute.xlu1 %3173 }
 0x475   : > { %3239 = vst.msk [vmem:[#allocation2 + $0xf0] sm:$0xff] %vm1200_vm5, %v3174_v59 }
 0x477   : > { %v3751_v1 = vpop.permute.xlu0 %3750  ;;  %v5172_v62 = vpop.f32.mrb[8].mxu1 }
 0x478   : > { %3817 = vst.msk [vmem:[#allocation2 + $0xe8] sm:$0xff] %vm1782_vm9, %v3751_v1  ;;  %v4074_v55 = vadd.f32 %v5172_v62, %v7621_v31  ;;  %v3176_v17 = vpop.permute.xlu1 %3175  ;;  %v4068_v42 = vpop.f32.mrb[9].mxu1  ;;  %v3848_v18 = vld [vmem:[#allocation2 + $0xe0] sm:$0xff] }
 0x479   : > { %3240 = vst.msk [vmem:[#allocation2 + $0xf8] sm:$0xff] %vm1200_vm5, %v3176_v17  ;;  %v4069_v32 = vadd.f32 %v7621_v31, %v4068_v42  ;;  %5200 = vmatprep.mubr.msk.f32.mxu1 %vm1857_vm10, %v3848_v18 }
 0x47a   : > { %4237 = vrot.lane.b32.xlu1 %v4074_v55, %s5280_s20 }
 0x47b   : > { %v3369_v49 = vpop.permute.xlu0 %3368  ;;  %4235 = vrot.lane.b32.xlu0 %v4069_v32, %s5280_s20 }
 0x47c   : > { %3434 = vst.msk [vmem:[#allocation2 + $0xf0] sm:$0xff] %vm1396_vm6, %v3369_v49  ;;  %v3371_v5 = vpop.permute.xlu1 %3370 }
 0x47d   : > { %3435 = vst.msk [vmem:[#allocation2 + $0xf8] sm:$0xff] %vm1396_vm6, %v3371_v5 }
 0x47f   : > { %v3561_v12 = vpop.permute.xlu0 %3560  ;;  %v3849_v15 = vld [vmem:[#allocation2 + $0xe8] sm:$0xff] }
 0x480   : > { %3626 = vst.msk [vmem:[#allocation2 + $0xf0] sm:$0xff] %vm1589_vm8, %v3561_v12  ;;  %v3563_v30 = vpop.permute.xlu1 %3562  ;;  %5201 = vmatmul.mubr.msk.f32.gmra.mrb[28].mxu1 %vm1857_vm10, %v3849_v15 }
 0x481   : > { %3627 = vst.msk [vmem:[#allocation2 + $0xf8] sm:$0xff] %vm1589_vm8, %v3563_v30 }
 0x483   : > { %v3753_v63 = vpop.permute.xlu0 %3752 }
 0x484   : > { %3818 = vst.msk [vmem:[#allocation2 + $0xf0] sm:$0xff] %vm1782_vm9, %v3753_v63  ;;  %v3755_v43 = vpop.permute.xlu1 %3754 }
 0x485   : > { %3819 = vst.msk [vmem:[#allocation2 + $0xf8] sm:$0xff] %vm1782_vm9, %v3755_v43 }
 0x48b   : > { %v5175_v27 = vpop.f32.mrb[10].mxu1  ;;  %v3850_v28 = vld [vmem:[#allocation2 + $0xf0] sm:$0xff] }
 0x48c   : > { %v4084_v60 = vadd.f32 %v5175_v27, %v7621_v31  ;;  %v4078_v35 = vpop.f32.mrb[11].mxu1  ;;  %5203 = vmatprep.mubr.msk.f32.mxu1 %vm1857_vm10, %v3850_v28  ;;  %v3851_v20 = vld [vmem:[#allocation2 + $0xf8] sm:$0xff] }
 0x48d   : > { %v4079_v51 = vadd.f32 %v7621_v31, %v4078_v35  ;;  %5204 = vmatmul.mubr.msk.f32.gmra.mrb[30].mxu1 %vm1857_vm10, %v3851_v20 }
 0x48e   : > { %4241 = vrot.lane.b32.xlu1 %v4084_v60, %s5280_s20 }
 0x48f   : > { %4239 = vrot.lane.b32.xlu0 %v4079_v51, %s5280_s20 }
 0x49d   : > { %v4222_v38 = vpop.permute.xlu1 %4221 }
 0x49e   : > { %4316 = vst.msk [vmem:[%s7140_s16 + $0x8] sm:$0xff] %vm425_vm1, %v4222_v38  ;;  %v4220_v3 = vpop.permute.xlu0 %4219 }
 0x49f   : > { %4315 = vst.msk [vmem:[%s7140_s16] sm:$0xff] %vm425_vm1, %v4220_v3  ;;  %v5178_v6 = vpop.f32.mrb[12].mxu1 }
 0x4a0   : > { %v4094_v2 = vadd.f32 %v5178_v6, %v7621_v31  ;;  %v4088_v36 = vpop.f32.mrb[13].mxu1 }
 0x4a1   : > { %v4089_v16 = vadd.f32 %v7621_v31, %v4088_v36 }
 0x4a2   : > { %4245 = vrot.lane.b32.xlu1 %v4094_v2, %s5280_s20 }
 0x4a3   : > { %4243 = vrot.lane.b32.xlu0 %v4089_v16, %s5280_s20 }
 0x4b1   : > { %v4226_v33 = vpop.permute.xlu1 %4225 }
 0x4b2   : > { %4318 = vst.msk [vmem:[%s7140_s16 + $0x18] sm:$0xff] %vm425_vm1, %v4226_v33  ;;  %v4224_v9 = vpop.permute.xlu0 %4223 }
 0x4b3   : > { %4317 = vst.msk [vmem:[%s7140_s16 + $0x10] sm:$0xff] %vm425_vm1, %v4224_v9  ;;  %v5181_v4 = vpop.f32.mrb[14].mxu1 }
 0x4b4   : > { %v4104_v19 = vadd.f32 %v5181_v4, %v7621_v31  ;;  %v4098_v34 = vpop.f32.mrb[15].mxu1 }
 0x4b5   : > { %v4099_v22 = vadd.f32 %v7621_v31, %v4098_v34 }
 0x4b6   : > { %4249 = vrot.lane.b32.xlu1 %v4104_v19, %s5280_s20 }
 0x4b7   : > { %4247 = vrot.lane.b32.xlu0 %v4099_v22, %s5280_s20 }
 0x4c4   : > { %v4230_v54 = vpop.permute.xlu1 %4229 }
 0x4c5   : > { %4320 = vst.msk [vmem:[%s7140_s16 + $0x28] sm:$0xff] %vm425_vm1, %v4230_v54  ;;  %v4228_v45 = vpop.permute.xlu0 %4227 }
 0x4c6   : > { %4319 = vst.msk [vmem:[%s7140_s16 + $0x20] sm:$0xff] %vm425_vm1, %v4228_v45 }
 0x4c7   : > { %v5184_v48 = vpop.f32.mrb[16].mxu1 }
 0x4c8   : > { %v4114_v58 = vadd.f32 %v5184_v48, %v7621_v31  ;;  %v4108_v41 = vpop.f32.mrb[17].mxu1 }
 0x4c9   : > { %v4109_v39 = vadd.f32 %v7621_v31, %v4108_v41 }
 0x4ca   : > { %4253 = vrot.lane.b32.xlu1 %v4114_v58, %s5280_s20 }
 0x4cb   : > { %4251 = vrot.lane.b32.xlu0 %v4109_v39, %s5280_s20 }
 0x4d8   : > { %v4234_v23 = vpop.permute.xlu1 %4233 }
 0x4d9   : > { %4322 = vst.msk [vmem:[%s7140_s16 + $0x38] sm:$0xff] %vm425_vm1, %v4234_v23  ;;  %v4232_v7 = vpop.permute.xlu0 %4231 }
 0x4da   : > { %4321 = vst.msk [vmem:[%s7140_s16 + $0x30] sm:$0xff] %vm425_vm1, %v4232_v7 }
 0x4db   : > { %v5187_v0 = vpop.f32.mrb[18].mxu1 }
 0x4dc   : > { %v4124_v46 = vadd.f32 %v5187_v0, %v7621_v31  ;;  %v4118_v40 = vpop.f32.mrb[19].mxu1 }
 0x4dd   : > { %v4119_v21 = vadd.f32 %v7621_v31, %v4118_v40 }
 0x4de   : > { %4257 = vrot.lane.b32.xlu1 %v4124_v46, %s5280_s20 }
 0x4df   : > { %4255 = vrot.lane.b32.xlu0 %v4119_v21, %s5280_s20 }
 0x4ec   : > { %v4238_v56 = vpop.permute.xlu1 %4237 }
 0x4ed   : > { %4324 = vst.msk [vmem:[%s7140_s16 + $0x48] sm:$0xff] %vm425_vm1, %v4238_v56  ;;  %v4236_v29 = vpop.permute.xlu0 %4235 }
 0x4ee   : > { %4323 = vst.msk [vmem:[%s7140_s16 + $0x40] sm:$0xff] %vm425_vm1, %v4236_v29 }
 0x4f3   : > { %v5190_v37 = vpop.f32.mrb[20].mxu1 }
 0x4f4   : > { %v4134_v25 = vadd.f32 %v5190_v37, %v7621_v31  ;;  %v4128_v61 = vpop.f32.mrb[21].mxu1 }
 0x4f5   : > { %v4129_v47 = vadd.f32 %v7621_v31, %v4128_v61 }
 0x4f6   : > { %4261 = vrot.lane.b32.xlu1 %v4134_v25, %s5280_s20 }
 0x4f7   : > { %4259 = vrot.lane.b32.xlu0 %v4129_v47, %s5280_s20 }
 0x500   : > { %v4242_v52 = vpop.permute.xlu1 %4241 }
 0x501   : > { %4326 = vst.msk [vmem:[%s7140_s16 + $0x58] sm:$0xff] %vm425_vm1, %v4242_v52  ;;  %v4240_v24 = vpop.permute.xlu0 %4239 }
 0x502   : > { %4325 = vst.msk [vmem:[%s7140_s16 + $0x50] sm:$0xff] %vm425_vm1, %v4240_v24 }
 0x50b   : > { %v5193_v53 = vpop.f32.mrb[22].mxu1 }
 0x50c   : > { %v4144_v26 = vadd.f32 %v5193_v53, %v7621_v31  ;;  %v4138_v8 = vpop.f32.mrb[23].mxu1 }
 0x50d   : > { %v4139_v57 = vadd.f32 %v7621_v31, %v4138_v8 }
 0x50e   : > { %4265 = vrot.lane.b32.xlu1 %v4144_v26, %s5280_s20 }
 0x50f   : > { %4263 = vrot.lane.b32.xlu0 %v4139_v57, %s5280_s20 }
 0x514   : > { %v4246_v50 = vpop.permute.xlu1 %4245 }
 0x515   : > { %4328 = vst.msk [vmem:[%s7140_s16 + $0x68] sm:$0xff] %vm425_vm1, %v4246_v50  ;;  %v4244_v10 = vpop.permute.xlu0 %4243 }
 0x516   : > { %4327 = vst.msk [vmem:[%s7140_s16 + $0x60] sm:$0xff] %vm425_vm1, %v4244_v10 }
 0x523   : > { %v5196_v44 = vpop.f32.mrb[24].mxu1 }
 0x524   : > { %v4154_v11 = vadd.f32 %v5196_v44, %v7621_v31  ;;  %v4148_v14 = vpop.f32.mrb[25].mxu1 }
 0x525   : > { %v4149_v13 = vadd.f32 %v7621_v31, %v4148_v14 }
 0x526   : > { %4269 = vrot.lane.b32.xlu1 %v4154_v11, %s5280_s20 }
 0x527   : > { %4267 = vrot.lane.b32.xlu0 %v4149_v13, %s5280_s20 }
 0x528   : > { %v4250_v59 = vpop.permute.xlu1 %4249 }
 0x529   : > { %4330 = vst.msk [vmem:[%s7140_s16 + $0x78] sm:$0xff] %vm425_vm1, %v4250_v59  ;;  %v4248_v1 = vpop.permute.xlu0 %4247 }
 0x52a   : > { %4329 = vst.msk [vmem:[%s7140_s16 + $0x70] sm:$0xff] %vm425_vm1, %v4248_v1 }
 0x53b   : > { %v5199_v62 = vpop.f32.mrb[26].mxu1 }
 0x53c   : > { %v4164_v55 = vadd.f32 %v5199_v62, %v7621_v31  ;;  %v4254_v17 = vpop.permute.xlu1 %4253  ;;  %v4158_v42 = vpop.f32.mrb[27].mxu1 }
 0x53d   : > { %4332 = vst.msk [vmem:[%s7140_s16 + $0x88] sm:$0xff] %vm425_vm1, %v4254_v17  ;;  %v4159_v18 = vadd.f32 %v7621_v31, %v4158_v42  ;;  %v4252_v32 = vpop.permute.xlu0 %4251 }
 0x53e   : > { %4331 = vst.msk [vmem:[%s7140_s16 + $0x80] sm:$0xff] %vm425_vm1, %v4252_v32  ;;  %4273 = vrot.lane.b32.xlu1 %v4164_v55, %s5280_s20 }
 0x53f   : > { %4271 = vrot.lane.b32.xlu0 %v4159_v18, %s5280_s20 }
 0x550   : > { %v4258_v49 = vpop.permute.xlu1 %4257 }
 0x551   : > { %4334 = vst.msk [vmem:[%s7140_s16 + $0x98] sm:$0xff] %vm425_vm1, %v4258_v49  ;;  %v4256_v5 = vpop.permute.xlu0 %4255 }
 0x552   : > { %4333 = vst.msk [vmem:[%s7140_s16 + $0x90] sm:$0xff] %vm425_vm1, %v4256_v5 }
 0x553   : > { %v5202_v12 = vpop.f32.mrb[28].mxu1 }
 0x554   : > { %v4174_v15 = vadd.f32 %v5202_v12, %v7621_v31  ;;  %v4168_v30 = vpop.f32.mrb[29].mxu1 }
 0x555   : > { %v4169_v63 = vadd.f32 %v7621_v31, %v4168_v30 }
 0x556   : > { %4277 = vrot.lane.b32.xlu1 %v4174_v15, %s5280_s20 }
 0x557   : > { %4275 = vrot.lane.b32.xlu0 %v4169_v63, %s5280_s20 }
 0x560   : > { %v5205_v43 = vpop.f32.mrb[30].mxu1 }
 0x561   : > { %v4184_v27 = vadd.f32 %v5205_v43, %v7621_v31  ;;  %v4178_v28 = vpop.f32.mrb[31].mxu1 }
 0x562   : > { %v4179_v60 = vadd.f32 %v7621_v31, %v4178_v28 }
 0x563   : > { %4281 = vrot.lane.b32.xlu1 %v4184_v27, %s5280_s20 }
 0x564   : > { %4279 = vrot.lane.b32.xlu0 %v4179_v60, %s5280_s20 }
 0x568   : > { %v4262_v35 = vpop.permute.xlu1 %4261 }
 0x569   : > { %4336 = vst.msk [vmem:[%s7140_s16 + $0xa8] sm:$0xff] %vm425_vm1, %v4262_v35  ;;  %v4260_v20 = vpop.permute.xlu0 %4259 }
 0x56a   : > { %4335 = vst.msk [vmem:[%s7140_s16 + $0xa0] sm:$0xff] %vm425_vm1, %v4260_v20 }
 0x580   : > { %v4266_v51 = vpop.permute.xlu1 %4265 }
 0x581   : > { %4338 = vst.msk [vmem:[%s7140_s16 + $0xb8] sm:$0xff] %vm425_vm1, %v4266_v51  ;;  %v4264_v38 = vpop.permute.xlu0 %4263 }
 0x582   : > { %4337 = vst.msk [vmem:[%s7140_s16 + $0xb0] sm:$0xff] %vm425_vm1, %v4264_v38 }
 0x598   : > { %v4270_v31 = vpop.permute.xlu1 %4269 }
 0x599   : > { %4340 = vst.msk [vmem:[%s7140_s16 + $0xc8] sm:$0xff] %vm425_vm1, %v4270_v31  ;;  %v4268_v3 = vpop.permute.xlu0 %4267 }
 0x59a   : > { %4339 = vst.msk [vmem:[%s7140_s16 + $0xc0] sm:$0xff] %vm425_vm1, %v4268_v3 }
 0x5b0   : > { %v4274_v6 = vpop.permute.xlu1 %4273 }
 0x5b1   : > { %4342 = vst.msk [vmem:[%s7140_s16 + $0xd8] sm:$0xff] %vm425_vm1, %v4274_v6  ;;  %v4272_v2 = vpop.permute.xlu0 %4271 }
 0x5b2   : > { %4341 = vst.msk [vmem:[%s7140_s16 + $0xd0] sm:$0xff] %vm425_vm1, %v4272_v2 }
 0x5c8   : > { %v4278_v36 = vpop.permute.xlu1 %4277 }
 0x5c9   : > { %4344 = vst.msk [vmem:[%s7140_s16 + $0xe8] sm:$0xff] %vm425_vm1, %v4278_v36  ;;  %v4276_v16 = vpop.permute.xlu0 %4275 }
 0x5ca   : > { %4343 = vst.msk [vmem:[%s7140_s16 + $0xe0] sm:$0xff] %vm425_vm1, %v4276_v16 }
 0x5d5   : > { %v4282_v33 = vpop.permute.xlu1 %4281 }
 0x5d6   : > { %4346 = vst.msk [vmem:[%s7140_s16 + $0xf8] sm:$0xff] %vm425_vm1, %v4282_v33  ;;  %v4280_v9 = vpop.permute.xlu0 %4279 }
 0x5d7   : > { %4345 = vst.msk [vmem:[%s7140_s16 + $0xf0] sm:$0xff] %vm425_vm1, %v4280_v9 }
 0x5d8 PF: > { %s13_s14 = sadd.s32 1, %s5278_s14   ;;  %s7912_s12 = smov %s5274_s13 }
 0x5d9   : > { %p10_p5 = scmp.ge.s32.totalorder %s13_s14, 4   ;;  %s7913_s13 = smov %s7915_s15 }
 0x5db   :  { %12 = sbr.rel (!%p10_p5) target bundleno = 2 (0x2), region = 68 }

</bundles_post_ra>
